<compile_context>
chip_gen: v7x
topology: tpu7x:2x2x1
jax: 0.10.0
libtpu: 0.0.40
codegen_flags: <defaults>
</compile_context>

<pallas_src>
import jax
import jax.numpy as jnp
from jax import lax
from jax.experimental import pallas as pl
from jax.experimental.pallas import tpu as pltpu

D_MODEL = 128
WINDOW = 1
N_LAYERS = 3
BATCH = 8
EPS = 1e-12  # torch.nn.functional.normalize default eps


# ----------------------------- kernel helpers ------------------------------

def _l2_normalize(x):
    # torch.nn.functional.normalize(x, p=2, dim=1): x / max(||x||_2, eps)
    # == x * rsqrt(max(sum_sq, eps^2)) since sqrt is monotone.
    ss = jnp.sum(x * x, axis=-1, keepdims=True)
    return x * lax.rsqrt(jnp.maximum(ss, EPS * EPS))


# ------------------------------ fused kernel --------------------------------

def fused_pt_kernel(x_ref,
                    wcent, bcent, wpw, bpw, wnw, bnw, wfc, bfc,
                    wqc_f, bqc_f, wkp_f, bkp_f, wkn_f, bkn_f,
                    o_ref):
    L, D = wfc.shape[0], wfc.shape[1]
    W = wkp_f.shape[0]
    mm_dtype = wfc.dtype  # bf16 (perf path) or f32 (exact-semantics path)

    def mm(a, w):
        # MXU matmul: cast activation operand to the weight dtype, accumulate f32.
        return jnp.dot(a.astype(mm_dtype), w, preferred_element_type=jnp.float32)

    x = x_ref[...]
    x_prev = [x[:, i * D:(i + 1) * D] for i in range(W)]
    x_cent = x[:, W * D:(W + 1) * D]
    x_next = [x[:, (W + 1 + i) * D:(W + 2 + i) * D] for i in range(W)]

    # ----- PTLayers (unrolled at trace time) -----
    for l in range(L):
        qc = mm(x_cent, wcent[l]) + bcent[l:l + 1, :]
        q, kc = qc[:, :D], qc[:, D:]
        xc_acc = x_cent * jnp.sum(q * kc, axis=-1, keepdims=True)
        new_prev, new_next = [], []
        for i in range(W):
            idx = l * W + i
            pv = mm(x_prev[i], wpw[idx]) + bpw[idx:idx + 1, :]
            nv = mm(x_next[i], wnw[idx]) + bnw[idx:idx + 1, :]
            kp, fp = pv[:, :D], pv[:, D:]
            kn, fn = nv[:, :D], nv[:, D:]
            xc_acc = xc_acc + x_prev[i] * jnp.sum(q * kp, -1, keepdims=True) \
                            + x_next[i] * jnp.sum(q * kn, -1, keepdims=True)
            # TODO(synk): nn.Dropout(p) treated as identity (eval-mode forward).
            new_prev.append(_l2_normalize(fp))
            new_next.append(_l2_normalize(fn))
        xc = _l2_normalize(xc_acc)
        xc = mm(xc, wfc[l]) + bfc[l:l + 1, :]
        x_cent_new = _l2_normalize(xc + x_cent)
        x_prev, x_cent, x_next = new_prev, x_cent_new, new_next

    # ----- final layer -----
    qc = mm(x_cent, wqc_f[...]) + bqc_f[...]
    q, kc = qc[:, :D], qc[:, D:]

    attn_cols = []
    for i in range(W):
        kp = mm(x_prev[i], wkp_f[i]) + bkp_f[i:i + 1, :]
        attn_cols.append(jnp.sum(q * kp, -1, keepdims=True))
    attn_cols.append(jnp.sum(q * kc, -1, keepdims=True))
    for i in range(W):
        kn = mm(x_next[i], wkn_f[i]) + bkn_f[i:i + 1, :]
        attn_cols.append(jnp.sum(q * kn, -1, keepdims=True))

    # softmax over the 2W+1 (TB, 1) columns without a width-(2W+1) concat.
    m = attn_cols[0]
    for c in attn_cols[1:]:
        m = jnp.maximum(m, c)
    exps = [jnp.exp(c - m) for c in attn_cols]
    denom = exps[0]
    for e in exps[1:]:
        denom = denom + e
    # EUP approximate reciprocal: its common scale error cancels in the final
    # L2 normalize, so exact semantics are preserved.
    inv = pl.reciprocal(denom, approx=True)

    out = x_cent * (exps[W] * inv)
    for i in range(W):
        out = out + x_prev[i] * (exps[i] * inv) + x_next[i] * (exps[W + 1 + i] * inv)
    o_ref[...] = _l2_normalize(out).astype(o_ref.dtype)


# ------------------------------ host wrappers -------------------------------

def _full_spec(arr, single_buffer):
    nd = arr.ndim
    index_map = lambda i, nd=nd: (0,) * nd
    if single_buffer:
        # Grid-invariant input: one VMEM buffer is enough (no re-DMA per step).
        return pl.BlockSpec(arr.shape, index_map, pipeline_mode=pl.Buffered(1))
    return pl.BlockSpec(arr.shape, index_map)


def _fuse_params(layer_params, final_params, matmul_dtype):
    """Concatenate same-input linears along the output axis, stack layers, and
    pre-cast the matmul (MXU) operands to `matmul_dtype`. Biases stay f32."""
    wcent = jnp.stack([jnp.concatenate([p["wq"], p["wkc"]], axis=1)
                       for p in layer_params])                           # (L, D, 2D)
    bcent = jnp.stack([jnp.concatenate([p["bq"][0], p["bkc"][0]], axis=0)
                       for p in layer_params])                           # (L, 2D)
    wpw = jnp.concatenate([jnp.concatenate([p["wkp"], p["wfp"]], axis=2)
                           for p in layer_params], axis=0)               # (L*W, D, 2D)
    bpw = jnp.concatenate([jnp.concatenate([p["bkp"], p["bfp"]], axis=1)
                           for p in layer_params], axis=0)               # (L*W, 2D)
    wnw = jnp.concatenate([jnp.concatenate([p["wkn"], p["wfn"]], axis=2)
                           for p in layer_params], axis=0)               # (L*W, D, 2D)
    bnw = jnp.concatenate([jnp.concatenate([p["bkn"], p["bfn"]], axis=1)
                           for p in layer_params], axis=0)               # (L*W, 2D)
    wfc = jnp.stack([p["wfc"] for p in layer_params])                    # (L, D, D)
    bfc = jnp.stack([p["bfc"][0] for p in layer_params])                 # (L, D)

    wqc_f = jnp.concatenate([final_params["wq"], final_params["wkc"]], axis=1)  # (D, 2D)
    bqc_f = jnp.concatenate([final_params["bq"], final_params["bkc"]], axis=1)  # (1, 2D)
    wkp_f, bkp_f = final_params["wkp"], final_params["bkp"]              # (W, D, D), (W, D)
    wkn_f, bkn_f = final_params["wkn"], final_params["bkn"]

    md = matmul_dtype
    return (wcent.astype(md), bcent, wpw.astype(md), bpw, wnw.astype(md), bnw,
            wfc.astype(md), bfc,
            wqc_f.astype(md), bqc_f, wkp_f.astype(md), bkp_f,
            wkn_f.astype(md), bkn_f)


def _pick_batch_tile(B):
    # Fill the 256-row MXU M dim (v6e/v7x) and amortize the ~0.35 us grid-step
    # overhead, while keeping >= 2 grid steps whenever B allows so the
    # "parallel" axis can shard onto both v7x TensorCores. f32 min sublane
    # tile is 8 rows; tb must divide B.
    if B <= 8:
        return B
    desired = max(8, min(256, (B // 2) // 8 * 8))
    tb = desired
    while tb >= 8:
        if B % tb == 0:
            return tb
        tb -= 8
    return B


def positional_transformer_forward(x, layer_params, final_params, *, tb=None,
                                   matmul_dtype=jnp.bfloat16):
    B, S = x.shape
    D = final_params["wq"].shape[0]
    W = final_params["wkp"].shape[0]
    L = len(layer_params)
    if tb is None:
        tb = _pick_batch_tile(B)
    assert B % tb == 0, (B, tb)

    fused = _fuse_params(layer_params, final_params, matmul_dtype)

    # Advisory cost estimate so XLA can schedule around the custom call.
    flops_per_row = (L * (6 + 8 * W) + (4 + 4 * W)) * D * D
    transc_per_row = L * (2 * W + 2) + (2 * W + 3)
    w_bytes = sum(int(p.size) * p.dtype.itemsize for p in fused)
    cost = pl.CostEstimate(
        flops=int(B * flops_per_row),
        transcendentals=int(B * transc_per_row),
        bytes_accessed=int(x.size * x.dtype.itemsize + B * D * 4 + w_bytes))

    # Raise scoped VMEM only when large tiles actually need it (v5e default
    # scoped limit is 16 MiB; v6e/v7x default 32 MiB).
    blk_bytes = tb * S * x.dtype.itemsize + tb * D * 4
    vmem_est = 2 * blk_bytes + 2 * w_bytes + (2 << 20)
    compiler_params = pltpu.CompilerParams(
        dimension_semantics=("parallel",),
        vmem_limit_bytes=int(vmem_est) if vmem_est > (24 << 20) else None)

    out_shape = jax.ShapeDtypeStruct((B, D), x.dtype)

    def run(single_buffer_weights):
        in_specs = [pl.BlockSpec((tb, S), lambda i: (i, 0))] \
                   + [_full_spec(p, single_buffer_weights) for p in fused]
        return pl.pallas_call(
            fused_pt_kernel,
            out_shape=out_shape,
            grid=(B // tb,),
            in_specs=in_specs,
            out_specs=pl.BlockSpec((tb, D), lambda i: (i, 0)),
            compiler_params=compiler_params,
            cost_estimate=cost,
        )(x, *fused)

    try:
        return run(True)    # single-buffer the grid-invariant weights
    except Exception:
        # TODO(synk): fall back if this jax build's TPU lowering rejects
        # pipeline_mode=pl.Buffered(1) on grid-invariant inputs.
        return run(False)


# --------------------------- deterministic params ---------------------------

def _init_linear(key, d):
    kw, kb = jax.random.split(key)
    w = jax.random.normal(kw, (d, d), jnp.float32) / jnp.sqrt(float(d))
    b = jax.random.normal(kb, (1, d), jnp.float32) * 0.01
    return w, b


def _init_linear_stack(key, d, n):
    ws, bs = [], []
    for k in jax.random.split(key, n):
        w, b = _init_linear(k, d)
        ws.append(w)
        bs.append(b[0])
    return jnp.stack(ws, 0), jnp.stack(bs, 0)   # (n, d, d), (n, d)


def init_pt_layer_params(key, d, w):
    ks = jax.random.split(key, 7)
    p = {}
    p["wq"], p["bq"] = _init_linear(ks[0], d)
    p["wkc"], p["bkc"] = _init_linear(ks[1], d)
    p["wfc"], p["bfc"] = _init_linear(ks[2], d)
    p["wkp"], p["bkp"] = _init_linear_stack(ks[3], d, w)
    p["wkn"], p["bkn"] = _init_linear_stack(ks[4], d, w)
    p["wfp"], p["bfp"] = _init_linear_stack(ks[5], d, w)
    p["wfn"], p["bfn"] = _init_linear_stack(ks[6], d, w)
    return p


def init_pt_final_params(key, d, w):
    ks = jax.random.split(key, 4)
    p = {}
    p["wq"], p["bq"] = _init_linear(ks[0], d)
    p["wkc"], p["bkc"] = _init_linear(ks[1], d)
    p["wkp"], p["bkp"] = _init_linear_stack(ks[2], d, w)
    p["wkn"], p["bkn"] = _init_linear_stack(ks[3], d, w)
    return p


# ------------------------------ pure-JAX reference ---------------------------

def _ref_norm(x):
    n = jnp.sqrt(jnp.sum(x * x, axis=-1, keepdims=True))
    return x / jnp.maximum(n, EPS)


def _ref_lin(x, w, b, md):
    y = jnp.dot(x.astype(md), w.astype(md), preferred_element_type=jnp.float32)
    return y + jnp.reshape(b, (1, -1))


def _ref_layer(x, p, md):
    D = p["wq"].shape[0]
    W = p["wkp"].shape[0]
    xs = [x[:, i * D:(i + 1) * D] for i in range(2 * W + 1)]
    x_prev, x_cent, x_next = xs[:W], xs[W], xs[W + 1:]
    q = _ref_lin(x_cent, p["wq"], p["bq"], md)
    xc = x_cent * jnp.sum(q * _ref_lin(x_cent, p["wkc"], p["bkc"], md), -1, keepdims=True)
    op, on = [], []
    for i in range(W):
        ap = jnp.sum(q * _ref_lin(x_prev[i], p["wkp"][i], p["bkp"][i], md), -1, keepdims=True)
        an = jnp.sum(q * _ref_lin(x_next[i], p["wkn"][i], p["bkn"][i], md), -1, keepdims=True)
        xc = xc + x_prev[i] * ap + x_next[i] * an
        op.append(_ref_norm(_ref_lin(x_prev[i], p["wfp"][i], p["bfp"][i], md)))
        on.append(_ref_norm(_ref_lin(x_next[i], p["wfn"][i], p["bfn"][i], md)))
    xc = _ref_norm(xc)
    xc = _ref_lin(xc, p["wfc"], p["bfc"], md)
    xc = _ref_norm(xc + x_cent)
    return jnp.concatenate(op + [xc] + on, axis=-1)


def _ref_final(x, p, md):
    D = p["wq"].shape[0]
    W = p["wkp"].shape[0]
    xs = [x[:, i * D:(i + 1) * D] for i in range(2 * W + 1)]
    x_prev, x_cent, x_next = xs[:W], xs[W], xs[W + 1:]
    q = _ref_lin(x_cent, p["wq"], p["bq"], md)
    cols = [jnp.sum(q * _ref_lin(x_prev[i], p["wkp"][i], p["bkp"][i], md), -1, keepdims=True)
            for i in range(W)]
    cols.append(jnp.sum(q * _ref_lin(x_cent, p["wkc"], p["bkc"], md), -1, keepdims=True))
    cols += [jnp.sum(q * _ref_lin(x_next[i], p["wkn"][i], p["bkn"][i], md), -1, keepdims=True)
             for i in range(W)]
    attn = jax.nn.softmax(jnp.concatenate(cols, -1), -1)
    out = x_cent * attn[:, W:W + 1]
    for i in range(W):
        out = out + x_prev[i] * attn[:, i:i + 1] + x_next[i] * attn[:, W + 1 + i:W + 2 + i]
    return _ref_norm(out)


def _ref_model(x, layer_params, final_params, matmul_dtype=jnp.float32):
    for p in layer_params:
        x = _ref_layer(x, p, matmul_dtype)
    return _ref_final(x, final_params, matmul_dtype)


# ----------------------------------- main ------------------------------------

if __name__ == "__main__":
    key = jax.random.PRNGKey(0)
    k_x, k_layers, k_final = jax.random.split(key, 3)

    x = jax.random.normal(k_x, (BATCH, (2 * WINDOW + 1) * D_MODEL), jnp.float32)

    layer_params = [init_pt_layer_params(k, D_MODEL, WINDOW)
                    for k in jax.random.split(k_layers, N_LAYERS)]
    final_params = init_pt_final_params(k_final, D_MODEL, WINDOW)

    # Main (performance) path: bf16 MXU operands, f32 accumulation/elementwise.
    out_bf16 = jax.block_until_ready(
        positional_transformer_forward(x, layer_params, final_params))
    assert out_bf16.shape == (BATCH, D_MODEL), out_bf16.shape

    # Exact-semantics check: f32 matmuls vs pure-JAX f32 reference.
    out_f32 = jax.block_until_ready(
        positional_transformer_forward(x, layer_params, final_params,
                                       matmul_dtype=jnp.float32))
    ref_f32 = jax.block_until_ready(_ref_model(x, layer_params, final_params))
    assert jnp.allclose(out_f32, ref_f32, rtol=2e-3, atol=2e-3), \
        float(jnp.max(jnp.abs(out_f32 - ref_f32)))

    # bf16 path vs a reference with matching bf16 matmul-operand casts.
    ref_bf16 = jax.block_until_ready(
        _ref_model(x, layer_params, final_params, matmul_dtype=jnp.bfloat16))
    assert jnp.allclose(out_bf16, ref_bf16, rtol=1e-2, atol=1e-2), \
        float(jnp.max(jnp.abs(out_bf16 - ref_bf16)))

    print("KERNEL_OK")
</pallas_src>

<mosaic_0001>
module attributes {stable_mosaic.version = 11 : i64} {
  func.func @fused_pt_kernel(%arg0: i32, %arg1: memref<8x384xf32, #tpu.memory_space<vmem>>, %arg2: memref<3x128x256xbf16, #tpu.memory_space<vmem>>, %arg3: memref<3x256xf32, #tpu.memory_space<vmem>>, %arg4: memref<3x128x256xbf16, #tpu.memory_space<vmem>>, %arg5: memref<3x256xf32, #tpu.memory_space<vmem>>, %arg6: memref<3x128x256xbf16, #tpu.memory_space<vmem>>, %arg7: memref<3x256xf32, #tpu.memory_space<vmem>>, %arg8: memref<3x128x128xbf16, #tpu.memory_space<vmem>>, %arg9: memref<3x128xf32, #tpu.memory_space<vmem>>, %arg10: memref<128x256xbf16, #tpu.memory_space<vmem>>, %arg11: memref<1x256xf32, #tpu.memory_space<vmem>>, %arg12: memref<1x128x128xbf16, #tpu.memory_space<vmem>>, %arg13: memref<1x128xf32, #tpu.memory_space<vmem>>, %arg14: memref<1x128x128xbf16, #tpu.memory_space<vmem>>, %arg15: memref<1x128xf32, #tpu.memory_space<vmem>>, %arg16: memref<8x128xf32, #tpu.memory_space<vmem>>) attributes {dimension_semantics = [#tpu.dimension_semantics<parallel>], iteration_bounds = array<i64: 1>, scalar_prefetch = 0 : i64, scratch_operands = 0 : i64, tpu.core_type = #tpu.core_type<tc>, window_params = [{transform_indices = @transform_0, window_bounds = array<i64: 8, 384>}, {pipeline_mode = #tpu.pipeline_mode<synchronous>, transform_indices = @transform_1, window_bounds = array<i64: 3, 128, 256>}, {pipeline_mode = #tpu.pipeline_mode<synchronous>, transform_indices = @transform_2, window_bounds = array<i64: 3, 256>}, {pipeline_mode = #tpu.pipeline_mode<synchronous>, transform_indices = @transform_3, window_bounds = array<i64: 3, 128, 256>}, {pipeline_mode = #tpu.pipeline_mode<synchronous>, transform_indices = @transform_4, window_bounds = array<i64: 3, 256>}, {pipeline_mode = #tpu.pipeline_mode<synchronous>, transform_indices = @transform_5, window_bounds = array<i64: 3, 128, 256>}, {pipeline_mode = #tpu.pipeline_mode<synchronous>, transform_indices = @transform_6, window_bounds = array<i64: 3, 256>}, {pipeline_mode = #tpu.pipeline_mode<synchronous>, transform_indices = @transform_7, window_bounds = array<i64: 3, 128, 128>}, {pipeline_mode = #tpu.pipeline_mode<synchronous>, transform_indices = @transform_8, window_bounds = array<i64: 3, 128>}, {pipeline_mode = #tpu.pipeline_mode<synchronous>, transform_indices = @transform_9, window_bounds = array<i64: 128, 256>}, {pipeline_mode = #tpu.pipeline_mode<synchronous>, transform_indices = @transform_10, window_bounds = array<i64: 1, 256>}, {pipeline_mode = #tpu.pipeline_mode<synchronous>, transform_indices = @transform_11, window_bounds = array<i64: 1, 128, 128>}, {pipeline_mode = #tpu.pipeline_mode<synchronous>, transform_indices = @transform_12, window_bounds = array<i64: 1, 128>}, {pipeline_mode = #tpu.pipeline_mode<synchronous>, transform_indices = @transform_13, window_bounds = array<i64: 1, 128, 128>}, {pipeline_mode = #tpu.pipeline_mode<synchronous>, transform_indices = @transform_14, window_bounds = array<i64: 1, 128>}, {transform_indices = @transform_15, window_bounds = array<i64: 8, 128>}]} {
    %c0 = arith.constant 0 : index
    %c0_0 = arith.constant 0 : index
    %0 = vector.load %arg1[%c0, %c0_0] : memref<8x384xf32, #tpu.memory_space<vmem>>, vector<8x384xf32>
    %1 = vector.extract_strided_slice %0 {offsets = [0, 0], sizes = [8, 128], strides = [1, 1]} : vector<8x384xf32> to vector<8x128xf32>
    %2 = vector.extract_strided_slice %0 {offsets = [0, 128], sizes = [8, 128], strides = [1, 1]} : vector<8x384xf32> to vector<8x128xf32>
    %3 = vector.extract_strided_slice %0 {offsets = [0, 256], sizes = [8, 128], strides = [1, 1]} : vector<8x384xf32> to vector<8x128xf32>
    %c0_1 = arith.constant 0 : index
    %c0_2 = arith.constant 0 : index
    %c0_3 = arith.constant 0 : index
    %4 = vector.load %arg2[%c0_1, %c0_2, %c0_3] : memref<3x128x256xbf16, #tpu.memory_space<vmem>>, vector<1x128x256xbf16>
    %5 = vector.shape_cast %4 : vector<1x128x256xbf16> to vector<128x256xbf16>
    %6 = arith.truncf %2 : vector<8x128xf32> to vector<8x128xbf16>
    %cst = arith.constant dense<0.000000e+00> : vector<8x256xf32>
    %7 = tpu.matmul %6, %5, %cst {dimension_numbers = #tpu.dot_dimension_numbers<[1], [0], [0], [1], [0, 0, 1, 1], [], []>} : vector<8x128xbf16>, vector<128x256xbf16>, vector<8x256xf32> -> vector<8x256xf32>
    %c0_4 = arith.constant 0 : index
    %c0_5 = arith.constant 0 : index
    %8 = vector.load %arg3[%c0_4, %c0_5] : memref<3x256xf32, #tpu.memory_space<vmem>>, vector<1x256xf32>
    %9 = vector.broadcast %8 : vector<1x256xf32> to vector<8x256xf32>
    %10 = arith.addf %7, %9 : vector<8x256xf32>
    %11 = vector.extract_strided_slice %10 {offsets = [0, 0], sizes = [8, 128], strides = [1, 1]} : vector<8x256xf32> to vector<8x128xf32>
    %12 = vector.extract_strided_slice %10 {offsets = [0, 128], sizes = [8, 128], strides = [1, 1]} : vector<8x256xf32> to vector<8x128xf32>
    %13 = arith.mulf %11, %12 : vector<8x128xf32>
    %cst_6 = arith.constant dense<0.000000e+00> : vector<8xf32>
    %14 = vector.multi_reduction <add>, %13, %cst_6 [1] : vector<8x128xf32> to vector<8xf32>
    %15 = vector.shape_cast %14 : vector<8xf32> to vector<8x1xf32>
    %16 = vector.broadcast %15 : vector<8x1xf32> to vector<8x128xf32>
    %17 = arith.mulf %2, %16 : vector<8x128xf32>
    %c0_7 = arith.constant 0 : index
    %c0_8 = arith.constant 0 : index
    %c0_9 = arith.constant 0 : index
    %18 = vector.load %arg4[%c0_7, %c0_8, %c0_9] : memref<3x128x256xbf16, #tpu.memory_space<vmem>>, vector<1x128x256xbf16>
    %19 = vector.shape_cast %18 : vector<1x128x256xbf16> to vector<128x256xbf16>
    %20 = arith.truncf %1 : vector<8x128xf32> to vector<8x128xbf16>
    %cst_10 = arith.constant dense<0.000000e+00> : vector<8x256xf32>
    %21 = tpu.matmul %20, %19, %cst_10 {dimension_numbers = #tpu.dot_dimension_numbers<[1], [0], [0], [1], [0, 0, 1, 1], [], []>} : vector<8x128xbf16>, vector<128x256xbf16>, vector<8x256xf32> -> vector<8x256xf32>
    %c0_11 = arith.constant 0 : index
    %c0_12 = arith.constant 0 : index
    %22 = vector.load %arg5[%c0_11, %c0_12] : memref<3x256xf32, #tpu.memory_space<vmem>>, vector<1x256xf32>
    %23 = vector.broadcast %22 : vector<1x256xf32> to vector<8x256xf32>
    %24 = arith.addf %21, %23 : vector<8x256xf32>
    %c0_13 = arith.constant 0 : index
    %c0_14 = arith.constant 0 : index
    %c0_15 = arith.constant 0 : index
    %25 = vector.load %arg6[%c0_13, %c0_14, %c0_15] : memref<3x128x256xbf16, #tpu.memory_space<vmem>>, vector<1x128x256xbf16>
    %26 = vector.shape_cast %25 : vector<1x128x256xbf16> to vector<128x256xbf16>
    %27 = arith.truncf %3 : vector<8x128xf32> to vector<8x128xbf16>
    %cst_16 = arith.constant dense<0.000000e+00> : vector<8x256xf32>
    %28 = tpu.matmul %27, %26, %cst_16 {dimension_numbers = #tpu.dot_dimension_numbers<[1], [0], [0], [1], [0, 0, 1, 1], [], []>} : vector<8x128xbf16>, vector<128x256xbf16>, vector<8x256xf32> -> vector<8x256xf32>
    %c0_17 = arith.constant 0 : index
    %c0_18 = arith.constant 0 : index
    %29 = vector.load %arg7[%c0_17, %c0_18] : memref<3x256xf32, #tpu.memory_space<vmem>>, vector<1x256xf32>
    %30 = vector.broadcast %29 : vector<1x256xf32> to vector<8x256xf32>
    %31 = arith.addf %28, %30 : vector<8x256xf32>
    %32 = vector.extract_strided_slice %24 {offsets = [0, 0], sizes = [8, 128], strides = [1, 1]} : vector<8x256xf32> to vector<8x128xf32>
    %33 = vector.extract_strided_slice %24 {offsets = [0, 128], sizes = [8, 128], strides = [1, 1]} : vector<8x256xf32> to vector<8x128xf32>
    %34 = vector.extract_strided_slice %31 {offsets = [0, 0], sizes = [8, 128], strides = [1, 1]} : vector<8x256xf32> to vector<8x128xf32>
    %35 = vector.extract_strided_slice %31 {offsets = [0, 128], sizes = [8, 128], strides = [1, 1]} : vector<8x256xf32> to vector<8x128xf32>
    %36 = arith.mulf %11, %32 : vector<8x128xf32>
    %cst_19 = arith.constant dense<0.000000e+00> : vector<8xf32>
    %37 = vector.multi_reduction <add>, %36, %cst_19 [1] : vector<8x128xf32> to vector<8xf32>
    %38 = vector.shape_cast %37 : vector<8xf32> to vector<8x1xf32>
    %39 = vector.broadcast %38 : vector<8x1xf32> to vector<8x128xf32>
    %40 = arith.mulf %1, %39 : vector<8x128xf32>
    %41 = arith.addf %17, %40 : vector<8x128xf32>
    %42 = arith.mulf %11, %34 : vector<8x128xf32>
    %cst_20 = arith.constant dense<0.000000e+00> : vector<8xf32>
    %43 = vector.multi_reduction <add>, %42, %cst_20 [1] : vector<8x128xf32> to vector<8xf32>
    %44 = vector.shape_cast %43 : vector<8xf32> to vector<8x1xf32>
    %45 = vector.broadcast %44 : vector<8x1xf32> to vector<8x128xf32>
    %46 = arith.mulf %3, %45 : vector<8x128xf32>
    %47 = arith.addf %41, %46 : vector<8x128xf32>
    %48 = arith.mulf %33, %33 : vector<8x128xf32>
    %cst_21 = arith.constant dense<0.000000e+00> : vector<8xf32>
    %49 = vector.multi_reduction <add>, %48, %cst_21 [1] : vector<8x128xf32> to vector<8xf32>
    %50 = vector.shape_cast %49 : vector<8xf32> to vector<8x1xf32>
    %cst_22 = arith.constant 1.000000e-24 : f32
    %51 = vector.broadcast %cst_22 : f32 to vector<8x1xf32>
    %52 = arith.maximumf %50, %51 : vector<8x1xf32>
    %53 = math.rsqrt %52 : vector<8x1xf32>
    %54 = vector.broadcast %53 : vector<8x1xf32> to vector<8x128xf32>
    %55 = arith.mulf %33, %54 : vector<8x128xf32>
    %56 = arith.mulf %35, %35 : vector<8x128xf32>
    %cst_23 = arith.constant dense<0.000000e+00> : vector<8xf32>
    %57 = vector.multi_reduction <add>, %56, %cst_23 [1] : vector<8x128xf32> to vector<8xf32>
    %58 = vector.shape_cast %57 : vector<8xf32> to vector<8x1xf32>
    %cst_24 = arith.constant 1.000000e-24 : f32
    %59 = vector.broadcast %cst_24 : f32 to vector<8x1xf32>
    %60 = arith.maximumf %58, %59 : vector<8x1xf32>
    %61 = math.rsqrt %60 : vector<8x1xf32>
    %62 = vector.broadcast %61 : vector<8x1xf32> to vector<8x128xf32>
    %63 = arith.mulf %35, %62 : vector<8x128xf32>
    %64 = arith.mulf %47, %47 : vector<8x128xf32>
    %cst_25 = arith.constant dense<0.000000e+00> : vector<8xf32>
    %65 = vector.multi_reduction <add>, %64, %cst_25 [1] : vector<8x128xf32> to vector<8xf32>
    %66 = vector.shape_cast %65 : vector<8xf32> to vector<8x1xf32>
    %cst_26 = arith.constant 1.000000e-24 : f32
    %67 = vector.broadcast %cst_26 : f32 to vector<8x1xf32>
    %68 = arith.maximumf %66, %67 : vector<8x1xf32>
    %69 = math.rsqrt %68 : vector<8x1xf32>
    %70 = vector.broadcast %69 : vector<8x1xf32> to vector<8x128xf32>
    %71 = arith.mulf %47, %70 : vector<8x128xf32>
    %c0_27 = arith.constant 0 : index
    %c0_28 = arith.constant 0 : index
    %c0_29 = arith.constant 0 : index
    %72 = vector.load %arg8[%c0_27, %c0_28, %c0_29] : memref<3x128x128xbf16, #tpu.memory_space<vmem>>, vector<1x128x128xbf16>
    %73 = vector.shape_cast %72 : vector<1x128x128xbf16> to vector<128x128xbf16>
    %74 = arith.truncf %71 : vector<8x128xf32> to vector<8x128xbf16>
    %cst_30 = arith.constant dense<0.000000e+00> : vector<8x128xf32>
    %75 = tpu.matmul %74, %73, %cst_30 {dimension_numbers = #tpu.dot_dimension_numbers<[1], [0], [0], [1], [0, 0, 1, 1], [], []>} : vector<8x128xbf16>, vector<128x128xbf16>, vector<8x128xf32> -> vector<8x128xf32>
    %c0_31 = arith.constant 0 : index
    %c0_32 = arith.constant 0 : index
    %76 = vector.load %arg9[%c0_31, %c0_32] : memref<3x128xf32, #tpu.memory_space<vmem>>, vector<1x128xf32>
    %77 = vector.broadcast %76 : vector<1x128xf32> to vector<8x128xf32>
    %78 = arith.addf %75, %77 : vector<8x128xf32>
    %79 = arith.addf %78, %2 : vector<8x128xf32>
    %80 = arith.mulf %79, %79 : vector<8x128xf32>
    %cst_33 = arith.constant dense<0.000000e+00> : vector<8xf32>
    %81 = vector.multi_reduction <add>, %80, %cst_33 [1] : vector<8x128xf32> to vector<8xf32>
    %82 = vector.shape_cast %81 : vector<8xf32> to vector<8x1xf32>
    %cst_34 = arith.constant 1.000000e-24 : f32
    %83 = vector.broadcast %cst_34 : f32 to vector<8x1xf32>
    %84 = arith.maximumf %82, %83 : vector<8x1xf32>
    %85 = math.rsqrt %84 : vector<8x1xf32>
    %86 = vector.broadcast %85 : vector<8x1xf32> to vector<8x128xf32>
    %87 = arith.mulf %79, %86 : vector<8x128xf32>
    %c1 = arith.constant 1 : index
    %c0_35 = arith.constant 0 : index
    %c0_36 = arith.constant 0 : index
    %88 = vector.load %arg2[%c1, %c0_35, %c0_36] : memref<3x128x256xbf16, #tpu.memory_space<vmem>>, vector<1x128x256xbf16>
    %89 = vector.shape_cast %88 : vector<1x128x256xbf16> to vector<128x256xbf16>
    %90 = arith.truncf %87 : vector<8x128xf32> to vector<8x128xbf16>
    %cst_37 = arith.constant dense<0.000000e+00> : vector<8x256xf32>
    %91 = tpu.matmul %90, %89, %cst_37 {dimension_numbers = #tpu.dot_dimension_numbers<[1], [0], [0], [1], [0, 0, 1, 1], [], []>} : vector<8x128xbf16>, vector<128x256xbf16>, vector<8x256xf32> -> vector<8x256xf32>
    %c1_38 = arith.constant 1 : index
    %c0_39 = arith.constant 0 : index
    %92 = vector.load %arg3[%c1_38, %c0_39] : memref<3x256xf32, #tpu.memory_space<vmem>>, vector<1x256xf32>
    %93 = vector.broadcast %92 : vector<1x256xf32> to vector<8x256xf32>
    %94 = arith.addf %91, %93 : vector<8x256xf32>
    %95 = vector.extract_strided_slice %94 {offsets = [0, 0], sizes = [8, 128], strides = [1, 1]} : vector<8x256xf32> to vector<8x128xf32>
    %96 = vector.extract_strided_slice %94 {offsets = [0, 128], sizes = [8, 128], strides = [1, 1]} : vector<8x256xf32> to vector<8x128xf32>
    %97 = arith.mulf %95, %96 : vector<8x128xf32>
    %cst_40 = arith.constant dense<0.000000e+00> : vector<8xf32>
    %98 = vector.multi_reduction <add>, %97, %cst_40 [1] : vector<8x128xf32> to vector<8xf32>
    %99 = vector.shape_cast %98 : vector<8xf32> to vector<8x1xf32>
    %100 = vector.broadcast %99 : vector<8x1xf32> to vector<8x128xf32>
    %101 = arith.mulf %87, %100 : vector<8x128xf32>
    %c1_41 = arith.constant 1 : index
    %c0_42 = arith.constant 0 : index
    %c0_43 = arith.constant 0 : index
    %102 = vector.load %arg4[%c1_41, %c0_42, %c0_43] : memref<3x128x256xbf16, #tpu.memory_space<vmem>>, vector<1x128x256xbf16>
    %103 = vector.shape_cast %102 : vector<1x128x256xbf16> to vector<128x256xbf16>
    %104 = arith.truncf %55 : vector<8x128xf32> to vector<8x128xbf16>
    %cst_44 = arith.constant dense<0.000000e+00> : vector<8x256xf32>
    %105 = tpu.matmul %104, %103, %cst_44 {dimension_numbers = #tpu.dot_dimension_numbers<[1], [0], [0], [1], [0, 0, 1, 1], [], []>} : vector<8x128xbf16>, vector<128x256xbf16>, vector<8x256xf32> -> vector<8x256xf32>
    %c1_45 = arith.constant 1 : index
    %c0_46 = arith.constant 0 : index
    %106 = vector.load %arg5[%c1_45, %c0_46] : memref<3x256xf32, #tpu.memory_space<vmem>>, vector<1x256xf32>
    %107 = vector.broadcast %106 : vector<1x256xf32> to vector<8x256xf32>
    %108 = arith.addf %105, %107 : vector<8x256xf32>
    %c1_47 = arith.constant 1 : index
    %c0_48 = arith.constant 0 : index
    %c0_49 = arith.constant 0 : index
    %109 = vector.load %arg6[%c1_47, %c0_48, %c0_49] : memref<3x128x256xbf16, #tpu.memory_space<vmem>>, vector<1x128x256xbf16>
    %110 = vector.shape_cast %109 : vector<1x128x256xbf16> to vector<128x256xbf16>
    %111 = arith.truncf %63 : vector<8x128xf32> to vector<8x128xbf16>
    %cst_50 = arith.constant dense<0.000000e+00> : vector<8x256xf32>
    %112 = tpu.matmul %111, %110, %cst_50 {dimension_numbers = #tpu.dot_dimension_numbers<[1], [0], [0], [1], [0, 0, 1, 1], [], []>} : vector<8x128xbf16>, vector<128x256xbf16>, vector<8x256xf32> -> vector<8x256xf32>
    %c1_51 = arith.constant 1 : index
    %c0_52 = arith.constant 0 : index
    %113 = vector.load %arg7[%c1_51, %c0_52] : memref<3x256xf32, #tpu.memory_space<vmem>>, vector<1x256xf32>
    %114 = vector.broadcast %113 : vector<1x256xf32> to vector<8x256xf32>
    %115 = arith.addf %112, %114 : vector<8x256xf32>
    %116 = vector.extract_strided_slice %108 {offsets = [0, 0], sizes = [8, 128], strides = [1, 1]} : vector<8x256xf32> to vector<8x128xf32>
    %117 = vector.extract_strided_slice %108 {offsets = [0, 128], sizes = [8, 128], strides = [1, 1]} : vector<8x256xf32> to vector<8x128xf32>
    %118 = vector.extract_strided_slice %115 {offsets = [0, 0], sizes = [8, 128], strides = [1, 1]} : vector<8x256xf32> to vector<8x128xf32>
    %119 = vector.extract_strided_slice %115 {offsets = [0, 128], sizes = [8, 128], strides = [1, 1]} : vector<8x256xf32> to vector<8x128xf32>
    %120 = arith.mulf %95, %116 : vector<8x128xf32>
    %cst_53 = arith.constant dense<0.000000e+00> : vector<8xf32>
    %121 = vector.multi_reduction <add>, %120, %cst_53 [1] : vector<8x128xf32> to vector<8xf32>
    %122 = vector.shape_cast %121 : vector<8xf32> to vector<8x1xf32>
    %123 = vector.broadcast %122 : vector<8x1xf32> to vector<8x128xf32>
    %124 = arith.mulf %55, %123 : vector<8x128xf32>
    %125 = arith.addf %101, %124 : vector<8x128xf32>
    %126 = arith.mulf %95, %118 : vector<8x128xf32>
    %cst_54 = arith.constant dense<0.000000e+00> : vector<8xf32>
    %127 = vector.multi_reduction <add>, %126, %cst_54 [1] : vector<8x128xf32> to vector<8xf32>
    %128 = vector.shape_cast %127 : vector<8xf32> to vector<8x1xf32>
    %129 = vector.broadcast %128 : vector<8x1xf32> to vector<8x128xf32>
    %130 = arith.mulf %63, %129 : vector<8x128xf32>
    %131 = arith.addf %125, %130 : vector<8x128xf32>
    %132 = arith.mulf %117, %117 : vector<8x128xf32>
    %cst_55 = arith.constant dense<0.000000e+00> : vector<8xf32>
    %133 = vector.multi_reduction <add>, %132, %cst_55 [1] : vector<8x128xf32> to vector<8xf32>
    %134 = vector.shape_cast %133 : vector<8xf32> to vector<8x1xf32>
    %cst_56 = arith.constant 1.000000e-24 : f32
    %135 = vector.broadcast %cst_56 : f32 to vector<8x1xf32>
    %136 = arith.maximumf %134, %135 : vector<8x1xf32>
    %137 = math.rsqrt %136 : vector<8x1xf32>
    %138 = vector.broadcast %137 : vector<8x1xf32> to vector<8x128xf32>
    %139 = arith.mulf %117, %138 : vector<8x128xf32>
    %140 = arith.mulf %119, %119 : vector<8x128xf32>
    %cst_57 = arith.constant dense<0.000000e+00> : vector<8xf32>
    %141 = vector.multi_reduction <add>, %140, %cst_57 [1] : vector<8x128xf32> to vector<8xf32>
    %142 = vector.shape_cast %141 : vector<8xf32> to vector<8x1xf32>
    %cst_58 = arith.constant 1.000000e-24 : f32
    %143 = vector.broadcast %cst_58 : f32 to vector<8x1xf32>
    %144 = arith.maximumf %142, %143 : vector<8x1xf32>
    %145 = math.rsqrt %144 : vector<8x1xf32>
    %146 = vector.broadcast %145 : vector<8x1xf32> to vector<8x128xf32>
    %147 = arith.mulf %119, %146 : vector<8x128xf32>
    %148 = arith.mulf %131, %131 : vector<8x128xf32>
    %cst_59 = arith.constant dense<0.000000e+00> : vector<8xf32>
    %149 = vector.multi_reduction <add>, %148, %cst_59 [1] : vector<8x128xf32> to vector<8xf32>
    %150 = vector.shape_cast %149 : vector<8xf32> to vector<8x1xf32>
    %cst_60 = arith.constant 1.000000e-24 : f32
    %151 = vector.broadcast %cst_60 : f32 to vector<8x1xf32>
    %152 = arith.maximumf %150, %151 : vector<8x1xf32>
    %153 = math.rsqrt %152 : vector<8x1xf32>
    %154 = vector.broadcast %153 : vector<8x1xf32> to vector<8x128xf32>
    %155 = arith.mulf %131, %154 : vector<8x128xf32>
    %c1_61 = arith.constant 1 : index
    %c0_62 = arith.constant 0 : index
    %c0_63 = arith.constant 0 : index
    %156 = vector.load %arg8[%c1_61, %c0_62, %c0_63] : memref<3x128x128xbf16, #tpu.memory_space<vmem>>, vector<1x128x128xbf16>
    %157 = vector.shape_cast %156 : vector<1x128x128xbf16> to vector<128x128xbf16>
    %158 = arith.truncf %155 : vector<8x128xf32> to vector<8x128xbf16>
    %cst_64 = arith.constant dense<0.000000e+00> : vector<8x128xf32>
    %159 = tpu.matmul %158, %157, %cst_64 {dimension_numbers = #tpu.dot_dimension_numbers<[1], [0], [0], [1], [0, 0, 1, 1], [], []>} : vector<8x128xbf16>, vector<128x128xbf16>, vector<8x128xf32> -> vector<8x128xf32>
    %c1_65 = arith.constant 1 : index
    %c0_66 = arith.constant 0 : index
    %160 = vector.load %arg9[%c1_65, %c0_66] : memref<3x128xf32, #tpu.memory_space<vmem>>, vector<1x128xf32>
    %161 = vector.broadcast %160 : vector<1x128xf32> to vector<8x128xf32>
    %162 = arith.addf %159, %161 : vector<8x128xf32>
    %163 = arith.addf %162, %87 : vector<8x128xf32>
    %164 = arith.mulf %163, %163 : vector<8x128xf32>
    %cst_67 = arith.constant dense<0.000000e+00> : vector<8xf32>
    %165 = vector.multi_reduction <add>, %164, %cst_67 [1] : vector<8x128xf32> to vector<8xf32>
    %166 = vector.shape_cast %165 : vector<8xf32> to vector<8x1xf32>
    %cst_68 = arith.constant 1.000000e-24 : f32
    %167 = vector.broadcast %cst_68 : f32 to vector<8x1xf32>
    %168 = arith.maximumf %166, %167 : vector<8x1xf32>
    %169 = math.rsqrt %168 : vector<8x1xf32>
    %170 = vector.broadcast %169 : vector<8x1xf32> to vector<8x128xf32>
    %171 = arith.mulf %163, %170 : vector<8x128xf32>
    %c2 = arith.constant 2 : index
    %c0_69 = arith.constant 0 : index
    %c0_70 = arith.constant 0 : index
    %172 = vector.load %arg2[%c2, %c0_69, %c0_70] : memref<3x128x256xbf16, #tpu.memory_space<vmem>>, vector<1x128x256xbf16>
    %173 = vector.shape_cast %172 : vector<1x128x256xbf16> to vector<128x256xbf16>
    %174 = arith.truncf %171 : vector<8x128xf32> to vector<8x128xbf16>
    %cst_71 = arith.constant dense<0.000000e+00> : vector<8x256xf32>
    %175 = tpu.matmul %174, %173, %cst_71 {dimension_numbers = #tpu.dot_dimension_numbers<[1], [0], [0], [1], [0, 0, 1, 1], [], []>} : vector<8x128xbf16>, vector<128x256xbf16>, vector<8x256xf32> -> vector<8x256xf32>
    %c2_72 = arith.constant 2 : index
    %c0_73 = arith.constant 0 : index
    %176 = vector.load %arg3[%c2_72, %c0_73] : memref<3x256xf32, #tpu.memory_space<vmem>>, vector<1x256xf32>
    %177 = vector.broadcast %176 : vector<1x256xf32> to vector<8x256xf32>
    %178 = arith.addf %175, %177 : vector<8x256xf32>
    %179 = vector.extract_strided_slice %178 {offsets = [0, 0], sizes = [8, 128], strides = [1, 1]} : vector<8x256xf32> to vector<8x128xf32>
    %180 = vector.extract_strided_slice %178 {offsets = [0, 128], sizes = [8, 128], strides = [1, 1]} : vector<8x256xf32> to vector<8x128xf32>
    %181 = arith.mulf %179, %180 : vector<8x128xf32>
    %cst_74 = arith.constant dense<0.000000e+00> : vector<8xf32>
    %182 = vector.multi_reduction <add>, %181, %cst_74 [1] : vector<8x128xf32> to vector<8xf32>
    %183 = vector.shape_cast %182 : vector<8xf32> to vector<8x1xf32>
    %184 = vector.broadcast %183 : vector<8x1xf32> to vector<8x128xf32>
    %185 = arith.mulf %171, %184 : vector<8x128xf32>
    %c2_75 = arith.constant 2 : index
    %c0_76 = arith.constant 0 : index
    %c0_77 = arith.constant 0 : index
    %186 = vector.load %arg4[%c2_75, %c0_76, %c0_77] : memref<3x128x256xbf16, #tpu.memory_space<vmem>>, vector<1x128x256xbf16>
    %187 = vector.shape_cast %186 : vector<1x128x256xbf16> to vector<128x256xbf16>
    %188 = arith.truncf %139 : vector<8x128xf32> to vector<8x128xbf16>
    %cst_78 = arith.constant dense<0.000000e+00> : vector<8x256xf32>
    %189 = tpu.matmul %188, %187, %cst_78 {dimension_numbers = #tpu.dot_dimension_numbers<[1], [0], [0], [1], [0, 0, 1, 1], [], []>} : vector<8x128xbf16>, vector<128x256xbf16>, vector<8x256xf32> -> vector<8x256xf32>
    %c2_79 = arith.constant 2 : index
    %c0_80 = arith.constant 0 : index
    %190 = vector.load %arg5[%c2_79, %c0_80] : memref<3x256xf32, #tpu.memory_space<vmem>>, vector<1x256xf32>
    %191 = vector.broadcast %190 : vector<1x256xf32> to vector<8x256xf32>
    %192 = arith.addf %189, %191 : vector<8x256xf32>
    %c2_81 = arith.constant 2 : index
    %c0_82 = arith.constant 0 : index
    %c0_83 = arith.constant 0 : index
    %193 = vector.load %arg6[%c2_81, %c0_82, %c0_83] : memref<3x128x256xbf16, #tpu.memory_space<vmem>>, vector<1x128x256xbf16>
    %194 = vector.shape_cast %193 : vector<1x128x256xbf16> to vector<128x256xbf16>
    %195 = arith.truncf %147 : vector<8x128xf32> to vector<8x128xbf16>
    %cst_84 = arith.constant dense<0.000000e+00> : vector<8x256xf32>
    %196 = tpu.matmul %195, %194, %cst_84 {dimension_numbers = #tpu.dot_dimension_numbers<[1], [0], [0], [1], [0, 0, 1, 1], [], []>} : vector<8x128xbf16>, vector<128x256xbf16>, vector<8x256xf32> -> vector<8x256xf32>
    %c2_85 = arith.constant 2 : index
    %c0_86 = arith.constant 0 : index
    %197 = vector.load %arg7[%c2_85, %c0_86] : memref<3x256xf32, #tpu.memory_space<vmem>>, vector<1x256xf32>
    %198 = vector.broadcast %197 : vector<1x256xf32> to vector<8x256xf32>
    %199 = arith.addf %196, %198 : vector<8x256xf32>
    %200 = vector.extract_strided_slice %192 {offsets = [0, 0], sizes = [8, 128], strides = [1, 1]} : vector<8x256xf32> to vector<8x128xf32>
    %201 = vector.extract_strided_slice %192 {offsets = [0, 128], sizes = [8, 128], strides = [1, 1]} : vector<8x256xf32> to vector<8x128xf32>
    %202 = vector.extract_strided_slice %199 {offsets = [0, 0], sizes = [8, 128], strides = [1, 1]} : vector<8x256xf32> to vector<8x128xf32>
    %203 = vector.extract_strided_slice %199 {offsets = [0, 128], sizes = [8, 128], strides = [1, 1]} : vector<8x256xf32> to vector<8x128xf32>
    %204 = arith.mulf %179, %200 : vector<8x128xf32>
    %cst_87 = arith.constant dense<0.000000e+00> : vector<8xf32>
    %205 = vector.multi_reduction <add>, %204, %cst_87 [1] : vector<8x128xf32> to vector<8xf32>
    %206 = vector.shape_cast %205 : vector<8xf32> to vector<8x1xf32>
    %207 = vector.broadcast %206 : vector<8x1xf32> to vector<8x128xf32>
    %208 = arith.mulf %139, %207 : vector<8x128xf32>
    %209 = arith.addf %185, %208 : vector<8x128xf32>
    %210 = arith.mulf %179, %202 : vector<8x128xf32>
    %cst_88 = arith.constant dense<0.000000e+00> : vector<8xf32>
    %211 = vector.multi_reduction <add>, %210, %cst_88 [1] : vector<8x128xf32> to vector<8xf32>
    %212 = vector.shape_cast %211 : vector<8xf32> to vector<8x1xf32>
    %213 = vector.broadcast %212 : vector<8x1xf32> to vector<8x128xf32>
    %214 = arith.mulf %147, %213 : vector<8x128xf32>
    %215 = arith.addf %209, %214 : vector<8x128xf32>
    %216 = arith.mulf %201, %201 : vector<8x128xf32>
    %cst_89 = arith.constant dense<0.000000e+00> : vector<8xf32>
    %217 = vector.multi_reduction <add>, %216, %cst_89 [1] : vector<8x128xf32> to vector<8xf32>
    %218 = vector.shape_cast %217 : vector<8xf32> to vector<8x1xf32>
    %cst_90 = arith.constant 1.000000e-24 : f32
    %219 = vector.broadcast %cst_90 : f32 to vector<8x1xf32>
    %220 = arith.maximumf %218, %219 : vector<8x1xf32>
    %221 = math.rsqrt %220 : vector<8x1xf32>
    %222 = vector.broadcast %221 : vector<8x1xf32> to vector<8x128xf32>
    %223 = arith.mulf %201, %222 : vector<8x128xf32>
    %224 = arith.mulf %203, %203 : vector<8x128xf32>
    %cst_91 = arith.constant dense<0.000000e+00> : vector<8xf32>
    %225 = vector.multi_reduction <add>, %224, %cst_91 [1] : vector<8x128xf32> to vector<8xf32>
    %226 = vector.shape_cast %225 : vector<8xf32> to vector<8x1xf32>
    %cst_92 = arith.constant 1.000000e-24 : f32
    %227 = vector.broadcast %cst_92 : f32 to vector<8x1xf32>
    %228 = arith.maximumf %226, %227 : vector<8x1xf32>
    %229 = math.rsqrt %228 : vector<8x1xf32>
    %230 = vector.broadcast %229 : vector<8x1xf32> to vector<8x128xf32>
    %231 = arith.mulf %203, %230 : vector<8x128xf32>
    %232 = arith.mulf %215, %215 : vector<8x128xf32>
    %cst_93 = arith.constant dense<0.000000e+00> : vector<8xf32>
    %233 = vector.multi_reduction <add>, %232, %cst_93 [1] : vector<8x128xf32> to vector<8xf32>
    %234 = vector.shape_cast %233 : vector<8xf32> to vector<8x1xf32>
    %cst_94 = arith.constant 1.000000e-24 : f32
    %235 = vector.broadcast %cst_94 : f32 to vector<8x1xf32>
    %236 = arith.maximumf %234, %235 : vector<8x1xf32>
    %237 = math.rsqrt %236 : vector<8x1xf32>
    %238 = vector.broadcast %237 : vector<8x1xf32> to vector<8x128xf32>
    %239 = arith.mulf %215, %238 : vector<8x128xf32>
    %c2_95 = arith.constant 2 : index
    %c0_96 = arith.constant 0 : index
    %c0_97 = arith.constant 0 : index
    %240 = vector.load %arg8[%c2_95, %c0_96, %c0_97] : memref<3x128x128xbf16, #tpu.memory_space<vmem>>, vector<1x128x128xbf16>
    %241 = vector.shape_cast %240 : vector<1x128x128xbf16> to vector<128x128xbf16>
    %242 = arith.truncf %239 : vector<8x128xf32> to vector<8x128xbf16>
    %cst_98 = arith.constant dense<0.000000e+00> : vector<8x128xf32>
    %243 = tpu.matmul %242, %241, %cst_98 {dimension_numbers = #tpu.dot_dimension_numbers<[1], [0], [0], [1], [0, 0, 1, 1], [], []>} : vector<8x128xbf16>, vector<128x128xbf16>, vector<8x128xf32> -> vector<8x128xf32>
    %c2_99 = arith.constant 2 : index
    %c0_100 = arith.constant 0 : index
    %244 = vector.load %arg9[%c2_99, %c0_100] : memref<3x128xf32, #tpu.memory_space<vmem>>, vector<1x128xf32>
    %245 = vector.broadcast %244 : vector<1x128xf32> to vector<8x128xf32>
    %246 = arith.addf %243, %245 : vector<8x128xf32>
    %247 = arith.addf %246, %171 : vector<8x128xf32>
    %248 = arith.mulf %247, %247 : vector<8x128xf32>
    %cst_101 = arith.constant dense<0.000000e+00> : vector<8xf32>
    %249 = vector.multi_reduction <add>, %248, %cst_101 [1] : vector<8x128xf32> to vector<8xf32>
    %250 = vector.shape_cast %249 : vector<8xf32> to vector<8x1xf32>
    %cst_102 = arith.constant 1.000000e-24 : f32
    %251 = vector.broadcast %cst_102 : f32 to vector<8x1xf32>
    %252 = arith.maximumf %250, %251 : vector<8x1xf32>
    %253 = math.rsqrt %252 : vector<8x1xf32>
    %254 = vector.broadcast %253 : vector<8x1xf32> to vector<8x128xf32>
    %255 = arith.mulf %247, %254 : vector<8x128xf32>
    %c0_103 = arith.constant 0 : index
    %c0_104 = arith.constant 0 : index
    %256 = vector.load %arg10[%c0_103, %c0_104] : memref<128x256xbf16, #tpu.memory_space<vmem>>, vector<128x256xbf16>
    %257 = arith.truncf %255 : vector<8x128xf32> to vector<8x128xbf16>
    %cst_105 = arith.constant dense<0.000000e+00> : vector<8x256xf32>
    %258 = tpu.matmul %257, %256, %cst_105 {dimension_numbers = #tpu.dot_dimension_numbers<[1], [0], [0], [1], [0, 0, 1, 1], [], []>} : vector<8x128xbf16>, vector<128x256xbf16>, vector<8x256xf32> -> vector<8x256xf32>
    %c0_106 = arith.constant 0 : index
    %c0_107 = arith.constant 0 : index
    %259 = vector.load %arg11[%c0_106, %c0_107] : memref<1x256xf32, #tpu.memory_space<vmem>>, vector<1x256xf32>
    %260 = vector.broadcast %259 : vector<1x256xf32> to vector<8x256xf32>
    %261 = arith.addf %258, %260 : vector<8x256xf32>
    %262 = vector.extract_strided_slice %261 {offsets = [0, 0], sizes = [8, 128], strides = [1, 1]} : vector<8x256xf32> to vector<8x128xf32>
    %263 = vector.extract_strided_slice %261 {offsets = [0, 128], sizes = [8, 128], strides = [1, 1]} : vector<8x256xf32> to vector<8x128xf32>
    %c0_108 = arith.constant 0 : index
    %c0_109 = arith.constant 0 : index
    %c0_110 = arith.constant 0 : index
    %264 = vector.load %arg12[%c0_108, %c0_109, %c0_110] : memref<1x128x128xbf16, #tpu.memory_space<vmem>>, vector<1x128x128xbf16>
    %265 = vector.shape_cast %264 : vector<1x128x128xbf16> to vector<128x128xbf16>
    %266 = arith.truncf %223 : vector<8x128xf32> to vector<8x128xbf16>
    %cst_111 = arith.constant dense<0.000000e+00> : vector<8x128xf32>
    %267 = tpu.matmul %266, %265, %cst_111 {dimension_numbers = #tpu.dot_dimension_numbers<[1], [0], [0], [1], [0, 0, 1, 1], [], []>} : vector<8x128xbf16>, vector<128x128xbf16>, vector<8x128xf32> -> vector<8x128xf32>
    %c0_112 = arith.constant 0 : index
    %c0_113 = arith.constant 0 : index
    %268 = vector.load %arg13[%c0_112, %c0_113] : memref<1x128xf32, #tpu.memory_space<vmem>>, vector<1x128xf32>
    %269 = vector.broadcast %268 : vector<1x128xf32> to vector<8x128xf32>
    %270 = arith.addf %267, %269 : vector<8x128xf32>
    %271 = arith.mulf %262, %270 : vector<8x128xf32>
    %cst_114 = arith.constant dense<0.000000e+00> : vector<8xf32>
    %272 = vector.multi_reduction <add>, %271, %cst_114 [1] : vector<8x128xf32> to vector<8xf32>
    %273 = vector.shape_cast %272 : vector<8xf32> to vector<8x1xf32>
    %274 = arith.mulf %262, %263 : vector<8x128xf32>
    %cst_115 = arith.constant dense<0.000000e+00> : vector<8xf32>
    %275 = vector.multi_reduction <add>, %274, %cst_115 [1] : vector<8x128xf32> to vector<8xf32>
    %276 = vector.shape_cast %275 : vector<8xf32> to vector<8x1xf32>
    %c0_116 = arith.constant 0 : index
    %c0_117 = arith.constant 0 : index
    %c0_118 = arith.constant 0 : index
    %277 = vector.load %arg14[%c0_116, %c0_117, %c0_118] : memref<1x128x128xbf16, #tpu.memory_space<vmem>>, vector<1x128x128xbf16>
    %278 = vector.shape_cast %277 : vector<1x128x128xbf16> to vector<128x128xbf16>
    %279 = arith.truncf %231 : vector<8x128xf32> to vector<8x128xbf16>
    %cst_119 = arith.constant dense<0.000000e+00> : vector<8x128xf32>
    %280 = tpu.matmul %279, %278, %cst_119 {dimension_numbers = #tpu.dot_dimension_numbers<[1], [0], [0], [1], [0, 0, 1, 1], [], []>} : vector<8x128xbf16>, vector<128x128xbf16>, vector<8x128xf32> -> vector<8x128xf32>
    %c0_120 = arith.constant 0 : index
    %c0_121 = arith.constant 0 : index
    %281 = vector.load %arg15[%c0_120, %c0_121] : memref<1x128xf32, #tpu.memory_space<vmem>>, vector<1x128xf32>
    %282 = vector.broadcast %281 : vector<1x128xf32> to vector<8x128xf32>
    %283 = arith.addf %280, %282 : vector<8x128xf32>
    %284 = arith.mulf %262, %283 : vector<8x128xf32>
    %cst_122 = arith.constant dense<0.000000e+00> : vector<8xf32>
    %285 = vector.multi_reduction <add>, %284, %cst_122 [1] : vector<8x128xf32> to vector<8xf32>
    %286 = vector.shape_cast %285 : vector<8xf32> to vector<8x1xf32>
    %287 = arith.maximumf %273, %276 : vector<8x1xf32>
    %288 = arith.maximumf %287, %286 : vector<8x1xf32>
    %289 = arith.subf %273, %288 : vector<8x1xf32>
    %290 = math.exp %289 : vector<8x1xf32>
    %291 = arith.subf %276, %288 : vector<8x1xf32>
    %292 = math.exp %291 : vector<8x1xf32>
    %293 = arith.subf %286, %288 : vector<8x1xf32>
    %294 = math.exp %293 : vector<8x1xf32>
    %295 = arith.addf %290, %292 : vector<8x1xf32>
    %296 = arith.addf %295, %294 : vector<8x1xf32>
    %297 = tpu.reciprocal %296 {approx = true} : vector<8x1xf32> -> vector<8x1xf32>
    %298 = arith.mulf %292, %297 : vector<8x1xf32>
    %299 = vector.broadcast %298 : vector<8x1xf32> to vector<8x128xf32>
    %300 = arith.mulf %255, %299 : vector<8x128xf32>
    %301 = arith.mulf %290, %297 : vector<8x1xf32>
    %302 = vector.broadcast %301 : vector<8x1xf32> to vector<8x128xf32>
    %303 = arith.mulf %223, %302 : vector<8x128xf32>
    %304 = arith.addf %300, %303 : vector<8x128xf32>
    %305 = arith.mulf %294, %297 : vector<8x1xf32>
    %306 = vector.broadcast %305 : vector<8x1xf32> to vector<8x128xf32>
    %307 = arith.mulf %231, %306 : vector<8x128xf32>
    %308 = arith.addf %304, %307 : vector<8x128xf32>
    %309 = arith.mulf %308, %308 : vector<8x128xf32>
    %cst_123 = arith.constant dense<0.000000e+00> : vector<8xf32>
    %310 = vector.multi_reduction <add>, %309, %cst_123 [1] : vector<8x128xf32> to vector<8xf32>
    %311 = vector.shape_cast %310 : vector<8xf32> to vector<8x1xf32>
    %cst_124 = arith.constant 1.000000e-24 : f32
    %312 = vector.broadcast %cst_124 : f32 to vector<8x1xf32>
    %313 = arith.maximumf %311, %312 : vector<8x1xf32>
    %314 = math.rsqrt %313 : vector<8x1xf32>
    %315 = vector.broadcast %314 : vector<8x1xf32> to vector<8x128xf32>
    %316 = arith.mulf %308, %315 : vector<8x128xf32>
    %c0_125 = arith.constant 0 : index
    %c0_126 = arith.constant 0 : index
    %317 = vector.load %arg16[%c0_125, %c0_126] : memref<8x128xf32, #tpu.memory_space<vmem>>, vector<8x128xf32>
    tpu.vector_store %arg16[%c0_125, %c0_126], %316 {strides = array<i32>} : memref<8x128xf32, #tpu.memory_space<vmem>>, vector<8x128xf32>,
    return
  }
  func.func @transform_0(%arg0: i32) -> (i32, i32) {
    %c0_i32 = arith.constant 0 : i32
    %c0_i32_0 = arith.constant 0 : i32
    return %arg0, %c0_i32 : i32, i32
  }
  func.func @transform_1(%arg0: i32) -> (i32, i32, i32) {
    %c0_i32 = arith.constant 0 : i32
    %c0_i32_0 = arith.constant 0 : i32
    %c0_i32_1 = arith.constant 0 : i32
    %c0_i32_2 = arith.constant 0 : i32
    return %c0_i32, %c0_i32_0, %c0_i32_1 : i32, i32, i32
  }
  func.func @transform_2(%arg0: i32) -> (i32, i32) {
    %c0_i32 = arith.constant 0 : i32
    %c0_i32_0 = arith.constant 0 : i32
    %c0_i32_1 = arith.constant 0 : i32
    return %c0_i32, %c0_i32_0 : i32, i32
  }
  func.func @transform_3(%arg0: i32) -> (i32, i32, i32) {
    %c0_i32 = arith.constant 0 : i32
    %c0_i32_0 = arith.constant 0 : i32
    %c0_i32_1 = arith.constant 0 : i32
    %c0_i32_2 = arith.constant 0 : i32
    return %c0_i32, %c0_i32_0, %c0_i32_1 : i32, i32, i32
  }
  func.func @transform_4(%arg0: i32) -> (i32, i32) {
    %c0_i32 = arith.constant 0 : i32
    %c0_i32_0 = arith.constant 0 : i32
    %c0_i32_1 = arith.constant 0 : i32
    return %c0_i32, %c0_i32_0 : i32, i32
  }
  func.func @transform_5(%arg0: i32) -> (i32, i32, i32) {
    %c0_i32 = arith.constant 0 : i32
    %c0_i32_0 = arith.constant 0 : i32
    %c0_i32_1 = arith.constant 0 : i32
    %c0_i32_2 = arith.constant 0 : i32
    return %c0_i32, %c0_i32_0, %c0_i32_1 : i32, i32, i32
  }
  func.func @transform_6(%arg0: i32) -> (i32, i32) {
    %c0_i32 = arith.constant 0 : i32
    %c0_i32_0 = arith.constant 0 : i32
    %c0_i32_1 = arith.constant 0 : i32
    return %c0_i32, %c0_i32_0 : i32, i32
  }
  func.func @transform_7(%arg0: i32) -> (i32, i32, i32) {
    %c0_i32 = arith.constant 0 : i32
    %c0_i32_0 = arith.constant 0 : i32
    %c0_i32_1 = arith.constant 0 : i32
    %c0_i32_2 = arith.constant 0 : i32
    return %c0_i32, %c0_i32_0, %c0_i32_1 : i32, i32, i32
  }
  func.func @transform_8(%arg0: i32) -> (i32, i32) {
    %c0_i32 = arith.constant 0 : i32
    %c0_i32_0 = arith.constant 0 : i32
    %c0_i32_1 = arith.constant 0 : i32
    return %c0_i32, %c0_i32_0 : i32, i32
  }
  func.func @transform_9(%arg0: i32) -> (i32, i32) {
    %c0_i32 = arith.constant 0 : i32
    %c0_i32_0 = arith.constant 0 : i32
    %c0_i32_1 = arith.constant 0 : i32
    return %c0_i32, %c0_i32_0 : i32, i32
  }
  func.func @transform_10(%arg0: i32) -> (i32, i32) {
    %c0_i32 = arith.constant 0 : i32
    %c0_i32_0 = arith.constant 0 : i32
    %c0_i32_1 = arith.constant 0 : i32
    return %c0_i32, %c0_i32_0 : i32, i32
  }
  func.func @transform_11(%arg0: i32) -> (i32, i32, i32) {
    %c0_i32 = arith.constant 0 : i32
    %c0_i32_0 = arith.constant 0 : i32
    %c0_i32_1 = arith.constant 0 : i32
    %c0_i32_2 = arith.constant 0 : i32
    return %c0_i32, %c0_i32_0, %c0_i32_1 : i32, i32, i32
  }
  func.func @transform_12(%arg0: i32) -> (i32, i32) {
    %c0_i32 = arith.constant 0 : i32
    %c0_i32_0 = arith.constant 0 : i32
    %c0_i32_1 = arith.constant 0 : i32
    return %c0_i32, %c0_i32_0 : i32, i32
  }
  func.func @transform_13(%arg0: i32) -> (i32, i32, i32) {
    %c0_i32 = arith.constant 0 : i32
    %c0_i32_0 = arith.constant 0 : i32
    %c0_i32_1 = arith.constant 0 : i32
    %c0_i32_2 = arith.constant 0 : i32
    return %c0_i32, %c0_i32_0, %c0_i32_1 : i32, i32, i32
  }
  func.func @transform_14(%arg0: i32) -> (i32, i32) {
    %c0_i32 = arith.constant 0 : i32
    %c0_i32_0 = arith.constant 0 : i32
    %c0_i32_1 = arith.constant 0 : i32
    return %c0_i32, %c0_i32_0 : i32, i32
  }
  func.func @transform_15(%arg0: i32) -> (i32, i32) {
    %c0_i32 = arith.constant 0 : i32
    %c0_i32_0 = arith.constant 0 : i32
    return %arg0, %c0_i32 : i32, i32
  }
}

module attributes {stable_mosaic.version = 11 : i64} {
  func.func @fused_pt_kernel(%arg0: i32, %arg1: memref<8x384xf32, #tpu.memory_space<vmem>>, %arg2: memref<3x128x256xbf16, #tpu.memory_space<vmem>>, %arg3: memref<3x256xf32, #tpu.memory_space<vmem>>, %arg4: memref<3x128x256xbf16, #tpu.memory_space<vmem>>, %arg5: memref<3x256xf32, #tpu.memory_space<vmem>>, %arg6: memref<3x128x256xbf16, #tpu.memory_space<vmem>>, %arg7: memref<3x256xf32, #tpu.memory_space<vmem>>, %arg8: memref<3x128x128xbf16, #tpu.memory_space<vmem>>, %arg9: memref<3x128xf32, #tpu.memory_space<vmem>>, %arg10: memref<128x256xbf16, #tpu.memory_space<vmem>>, %arg11: memref<1x256xf32, #tpu.memory_space<vmem>>, %arg12: memref<1x128x128xbf16, #tpu.memory_space<vmem>>, %arg13: memref<1x128xf32, #tpu.memory_space<vmem>>, %arg14: memref<1x128x128xbf16, #tpu.memory_space<vmem>>, %arg15: memref<1x128xf32, #tpu.memory_space<vmem>>, %arg16: memref<8x128xf32, #tpu.memory_space<vmem>>) attributes {dimension_semantics = [#tpu.dimension_semantics<parallel>], iteration_bounds = array<i64: 1>, scalar_prefetch = 0 : i64, scratch_operands = 0 : i64, tpu.core_type = #tpu.core_type<tc>, window_params = [{transform_indices = @transform_0, window_bounds = array<i64: 8, 384>}, {pipeline_mode = #tpu.pipeline_mode<synchronous>, transform_indices = @transform_1, window_bounds = array<i64: 3, 128, 256>}, {pipeline_mode = #tpu.pipeline_mode<synchronous>, transform_indices = @transform_2, window_bounds = array<i64: 3, 256>}, {pipeline_mode = #tpu.pipeline_mode<synchronous>, transform_indices = @transform_3, window_bounds = array<i64: 3, 128, 256>}, {pipeline_mode = #tpu.pipeline_mode<synchronous>, transform_indices = @transform_4, window_bounds = array<i64: 3, 256>}, {pipeline_mode = #tpu.pipeline_mode<synchronous>, transform_indices = @transform_5, window_bounds = array<i64: 3, 128, 256>}, {pipeline_mode = #tpu.pipeline_mode<synchronous>, transform_indices = @transform_6, window_bounds = array<i64: 3, 256>}, {pipeline_mode = #tpu.pipeline_mode<synchronous>, transform_indices = @transform_7, window_bounds = array<i64: 3, 128, 128>}, {pipeline_mode = #tpu.pipeline_mode<synchronous>, transform_indices = @transform_8, window_bounds = array<i64: 3, 128>}, {pipeline_mode = #tpu.pipeline_mode<synchronous>, transform_indices = @transform_9, window_bounds = array<i64: 128, 256>}, {pipeline_mode = #tpu.pipeline_mode<synchronous>, transform_indices = @transform_10, window_bounds = array<i64: 1, 256>}, {pipeline_mode = #tpu.pipeline_mode<synchronous>, transform_indices = @transform_11, window_bounds = array<i64: 1, 128, 128>}, {pipeline_mode = #tpu.pipeline_mode<synchronous>, transform_indices = @transform_12, window_bounds = array<i64: 1, 128>}, {pipeline_mode = #tpu.pipeline_mode<synchronous>, transform_indices = @transform_13, window_bounds = array<i64: 1, 128, 128>}, {pipeline_mode = #tpu.pipeline_mode<synchronous>, transform_indices = @transform_14, window_bounds = array<i64: 1, 128>}, {transform_indices = @transform_15, window_bounds = array<i64: 8, 128>}]} {
    %c0 = arith.constant 0 : index
    %c0_0 = arith.constant 0 : index
    %0 = vector.load %arg1[%c0, %c0_0] : memref<8x384xf32, #tpu.memory_space<vmem>>, vector<8x384xf32>
    %1 = vector.extract_strided_slice %0 {offsets = [0, 0], sizes = [8, 128], strides = [1, 1]} : vector<8x384xf32> to vector<8x128xf32>
    %2 = vector.extract_strided_slice %0 {offsets = [0, 128], sizes = [8, 128], strides = [1, 1]} : vector<8x384xf32> to vector<8x128xf32>
    %3 = vector.extract_strided_slice %0 {offsets = [0, 256], sizes = [8, 128], strides = [1, 1]} : vector<8x384xf32> to vector<8x128xf32>
    %c0_1 = arith.constant 0 : index
    %c0_2 = arith.constant 0 : index
    %c0_3 = arith.constant 0 : index
    %4 = vector.load %arg2[%c0_1, %c0_2, %c0_3] : memref<3x128x256xbf16, #tpu.memory_space<vmem>>, vector<1x128x256xbf16>
    %5 = vector.shape_cast %4 : vector<1x128x256xbf16> to vector<128x256xbf16>
    %6 = arith.truncf %2 : vector<8x128xf32> to vector<8x128xbf16>
    %cst = arith.constant dense<0.000000e+00> : vector<8x256xf32>
    %7 = tpu.matmul %6, %5, %cst {dimension_numbers = #tpu.dot_dimension_numbers<[1], [0], [0], [1], [0, 0, 1, 1], [], []>} : vector<8x128xbf16>, vector<128x256xbf16>, vector<8x256xf32> -> vector<8x256xf32>
    %c0_4 = arith.constant 0 : index
    %c0_5 = arith.constant 0 : index
    %8 = vector.load %arg3[%c0_4, %c0_5] : memref<3x256xf32, #tpu.memory_space<vmem>>, vector<1x256xf32>
    %9 = vector.broadcast %8 : vector<1x256xf32> to vector<8x256xf32>
    %10 = arith.addf %7, %9 : vector<8x256xf32>
    %11 = vector.extract_strided_slice %10 {offsets = [0, 0], sizes = [8, 128], strides = [1, 1]} : vector<8x256xf32> to vector<8x128xf32>
    %12 = vector.extract_strided_slice %10 {offsets = [0, 128], sizes = [8, 128], strides = [1, 1]} : vector<8x256xf32> to vector<8x128xf32>
    %13 = arith.mulf %11, %12 : vector<8x128xf32>
    %cst_6 = arith.constant dense<0.000000e+00> : vector<8xf32>
    %14 = vector.multi_reduction <add>, %13, %cst_6 [1] : vector<8x128xf32> to vector<8xf32>
    %15 = vector.shape_cast %14 : vector<8xf32> to vector<8x1xf32>
    %16 = vector.broadcast %15 : vector<8x1xf32> to vector<8x128xf32>
    %17 = arith.mulf %2, %16 : vector<8x128xf32>
    %c0_7 = arith.constant 0 : index
    %c0_8 = arith.constant 0 : index
    %c0_9 = arith.constant 0 : index
    %18 = vector.load %arg4[%c0_7, %c0_8, %c0_9] : memref<3x128x256xbf16, #tpu.memory_space<vmem>>, vector<1x128x256xbf16>
    %19 = vector.shape_cast %18 : vector<1x128x256xbf16> to vector<128x256xbf16>
    %20 = arith.truncf %1 : vector<8x128xf32> to vector<8x128xbf16>
    %cst_10 = arith.constant dense<0.000000e+00> : vector<8x256xf32>
    %21 = tpu.matmul %20, %19, %cst_10 {dimension_numbers = #tpu.dot_dimension_numbers<[1], [0], [0], [1], [0, 0, 1, 1], [], []>} : vector<8x128xbf16>, vector<128x256xbf16>, vector<8x256xf32> -> vector<8x256xf32>
    %c0_11 = arith.constant 0 : index
    %c0_12 = arith.constant 0 : index
    %22 = vector.load %arg5[%c0_11, %c0_12] : memref<3x256xf32, #tpu.memory_space<vmem>>, vector<1x256xf32>
    %23 = vector.broadcast %22 : vector<1x256xf32> to vector<8x256xf32>
    %24 = arith.addf %21, %23 : vector<8x256xf32>
    %c0_13 = arith.constant 0 : index
    %c0_14 = arith.constant 0 : index
    %c0_15 = arith.constant 0 : index
    %25 = vector.load %arg6[%c0_13, %c0_14, %c0_15] : memref<3x128x256xbf16, #tpu.memory_space<vmem>>, vector<1x128x256xbf16>
    %26 = vector.shape_cast %25 : vector<1x128x256xbf16> to vector<128x256xbf16>
    %27 = arith.truncf %3 : vector<8x128xf32> to vector<8x128xbf16>
    %cst_16 = arith.constant dense<0.000000e+00> : vector<8x256xf32>
    %28 = tpu.matmul %27, %26, %cst_16 {dimension_numbers = #tpu.dot_dimension_numbers<[1], [0], [0], [1], [0, 0, 1, 1], [], []>} : vector<8x128xbf16>, vector<128x256xbf16>, vector<8x256xf32> -> vector<8x256xf32>
    %c0_17 = arith.constant 0 : index
    %c0_18 = arith.constant 0 : index
    %29 = vector.load %arg7[%c0_17, %c0_18] : memref<3x256xf32, #tpu.memory_space<vmem>>, vector<1x256xf32>
    %30 = vector.broadcast %29 : vector<1x256xf32> to vector<8x256xf32>
    %31 = arith.addf %28, %30 : vector<8x256xf32>
    %32 = vector.extract_strided_slice %24 {offsets = [0, 0], sizes = [8, 128], strides = [1, 1]} : vector<8x256xf32> to vector<8x128xf32>
    %33 = vector.extract_strided_slice %24 {offsets = [0, 128], sizes = [8, 128], strides = [1, 1]} : vector<8x256xf32> to vector<8x128xf32>
    %34 = vector.extract_strided_slice %31 {offsets = [0, 0], sizes = [8, 128], strides = [1, 1]} : vector<8x256xf32> to vector<8x128xf32>
    %35 = vector.extract_strided_slice %31 {offsets = [0, 128], sizes = [8, 128], strides = [1, 1]} : vector<8x256xf32> to vector<8x128xf32>
    %36 = arith.mulf %11, %32 : vector<8x128xf32>
    %cst_19 = arith.constant dense<0.000000e+00> : vector<8xf32>
    %37 = vector.multi_reduction <add>, %36, %cst_19 [1] : vector<8x128xf32> to vector<8xf32>
    %38 = vector.shape_cast %37 : vector<8xf32> to vector<8x1xf32>
    %39 = vector.broadcast %38 : vector<8x1xf32> to vector<8x128xf32>
    %40 = arith.mulf %1, %39 : vector<8x128xf32>
    %41 = arith.addf %17, %40 : vector<8x128xf32>
    %42 = arith.mulf %11, %34 : vector<8x128xf32>
    %cst_20 = arith.constant dense<0.000000e+00> : vector<8xf32>
    %43 = vector.multi_reduction <add>, %42, %cst_20 [1] : vector<8x128xf32> to vector<8xf32>
    %44 = vector.shape_cast %43 : vector<8xf32> to vector<8x1xf32>
    %45 = vector.broadcast %44 : vector<8x1xf32> to vector<8x128xf32>
    %46 = arith.mulf %3, %45 : vector<8x128xf32>
    %47 = arith.addf %41, %46 : vector<8x128xf32>
    %48 = arith.mulf %33, %33 : vector<8x128xf32>
    %cst_21 = arith.constant dense<0.000000e+00> : vector<8xf32>
    %49 = vector.multi_reduction <add>, %48, %cst_21 [1] : vector<8x128xf32> to vector<8xf32>
    %50 = vector.shape_cast %49 : vector<8xf32> to vector<8x1xf32>
    %cst_22 = arith.constant 1.000000e-24 : f32
    %51 = vector.broadcast %cst_22 : f32 to vector<8x1xf32>
    %52 = arith.maximumf %50, %51 : vector<8x1xf32>
    %53 = math.rsqrt %52 : vector<8x1xf32>
    %54 = vector.broadcast %53 : vector<8x1xf32> to vector<8x128xf32>
    %55 = arith.mulf %33, %54 : vector<8x128xf32>
    %56 = arith.mulf %35, %35 : vector<8x128xf32>
    %cst_23 = arith.constant dense<0.000000e+00> : vector<8xf32>
    %57 = vector.multi_reduction <add>, %56, %cst_23 [1] : vector<8x128xf32> to vector<8xf32>
    %58 = vector.shape_cast %57 : vector<8xf32> to vector<8x1xf32>
    %cst_24 = arith.constant 1.000000e-24 : f32
    %59 = vector.broadcast %cst_24 : f32 to vector<8x1xf32>
    %60 = arith.maximumf %58, %59 : vector<8x1xf32>
    %61 = math.rsqrt %60 : vector<8x1xf32>
    %62 = vector.broadcast %61 : vector<8x1xf32> to vector<8x128xf32>
    %63 = arith.mulf %35, %62 : vector<8x128xf32>
    %64 = arith.mulf %47, %47 : vector<8x128xf32>
    %cst_25 = arith.constant dense<0.000000e+00> : vector<8xf32>
    %65 = vector.multi_reduction <add>, %64, %cst_25 [1] : vector<8x128xf32> to vector<8xf32>
    %66 = vector.shape_cast %65 : vector<8xf32> to vector<8x1xf32>
    %cst_26 = arith.constant 1.000000e-24 : f32
    %67 = vector.broadcast %cst_26 : f32 to vector<8x1xf32>
    %68 = arith.maximumf %66, %67 : vector<8x1xf32>
    %69 = math.rsqrt %68 : vector<8x1xf32>
    %70 = vector.broadcast %69 : vector<8x1xf32> to vector<8x128xf32>
    %71 = arith.mulf %47, %70 : vector<8x128xf32>
    %c0_27 = arith.constant 0 : index
    %c0_28 = arith.constant 0 : index
    %c0_29 = arith.constant 0 : index
    %72 = vector.load %arg8[%c0_27, %c0_28, %c0_29] : memref<3x128x128xbf16, #tpu.memory_space<vmem>>, vector<1x128x128xbf16>
    %73 = vector.shape_cast %72 : vector<1x128x128xbf16> to vector<128x128xbf16>
    %74 = arith.truncf %71 : vector<8x128xf32> to vector<8x128xbf16>
    %cst_30 = arith.constant dense<0.000000e+00> : vector<8x128xf32>
    %75 = tpu.matmul %74, %73, %cst_30 {dimension_numbers = #tpu.dot_dimension_numbers<[1], [0], [0], [1], [0, 0, 1, 1], [], []>} : vector<8x128xbf16>, vector<128x128xbf16>, vector<8x128xf32> -> vector<8x128xf32>
    %c0_31 = arith.constant 0 : index
    %c0_32 = arith.constant 0 : index
    %76 = vector.load %arg9[%c0_31, %c0_32] : memref<3x128xf32, #tpu.memory_space<vmem>>, vector<1x128xf32>
    %77 = vector.broadcast %76 : vector<1x128xf32> to vector<8x128xf32>
    %78 = arith.addf %75, %77 : vector<8x128xf32>
    %79 = arith.addf %78, %2 : vector<8x128xf32>
    %80 = arith.mulf %79, %79 : vector<8x128xf32>
    %cst_33 = arith.constant dense<0.000000e+00> : vector<8xf32>
    %81 = vector.multi_reduction <add>, %80, %cst_33 [1] : vector<8x128xf32> to vector<8xf32>
    %82 = vector.shape_cast %81 : vector<8xf32> to vector<8x1xf32>
    %cst_34 = arith.constant 1.000000e-24 : f32
    %83 = vector.broadcast %cst_34 : f32 to vector<8x1xf32>
    %84 = arith.maximumf %82, %83 : vector<8x1xf32>
    %85 = math.rsqrt %84 : vector<8x1xf32>
    %86 = vector.broadcast %85 : vector<8x1xf32> to vector<8x128xf32>
    %87 = arith.mulf %79, %86 : vector<8x128xf32>
    %c1 = arith.constant 1 : index
    %c0_35 = arith.constant 0 : index
    %c0_36 = arith.constant 0 : index
    %88 = vector.load %arg2[%c1, %c0_35, %c0_36] : memref<3x128x256xbf16, #tpu.memory_space<vmem>>, vector<1x128x256xbf16>
    %89 = vector.shape_cast %88 : vector<1x128x256xbf16> to vector<128x256xbf16>
    %90 = arith.truncf %87 : vector<8x128xf32> to vector<8x128xbf16>
    %cst_37 = arith.constant dense<0.000000e+00> : vector<8x256xf32>
    %91 = tpu.matmul %90, %89, %cst_37 {dimension_numbers = #tpu.dot_dimension_numbers<[1], [0], [0], [1], [0, 0, 1, 1], [], []>} : vector<8x128xbf16>, vector<128x256xbf16>, vector<8x256xf32> -> vector<8x256xf32>
    %c1_38 = arith.constant 1 : index
    %c0_39 = arith.constant 0 : index
    %92 = vector.load %arg3[%c1_38, %c0_39] : memref<3x256xf32, #tpu.memory_space<vmem>>, vector<1x256xf32>
    %93 = vector.broadcast %92 : vector<1x256xf32> to vector<8x256xf32>
    %94 = arith.addf %91, %93 : vector<8x256xf32>
    %95 = vector.extract_strided_slice %94 {offsets = [0, 0], sizes = [8, 128], strides = [1, 1]} : vector<8x256xf32> to vector<8x128xf32>
    %96 = vector.extract_strided_slice %94 {offsets = [0, 128], sizes = [8, 128], strides = [1, 1]} : vector<8x256xf32> to vector<8x128xf32>
    %97 = arith.mulf %95, %96 : vector<8x128xf32>
    %cst_40 = arith.constant dense<0.000000e+00> : vector<8xf32>
    %98 = vector.multi_reduction <add>, %97, %cst_40 [1] : vector<8x128xf32> to vector<8xf32>
    %99 = vector.shape_cast %98 : vector<8xf32> to vector<8x1xf32>
    %100 = vector.broadcast %99 : vector<8x1xf32> to vector<8x128xf32>
    %101 = arith.mulf %87, %100 : vector<8x128xf32>
    %c1_41 = arith.constant 1 : index
    %c0_42 = arith.constant 0 : index
    %c0_43 = arith.constant 0 : index
    %102 = vector.load %arg4[%c1_41, %c0_42, %c0_43] : memref<3x128x256xbf16, #tpu.memory_space<vmem>>, vector<1x128x256xbf16>
    %103 = vector.shape_cast %102 : vector<1x128x256xbf16> to vector<128x256xbf16>
    %104 = arith.truncf %55 : vector<8x128xf32> to vector<8x128xbf16>
    %cst_44 = arith.constant dense<0.000000e+00> : vector<8x256xf32>
    %105 = tpu.matmul %104, %103, %cst_44 {dimension_numbers = #tpu.dot_dimension_numbers<[1], [0], [0], [1], [0, 0, 1, 1], [], []>} : vector<8x128xbf16>, vector<128x256xbf16>, vector<8x256xf32> -> vector<8x256xf32>
    %c1_45 = arith.constant 1 : index
    %c0_46 = arith.constant 0 : index
    %106 = vector.load %arg5[%c1_45, %c0_46] : memref<3x256xf32, #tpu.memory_space<vmem>>, vector<1x256xf32>
    %107 = vector.broadcast %106 : vector<1x256xf32> to vector<8x256xf32>
    %108 = arith.addf %105, %107 : vector<8x256xf32>
    %c1_47 = arith.constant 1 : index
    %c0_48 = arith.constant 0 : index
    %c0_49 = arith.constant 0 : index
    %109 = vector.load %arg6[%c1_47, %c0_48, %c0_49] : memref<3x128x256xbf16, #tpu.memory_space<vmem>>, vector<1x128x256xbf16>
    %110 = vector.shape_cast %109 : vector<1x128x256xbf16> to vector<128x256xbf16>
    %111 = arith.truncf %63 : vector<8x128xf32> to vector<8x128xbf16>
    %cst_50 = arith.constant dense<0.000000e+00> : vector<8x256xf32>
    %112 = tpu.matmul %111, %110, %cst_50 {dimension_numbers = #tpu.dot_dimension_numbers<[1], [0], [0], [1], [0, 0, 1, 1], [], []>} : vector<8x128xbf16>, vector<128x256xbf16>, vector<8x256xf32> -> vector<8x256xf32>
    %c1_51 = arith.constant 1 : index
    %c0_52 = arith.constant 0 : index
    %113 = vector.load %arg7[%c1_51, %c0_52] : memref<3x256xf32, #tpu.memory_space<vmem>>, vector<1x256xf32>
    %114 = vector.broadcast %113 : vector<1x256xf32> to vector<8x256xf32>
    %115 = arith.addf %112, %114 : vector<8x256xf32>
    %116 = vector.extract_strided_slice %108 {offsets = [0, 0], sizes = [8, 128], strides = [1, 1]} : vector<8x256xf32> to vector<8x128xf32>
    %117 = vector.extract_strided_slice %108 {offsets = [0, 128], sizes = [8, 128], strides = [1, 1]} : vector<8x256xf32> to vector<8x128xf32>
    %118 = vector.extract_strided_slice %115 {offsets = [0, 0], sizes = [8, 128], strides = [1, 1]} : vector<8x256xf32> to vector<8x128xf32>
    %119 = vector.extract_strided_slice %115 {offsets = [0, 128], sizes = [8, 128], strides = [1, 1]} : vector<8x256xf32> to vector<8x128xf32>
    %120 = arith.mulf %95, %116 : vector<8x128xf32>
    %cst_53 = arith.constant dense<0.000000e+00> : vector<8xf32>
    %121 = vector.multi_reduction <add>, %120, %cst_53 [1] : vector<8x128xf32> to vector<8xf32>
    %122 = vector.shape_cast %121 : vector<8xf32> to vector<8x1xf32>
    %123 = vector.broadcast %122 : vector<8x1xf32> to vector<8x128xf32>
    %124 = arith.mulf %55, %123 : vector<8x128xf32>
    %125 = arith.addf %101, %124 : vector<8x128xf32>
    %126 = arith.mulf %95, %118 : vector<8x128xf32>
    %cst_54 = arith.constant dense<0.000000e+00> : vector<8xf32>
    %127 = vector.multi_reduction <add>, %126, %cst_54 [1] : vector<8x128xf32> to vector<8xf32>
    %128 = vector.shape_cast %127 : vector<8xf32> to vector<8x1xf32>
    %129 = vector.broadcast %128 : vector<8x1xf32> to vector<8x128xf32>
    %130 = arith.mulf %63, %129 : vector<8x128xf32>
    %131 = arith.addf %125, %130 : vector<8x128xf32>
    %132 = arith.mulf %117, %117 : vector<8x128xf32>
    %cst_55 = arith.constant dense<0.000000e+00> : vector<8xf32>
    %133 = vector.multi_reduction <add>, %132, %cst_55 [1] : vector<8x128xf32> to vector<8xf32>
    %134 = vector.shape_cast %133 : vector<8xf32> to vector<8x1xf32>
    %cst_56 = arith.constant 1.000000e-24 : f32
    %135 = vector.broadcast %cst_56 : f32 to vector<8x1xf32>
    %136 = arith.maximumf %134, %135 : vector<8x1xf32>
    %137 = math.rsqrt %136 : vector<8x1xf32>
    %138 = vector.broadcast %137 : vector<8x1xf32> to vector<8x128xf32>
    %139 = arith.mulf %117, %138 : vector<8x128xf32>
    %140 = arith.mulf %119, %119 : vector<8x128xf32>
    %cst_57 = arith.constant dense<0.000000e+00> : vector<8xf32>
    %141 = vector.multi_reduction <add>, %140, %cst_57 [1] : vector<8x128xf32> to vector<8xf32>
    %142 = vector.shape_cast %141 : vector<8xf32> to vector<8x1xf32>
    %cst_58 = arith.constant 1.000000e-24 : f32
    %143 = vector.broadcast %cst_58 : f32 to vector<8x1xf32>
    %144 = arith.maximumf %142, %143 : vector<8x1xf32>
    %145 = math.rsqrt %144 : vector<8x1xf32>
    %146 = vector.broadcast %145 : vector<8x1xf32> to vector<8x128xf32>
    %147 = arith.mulf %119, %146 : vector<8x128xf32>
    %148 = arith.mulf %131, %131 : vector<8x128xf32>
    %cst_59 = arith.constant dense<0.000000e+00> : vector<8xf32>
    %149 = vector.multi_reduction <add>, %148, %cst_59 [1] : vector<8x128xf32> to vector<8xf32>
    %150 = vector.shape_cast %149 : vector<8xf32> to vector<8x1xf32>
    %cst_60 = arith.constant 1.000000e-24 : f32
    %151 = vector.broadcast %cst_60 : f32 to vector<8x1xf32>
    %152 = arith.maximumf %150, %151 : vector<8x1xf32>
    %153 = math.rsqrt %152 : vector<8x1xf32>
    %154 = vector.broadcast %153 : vector<8x1xf32> to vector<8x128xf32>
    %155 = arith.mulf %131, %154 : vector<8x128xf32>
    %c1_61 = arith.constant 1 : index
    %c0_62 = arith.constant 0 : index
    %c0_63 = arith.constant 0 : index
    %156 = vector.load %arg8[%c1_61, %c0_62, %c0_63] : memref<3x128x128xbf16, #tpu.memory_space<vmem>>, vector<1x128x128xbf16>
    %157 = vector.shape_cast %156 : vector<1x128x128xbf16> to vector<128x128xbf16>
    %158 = arith.truncf %155 : vector<8x128xf32> to vector<8x128xbf16>
    %cst_64 = arith.constant dense<0.000000e+00> : vector<8x128xf32>
    %159 = tpu.matmul %158, %157, %cst_64 {dimension_numbers = #tpu.dot_dimension_numbers<[1], [0], [0], [1], [0, 0, 1, 1], [], []>} : vector<8x128xbf16>, vector<128x128xbf16>, vector<8x128xf32> -> vector<8x128xf32>
    %c1_65 = arith.constant 1 : index
    %c0_66 = arith.constant 0 : index
    %160 = vector.load %arg9[%c1_65, %c0_66] : memref<3x128xf32, #tpu.memory_space<vmem>>, vector<1x128xf32>
    %161 = vector.broadcast %160 : vector<1x128xf32> to vector<8x128xf32>
    %162 = arith.addf %159, %161 : vector<8x128xf32>
    %163 = arith.addf %162, %87 : vector<8x128xf32>
    %164 = arith.mulf %163, %163 : vector<8x128xf32>
    %cst_67 = arith.constant dense<0.000000e+00> : vector<8xf32>
    %165 = vector.multi_reduction <add>, %164, %cst_67 [1] : vector<8x128xf32> to vector<8xf32>
    %166 = vector.shape_cast %165 : vector<8xf32> to vector<8x1xf32>
    %cst_68 = arith.constant 1.000000e-24 : f32
    %167 = vector.broadcast %cst_68 : f32 to vector<8x1xf32>
    %168 = arith.maximumf %166, %167 : vector<8x1xf32>
    %169 = math.rsqrt %168 : vector<8x1xf32>
    %170 = vector.broadcast %169 : vector<8x1xf32> to vector<8x128xf32>
    %171 = arith.mulf %163, %170 : vector<8x128xf32>
    %c2 = arith.constant 2 : index
    %c0_69 = arith.constant 0 : index
    %c0_70 = arith.constant 0 : index
    %172 = vector.load %arg2[%c2, %c0_69, %c0_70] : memref<3x128x256xbf16, #tpu.memory_space<vmem>>, vector<1x128x256xbf16>
    %173 = vector.shape_cast %172 : vector<1x128x256xbf16> to vector<128x256xbf16>
    %174 = arith.truncf %171 : vector<8x128xf32> to vector<8x128xbf16>
    %cst_71 = arith.constant dense<0.000000e+00> : vector<8x256xf32>
    %175 = tpu.matmul %174, %173, %cst_71 {dimension_numbers = #tpu.dot_dimension_numbers<[1], [0], [0], [1], [0, 0, 1, 1], [], []>} : vector<8x128xbf16>, vector<128x256xbf16>, vector<8x256xf32> -> vector<8x256xf32>
    %c2_72 = arith.constant 2 : index
    %c0_73 = arith.constant 0 : index
    %176 = vector.load %arg3[%c2_72, %c0_73] : memref<3x256xf32, #tpu.memory_space<vmem>>, vector<1x256xf32>
    %177 = vector.broadcast %176 : vector<1x256xf32> to vector<8x256xf32>
    %178 = arith.addf %175, %177 : vector<8x256xf32>
    %179 = vector.extract_strided_slice %178 {offsets = [0, 0], sizes = [8, 128], strides = [1, 1]} : vector<8x256xf32> to vector<8x128xf32>
    %180 = vector.extract_strided_slice %178 {offsets = [0, 128], sizes = [8, 128], strides = [1, 1]} : vector<8x256xf32> to vector<8x128xf32>
    %181 = arith.mulf %179, %180 : vector<8x128xf32>
    %cst_74 = arith.constant dense<0.000000e+00> : vector<8xf32>
    %182 = vector.multi_reduction <add>, %181, %cst_74 [1] : vector<8x128xf32> to vector<8xf32>
    %183 = vector.shape_cast %182 : vector<8xf32> to vector<8x1xf32>
    %184 = vector.broadcast %183 : vector<8x1xf32> to vector<8x128xf32>
    %185 = arith.mulf %171, %184 : vector<8x128xf32>
    %c2_75 = arith.constant 2 : index
    %c0_76 = arith.constant 0 : index
    %c0_77 = arith.constant 0 : index
    %186 = vector.load %arg4[%c2_75, %c0_76, %c0_77] : memref<3x128x256xbf16, #tpu.memory_space<vmem>>, vector<1x128x256xbf16>
    %187 = vector.shape_cast %186 : vector<1x128x256xbf16> to vector<128x256xbf16>
    %188 = arith.truncf %139 : vector<8x128xf32> to vector<8x128xbf16>
    %cst_78 = arith.constant dense<0.000000e+00> : vector<8x256xf32>
    %189 = tpu.matmul %188, %187, %cst_78 {dimension_numbers = #tpu.dot_dimension_numbers<[1], [0], [0], [1], [0, 0, 1, 1], [], []>} : vector<8x128xbf16>, vector<128x256xbf16>, vector<8x256xf32> -> vector<8x256xf32>
    %c2_79 = arith.constant 2 : index
    %c0_80 = arith.constant 0 : index
    %190 = vector.load %arg5[%c2_79, %c0_80] : memref<3x256xf32, #tpu.memory_space<vmem>>, vector<1x256xf32>
    %191 = vector.broadcast %190 : vector<1x256xf32> to vector<8x256xf32>
    %192 = arith.addf %189, %191 : vector<8x256xf32>
    %c2_81 = arith.constant 2 : index
    %c0_82 = arith.constant 0 : index
    %c0_83 = arith.constant 0 : index
    %193 = vector.load %arg6[%c2_81, %c0_82, %c0_83] : memref<3x128x256xbf16, #tpu.memory_space<vmem>>, vector<1x128x256xbf16>
    %194 = vector.shape_cast %193 : vector<1x128x256xbf16> to vector<128x256xbf16>
    %195 = arith.truncf %147 : vector<8x128xf32> to vector<8x128xbf16>
    %cst_84 = arith.constant dense<0.000000e+00> : vector<8x256xf32>
    %196 = tpu.matmul %195, %194, %cst_84 {dimension_numbers = #tpu.dot_dimension_numbers<[1], [0], [0], [1], [0, 0, 1, 1], [], []>} : vector<8x128xbf16>, vector<128x256xbf16>, vector<8x256xf32> -> vector<8x256xf32>
    %c2_85 = arith.constant 2 : index
    %c0_86 = arith.constant 0 : index
    %197 = vector.load %arg7[%c2_85, %c0_86] : memref<3x256xf32, #tpu.memory_space<vmem>>, vector<1x256xf32>
    %198 = vector.broadcast %197 : vector<1x256xf32> to vector<8x256xf32>
    %199 = arith.addf %196, %198 : vector<8x256xf32>
    %200 = vector.extract_strided_slice %192 {offsets = [0, 0], sizes = [8, 128], strides = [1, 1]} : vector<8x256xf32> to vector<8x128xf32>
    %201 = vector.extract_strided_slice %192 {offsets = [0, 128], sizes = [8, 128], strides = [1, 1]} : vector<8x256xf32> to vector<8x128xf32>
    %202 = vector.extract_strided_slice %199 {offsets = [0, 0], sizes = [8, 128], strides = [1, 1]} : vector<8x256xf32> to vector<8x128xf32>
    %203 = vector.extract_strided_slice %199 {offsets = [0, 128], sizes = [8, 128], strides = [1, 1]} : vector<8x256xf32> to vector<8x128xf32>
    %204 = arith.mulf %179, %200 : vector<8x128xf32>
    %cst_87 = arith.constant dense<0.000000e+00> : vector<8xf32>
    %205 = vector.multi_reduction <add>, %204, %cst_87 [1] : vector<8x128xf32> to vector<8xf32>
    %206 = vector.shape_cast %205 : vector<8xf32> to vector<8x1xf32>
    %207 = vector.broadcast %206 : vector<8x1xf32> to vector<8x128xf32>
    %208 = arith.mulf %139, %207 : vector<8x128xf32>
    %209 = arith.addf %185, %208 : vector<8x128xf32>
    %210 = arith.mulf %179, %202 : vector<8x128xf32>
    %cst_88 = arith.constant dense<0.000000e+00> : vector<8xf32>
    %211 = vector.multi_reduction <add>, %210, %cst_88 [1] : vector<8x128xf32> to vector<8xf32>
    %212 = vector.shape_cast %211 : vector<8xf32> to vector<8x1xf32>
    %213 = vector.broadcast %212 : vector<8x1xf32> to vector<8x128xf32>
    %214 = arith.mulf %147, %213 : vector<8x128xf32>
    %215 = arith.addf %209, %214 : vector<8x128xf32>
    %216 = arith.mulf %201, %201 : vector<8x128xf32>
    %cst_89 = arith.constant dense<0.000000e+00> : vector<8xf32>
    %217 = vector.multi_reduction <add>, %216, %cst_89 [1] : vector<8x128xf32> to vector<8xf32>
    %218 = vector.shape_cast %217 : vector<8xf32> to vector<8x1xf32>
    %cst_90 = arith.constant 1.000000e-24 : f32
    %219 = vector.broadcast %cst_90 : f32 to vector<8x1xf32>
    %220 = arith.maximumf %218, %219 : vector<8x1xf32>
    %221 = math.rsqrt %220 : vector<8x1xf32>
    %222 = vector.broadcast %221 : vector<8x1xf32> to vector<8x128xf32>
    %223 = arith.mulf %201, %222 : vector<8x128xf32>
    %224 = arith.mulf %203, %203 : vector<8x128xf32>
    %cst_91 = arith.constant dense<0.000000e+00> : vector<8xf32>
    %225 = vector.multi_reduction <add>, %224, %cst_91 [1] : vector<8x128xf32> to vector<8xf32>
    %226 = vector.shape_cast %225 : vector<8xf32> to vector<8x1xf32>
    %cst_92 = arith.constant 1.000000e-24 : f32
    %227 = vector.broadcast %cst_92 : f32 to vector<8x1xf32>
    %228 = arith.maximumf %226, %227 : vector<8x1xf32>
    %229 = math.rsqrt %228 : vector<8x1xf32>
    %230 = vector.broadcast %229 : vector<8x1xf32> to vector<8x128xf32>
    %231 = arith.mulf %203, %230 : vector<8x128xf32>
    %232 = arith.mulf %215, %215 : vector<8x128xf32>
    %cst_93 = arith.constant dense<0.000000e+00> : vector<8xf32>
    %233 = vector.multi_reduction <add>, %232, %cst_93 [1] : vector<8x128xf32> to vector<8xf32>
    %234 = vector.shape_cast %233 : vector<8xf32> to vector<8x1xf32>
    %cst_94 = arith.constant 1.000000e-24 : f32
    %235 = vector.broadcast %cst_94 : f32 to vector<8x1xf32>
    %236 = arith.maximumf %234, %235 : vector<8x1xf32>
    %237 = math.rsqrt %236 : vector<8x1xf32>
    %238 = vector.broadcast %237 : vector<8x1xf32> to vector<8x128xf32>
    %239 = arith.mulf %215, %238 : vector<8x128xf32>
    %c2_95 = arith.constant 2 : index
    %c0_96 = arith.constant 0 : index
    %c0_97 = arith.constant 0 : index
    %240 = vector.load %arg8[%c2_95, %c0_96, %c0_97] : memref<3x128x128xbf16, #tpu.memory_space<vmem>>, vector<1x128x128xbf16>
    %241 = vector.shape_cast %240 : vector<1x128x128xbf16> to vector<128x128xbf16>
    %242 = arith.truncf %239 : vector<8x128xf32> to vector<8x128xbf16>
    %cst_98 = arith.constant dense<0.000000e+00> : vector<8x128xf32>
    %243 = tpu.matmul %242, %241, %cst_98 {dimension_numbers = #tpu.dot_dimension_numbers<[1], [0], [0], [1], [0, 0, 1, 1], [], []>} : vector<8x128xbf16>, vector<128x128xbf16>, vector<8x128xf32> -> vector<8x128xf32>
    %c2_99 = arith.constant 2 : index
    %c0_100 = arith.constant 0 : index
    %244 = vector.load %arg9[%c2_99, %c0_100] : memref<3x128xf32, #tpu.memory_space<vmem>>, vector<1x128xf32>
    %245 = vector.broadcast %244 : vector<1x128xf32> to vector<8x128xf32>
    %246 = arith.addf %243, %245 : vector<8x128xf32>
    %247 = arith.addf %246, %171 : vector<8x128xf32>
    %248 = arith.mulf %247, %247 : vector<8x128xf32>
    %cst_101 = arith.constant dense<0.000000e+00> : vector<8xf32>
    %249 = vector.multi_reduction <add>, %248, %cst_101 [1] : vector<8x128xf32> to vector<8xf32>
    %250 = vector.shape_cast %249 : vector<8xf32> to vector<8x1xf32>
    %cst_102 = arith.constant 1.000000e-24 : f32
    %251 = vector.broadcast %cst_102 : f32 to vector<8x1xf32>
    %252 = arith.maximumf %250, %251 : vector<8x1xf32>
    %253 = math.rsqrt %252 : vector<8x1xf32>
    %254 = vector.broadcast %253 : vector<8x1xf32> to vector<8x128xf32>
    %255 = arith.mulf %247, %254 : vector<8x128xf32>
    %c0_103 = arith.constant 0 : index
    %c0_104 = arith.constant 0 : index
    %256 = vector.load %arg10[%c0_103, %c0_104] : memref<128x256xbf16, #tpu.memory_space<vmem>>, vector<128x256xbf16>
    %257 = arith.truncf %255 : vector<8x128xf32> to vector<8x128xbf16>
    %cst_105 = arith.constant dense<0.000000e+00> : vector<8x256xf32>
    %258 = tpu.matmul %257, %256, %cst_105 {dimension_numbers = #tpu.dot_dimension_numbers<[1], [0], [0], [1], [0, 0, 1, 1], [], []>} : vector<8x128xbf16>, vector<128x256xbf16>, vector<8x256xf32> -> vector<8x256xf32>
    %c0_106 = arith.constant 0 : index
    %c0_107 = arith.constant 0 : index
    %259 = vector.load %arg11[%c0_106, %c0_107] : memref<1x256xf32, #tpu.memory_space<vmem>>, vector<1x256xf32>
    %260 = vector.broadcast %259 : vector<1x256xf32> to vector<8x256xf32>
    %261 = arith.addf %258, %260 : vector<8x256xf32>
    %262 = vector.extract_strided_slice %261 {offsets = [0, 0], sizes = [8, 128], strides = [1, 1]} : vector<8x256xf32> to vector<8x128xf32>
    %263 = vector.extract_strided_slice %261 {offsets = [0, 128], sizes = [8, 128], strides = [1, 1]} : vector<8x256xf32> to vector<8x128xf32>
    %c0_108 = arith.constant 0 : index
    %c0_109 = arith.constant 0 : index
    %c0_110 = arith.constant 0 : index
    %264 = vector.load %arg12[%c0_108, %c0_109, %c0_110] : memref<1x128x128xbf16, #tpu.memory_space<vmem>>, vector<1x128x128xbf16>
    %265 = vector.shape_cast %264 : vector<1x128x128xbf16> to vector<128x128xbf16>
    %266 = arith.truncf %223 : vector<8x128xf32> to vector<8x128xbf16>
    %cst_111 = arith.constant dense<0.000000e+00> : vector<8x128xf32>
    %267 = tpu.matmul %266, %265, %cst_111 {dimension_numbers = #tpu.dot_dimension_numbers<[1], [0], [0], [1], [0, 0, 1, 1], [], []>} : vector<8x128xbf16>, vector<128x128xbf16>, vector<8x128xf32> -> vector<8x128xf32>
    %c0_112 = arith.constant 0 : index
    %c0_113 = arith.constant 0 : index
    %268 = vector.load %arg13[%c0_112, %c0_113] : memref<1x128xf32, #tpu.memory_space<vmem>>, vector<1x128xf32>
    %269 = vector.broadcast %268 : vector<1x128xf32> to vector<8x128xf32>
    %270 = arith.addf %267, %269 : vector<8x128xf32>
    %271 = arith.mulf %262, %270 : vector<8x128xf32>
    %cst_114 = arith.constant dense<0.000000e+00> : vector<8xf32>
    %272 = vector.multi_reduction <add>, %271, %cst_114 [1] : vector<8x128xf32> to vector<8xf32>
    %273 = vector.shape_cast %272 : vector<8xf32> to vector<8x1xf32>
    %274 = arith.mulf %262, %263 : vector<8x128xf32>
    %cst_115 = arith.constant dense<0.000000e+00> : vector<8xf32>
    %275 = vector.multi_reduction <add>, %274, %cst_115 [1] : vector<8x128xf32> to vector<8xf32>
    %276 = vector.shape_cast %275 : vector<8xf32> to vector<8x1xf32>
    %c0_116 = arith.constant 0 : index
    %c0_117 = arith.constant 0 : index
    %c0_118 = arith.constant 0 : index
    %277 = vector.load %arg14[%c0_116, %c0_117, %c0_118] : memref<1x128x128xbf16, #tpu.memory_space<vmem>>, vector<1x128x128xbf16>
    %278 = vector.shape_cast %277 : vector<1x128x128xbf16> to vector<128x128xbf16>
    %279 = arith.truncf %231 : vector<8x128xf32> to vector<8x128xbf16>
    %cst_119 = arith.constant dense<0.000000e+00> : vector<8x128xf32>
    %280 = tpu.matmul %279, %278, %cst_119 {dimension_numbers = #tpu.dot_dimension_numbers<[1], [0], [0], [1], [0, 0, 1, 1], [], []>} : vector<8x128xbf16>, vector<128x128xbf16>, vector<8x128xf32> -> vector<8x128xf32>
    %c0_120 = arith.constant 0 : index
    %c0_121 = arith.constant 0 : index
    %281 = vector.load %arg15[%c0_120, %c0_121] : memref<1x128xf32, #tpu.memory_space<vmem>>, vector<1x128xf32>
    %282 = vector.broadcast %281 : vector<1x128xf32> to vector<8x128xf32>
    %283 = arith.addf %280, %282 : vector<8x128xf32>
    %284 = arith.mulf %262, %283 : vector<8x128xf32>
    %cst_122 = arith.constant dense<0.000000e+00> : vector<8xf32>
    %285 = vector.multi_reduction <add>, %284, %cst_122 [1] : vector<8x128xf32> to vector<8xf32>
    %286 = vector.shape_cast %285 : vector<8xf32> to vector<8x1xf32>
    %287 = arith.maximumf %273, %276 : vector<8x1xf32>
    %288 = arith.maximumf %287, %286 : vector<8x1xf32>
    %289 = arith.subf %273, %288 : vector<8x1xf32>
    %290 = math.exp %289 : vector<8x1xf32>
    %291 = arith.subf %276, %288 : vector<8x1xf32>
    %292 = math.exp %291 : vector<8x1xf32>
    %293 = arith.subf %286, %288 : vector<8x1xf32>
    %294 = math.exp %293 : vector<8x1xf32>
    %295 = arith.addf %290, %292 : vector<8x1xf32>
    %296 = arith.addf %295, %294 : vector<8x1xf32>
    %297 = tpu.reciprocal %296 {approx = true} : vector<8x1xf32> -> vector<8x1xf32>
    %298 = arith.mulf %292, %297 : vector<8x1xf32>
    %299 = vector.broadcast %298 : vector<8x1xf32> to vector<8x128xf32>
    %300 = arith.mulf %255, %299 : vector<8x128xf32>
    %301 = arith.mulf %290, %297 : vector<8x1xf32>
    %302 = vector.broadcast %301 : vector<8x1xf32> to vector<8x128xf32>
    %303 = arith.mulf %223, %302 : vector<8x128xf32>
    %304 = arith.addf %300, %303 : vector<8x128xf32>
    %305 = arith.mulf %294, %297 : vector<8x1xf32>
    %306 = vector.broadcast %305 : vector<8x1xf32> to vector<8x128xf32>
    %307 = arith.mulf %231, %306 : vector<8x128xf32>
    %308 = arith.addf %304, %307 : vector<8x128xf32>
    %309 = arith.mulf %308, %308 : vector<8x128xf32>
    %cst_123 = arith.constant dense<0.000000e+00> : vector<8xf32>
    %310 = vector.multi_reduction <add>, %309, %cst_123 [1] : vector<8x128xf32> to vector<8xf32>
    %311 = vector.shape_cast %310 : vector<8xf32> to vector<8x1xf32>
    %cst_124 = arith.constant 1.000000e-24 : f32
    %312 = vector.broadcast %cst_124 : f32 to vector<8x1xf32>
    %313 = arith.maximumf %311, %312 : vector<8x1xf32>
    %314 = math.rsqrt %313 : vector<8x1xf32>
    %315 = vector.broadcast %314 : vector<8x1xf32> to vector<8x128xf32>
    %316 = arith.mulf %308, %315 : vector<8x128xf32>
    %c0_125 = arith.constant 0 : index
    %c0_126 = arith.constant 0 : index
    %317 = vector.load %arg16[%c0_125, %c0_126] : memref<8x128xf32, #tpu.memory_space<vmem>>, vector<8x128xf32>
    tpu.vector_store %arg16[%c0_125, %c0_126], %316 {strides = array<i32>} : memref<8x128xf32, #tpu.memory_space<vmem>>, vector<8x128xf32>,
    return
  }
  func.func @transform_0(%arg0: i32) -> (i32, i32) {
    %c0_i32 = arith.constant 0 : i32
    %c0_i32_0 = arith.constant 0 : i32
    return %arg0, %c0_i32 : i32, i32
  }
  func.func @transform_1(%arg0: i32) -> (i32, i32, i32) {
    %c0_i32 = arith.constant 0 : i32
    %c0_i32_0 = arith.constant 0 : i32
    %c0_i32_1 = arith.constant 0 : i32
    %c0_i32_2 = arith.constant 0 : i32
    return %c0_i32, %c0_i32_0, %c0_i32_1 : i32, i32, i32
  }
  func.func @transform_2(%arg0: i32) -> (i32, i32) {
    %c0_i32 = arith.constant 0 : i32
    %c0_i32_0 = arith.constant 0 : i32
    %c0_i32_1 = arith.constant 0 : i32
    return %c0_i32, %c0_i32_0 : i32, i32
  }
  func.func @transform_3(%arg0: i32) -> (i32, i32, i32) {
    %c0_i32 = arith.constant 0 : i32
    %c0_i32_0 = arith.constant 0 : i32
    %c0_i32_1 = arith.constant 0 : i32
    %c0_i32_2 = arith.constant 0 : i32
    return %c0_i32, %c0_i32_0, %c0_i32_1 : i32, i32, i32
  }
  func.func @transform_4(%arg0: i32) -> (i32, i32) {
    %c0_i32 = arith.constant 0 : i32
    %c0_i32_0 = arith.constant 0 : i32
    %c0_i32_1 = arith.constant 0 : i32
    return %c0_i32, %c0_i32_0 : i32, i32
  }
  func.func @transform_5(%arg0: i32) -> (i32, i32, i32) {
    %c0_i32 = arith.constant 0 : i32
    %c0_i32_0 = arith.constant 0 : i32
    %c0_i32_1 = arith.constant 0 : i32
    %c0_i32_2 = arith.constant 0 : i32
    return %c0_i32, %c0_i32_0, %c0_i32_1 : i32, i32, i32
  }
  func.func @transform_6(%arg0: i32) -> (i32, i32) {
    %c0_i32 = arith.constant 0 : i32
    %c0_i32_0 = arith.constant 0 : i32
    %c0_i32_1 = arith.constant 0 : i32
    return %c0_i32, %c0_i32_0 : i32, i32
  }
  func.func @transform_7(%arg0: i32) -> (i32, i32, i32) {
    %c0_i32 = arith.constant 0 : i32
    %c0_i32_0 = arith.constant 0 : i32
    %c0_i32_1 = arith.constant 0 : i32
    %c0_i32_2 = arith.constant 0 : i32
    return %c0_i32, %c0_i32_0, %c0_i32_1 : i32, i32, i32
  }
  func.func @transform_8(%arg0: i32) -> (i32, i32) {
    %c0_i32 = arith.constant 0 : i32
    %c0_i32_0 = arith.constant 0 : i32
    %c0_i32_1 = arith.constant 0 : i32
    return %c0_i32, %c0_i32_0 : i32, i32
  }
  func.func @transform_9(%arg0: i32) -> (i32, i32) {
    %c0_i32 = arith.constant 0 : i32
    %c0_i32_0 = arith.constant 0 : i32
    %c0_i32_1 = arith.constant 0 : i32
    return %c0_i32, %c0_i32_0 : i32, i32
  }
  func.func @transform_10(%arg0: i32) -> (i32, i32) {
    %c0_i32 = arith.constant 0 : i32
    %c0_i32_0 = arith.constant 0 : i32
    %c0_i32_1 = arith.constant 0 : i32
    return %c0_i32, %c0_i32_0 : i32, i32
  }
  func.func @transform_11(%arg0: i32) -> (i32, i32, i32) {
    %c0_i32 = arith.constant 0 : i32
    %c0_i32_0 = arith.constant 0 : i32
    %c0_i32_1 = arith.constant 0 : i32
    %c0_i32_2 = arith.constant 0 : i32
    return %c0_i32, %c0_i32_0, %c0_i32_1 : i32, i32, i32
  }
  func.func @transform_12(%arg0: i32) -> (i32, i32) {
    %c0_i32 = arith.constant 0 : i32
    %c0_i32_0 = arith.constant 0 : i32
    %c0_i32_1 = arith.constant 0 : i32
    return %c0_i32, %c0_i32_0 : i32, i32
  }
  func.func @transform_13(%arg0: i32) -> (i32, i32, i32) {
    %c0_i32 = arith.constant 0 : i32
    %c0_i32_0 = arith.constant 0 : i32
    %c0_i32_1 = arith.constant 0 : i32
    %c0_i32_2 = arith.constant 0 : i32
    return %c0_i32, %c0_i32_0, %c0_i32_1 : i32, i32, i32
  }
  func.func @transform_14(%arg0: i32) -> (i32, i32) {
    %c0_i32 = arith.constant 0 : i32
    %c0_i32_0 = arith.constant 0 : i32
    %c0_i32_1 = arith.constant 0 : i32
    return %c0_i32, %c0_i32_0 : i32, i32
  }
  func.func @transform_15(%arg0: i32) -> (i32, i32) {
    %c0_i32 = arith.constant 0 : i32
    %c0_i32_0 = arith.constant 0 : i32
    return %arg0, %c0_i32 : i32, i32
  }
}

</mosaic_0001>

<bundles_post_ra>
// kernel: tpu_custom_call.1
= control target key start
LH: loop header
LB: loop body
LE: loop exit
PB: predicated region body
PF: predicated region fallthrough
CT: control target
= control target key end

     0   :  { %s3776_s0 = inlined_call_operand.hbm [shape: f32[8,384], index: 0, kind: input, shape index: {}]   ;;  %s3777_s1 = inlined_call_operand.hbm [shape: bf16[3,128,256], index: 1, kind: input, shape index: {}]   ;;  %s3778_s2 = inlined_call_operand.hbm [shape: f32[3,256], index: 2, kind: input, shape index: {}]   ;;  %s3779_s3 = inlined_call_operand.hbm [shape: bf16[3,128,256], index: 3, kind: input, shape index: {}]   ;;  %s3780_s4 = inlined_call_operand.vmem [shape: f32[3,256], index: 4, kind: input, shape index: {}]   ;;  %s3781_s5 = inlined_call_operand.hbm [shape: bf16[3,128,256], index: 5, kind: input, shape index: {}]   ;;  %s3782_s6 = inlined_call_operand.vmem [shape: f32[3,256], index: 6, kind: input, shape index: {}]   ;;  %s3783_s7 = inlined_call_operand.hbm [shape: bf16[3,128,128], index: 7, kind: input, shape index: {}]   ;;  %s3784_s8 = inlined_call_operand.vmem [shape: f32[3,128], index: 8, kind: input, shape index: {}]   ;;  %s3785_s9 = inlined_call_operand.hbm [shape: bf16[128,256], index: 9, kind: input, shape index: {}]   ;;  %s3786_s10 = inlined_call_operand.vmem [shape: f32[1,256], index: 10, kind: input, shape index: {}]   ;;  %s3787_s11 = inlined_call_operand.hbm [shape: bf16[1,128,128], index: 11, kind: input, shape index: {}]   ;;  %s3788_s12 = inlined_call_operand.vmem [shape: f32[1,128], index: 12, kind: input, shape index: {}]   ;;  %s3789_s13 = inlined_call_operand.hbm [shape: bf16[1,128,128], index: 13, kind: input, shape index: {}]   ;;  %s3790_s14 = inlined_call_operand.vmem [shape: f32[1,128], index: 14, kind: input, shape index: {}]   ;;  %s3791_s15 = inlined_call_operand.hbm [shape: f32[8,128], index: 15, kind: output, shape index: {}]  }
   0x1   :  { %3793 = sst [smem:[#allocation24_spill]] %s3791_s15 }
   0x2   :  { %20 = vsyncpa [#allocation3], 0 }
   0x3   :  { %21 = vsyncpa [#allocation6], 0 }
   0x4   :  { %22 = vsyncpa [#allocation9], 0 }
   0x5   :  { %23 = vsyncpa [#allocation12], 0 }
   0x6   :  { %24 = vsyncpa [#allocation15], 0 }
   0x7   :  { %25 = vsyncpa [#allocation4], 0  ;;  %s3332_s18 = smov [#allocation5]   ;;  %s3100_s22 = scalar_lea.hbm %s3777_s1, 6144 }
   0x8   :  { %s41_s19 = sshll.u32 %s3332_s18, 4  ;;  %p3101_p0 = scmp.ne.s32.totalorder %s3777_s1, %s3100_s22  ;;  %s42_s19 = int_to_ptr.vmem [resolvable:$true] %s41_s19 }
   0x9   :  { %p3104_p1 = scmp.lt.u32.totalorder %s3100_s22, %s3777_s1 }
   0xb   :  { %p3106_p2 = pnand %p3104_p1, %p3101_p0 }
   0xd   :  { %3109 = shalt.err (!%p3106_p2)
}
   0xe   :  { %s3110_s27 = scalar_lea.vmem %s42_s19, 6144  ;;  %p3115_p4 = scmp.lt.s32.totalorder %s42_s19, %s42_s19 }
   0xf   :  { %p3111_p3 = scmp.ne.s32.totalorder %s42_s19, %s3110_s27  ;;  %p3116_p5 = scmp.lt.s32.totalorder %s3110_s27, %s3110_s27 }
  0x11   :  { %p3117_p6 = por %p3116_p5, %p3115_p4 }
  0x13   :  { %p3118_p7 = pnand %p3117_p6, %p3111_p3 }
  0x15   :  { %3121 = shalt.err (!%p3118_p7)
}
  0x16   :  { %s3333_s28 = smov 128   ;;  %s3334_s29 = smov 8  }
  0x17   :  { %47 = dma.hbm_to_vmem [thread:$0]  %s3777_s1, 6144, %s42_s19, [#allocation6], %s3333_s28, %s3333_s28, %s3334_s29  }
  0x18   :  { %s3335_s17 = smov [#allocation8]   ;;  %s3336_s20 = smov [#allocation11]  }
  0x19   :  { %s63_s18 = sshll.u32 %s3335_s17, 4  ;;  %s91_s21 = sshll.u32 %s3336_s20, 4  ;;  %s64_s18 = int_to_ptr.vmem [resolvable:$true] %s63_s18  ;;  %s92_s21 = int_to_ptr.vmem [resolvable:$true] %s91_s21 }
  0x1a   :  { %s3122_s24 = scalar_lea.hbm %s3779_s3, 6144 }
  0x1b   :  { %p3123_p8 = scmp.ne.s32.totalorder %s3779_s3, %s3122_s24  ;;  %p3126_p9 = scmp.lt.u32.totalorder %s3122_s24, %s3779_s3 }
  0x1d   :  { %p3128_p10 = pnand %p3126_p9, %p3123_p8 }
  0x1f   :  { %3131 = shalt.err (!%p3128_p10)
}
  0x20   :  { %s3132_s1 = scalar_lea.vmem %s64_s18, 6144  ;;  %p3137_p12 = scmp.lt.s32.totalorder %s64_s18, %s64_s18 }
  0x21   :  { %p3133_p11 = scmp.ne.s32.totalorder %s64_s18, %s3132_s1  ;;  %p3138_p13 = scmp.lt.s32.totalorder %s3132_s1, %s3132_s1 }
  0x23   :  { %p3139_p0 = por %p3138_p13, %p3137_p12 }
  0x25   :  { %p3140_p1 = pnand %p3139_p0, %p3133_p11 }
  0x27   :  { %3143 = shalt.err (!%p3140_p1)
}
  0x28   :  { %69 = dma.hbm_to_vmem [thread:$0]  %s3779_s3, 6144, %s64_s18, [#allocation9], %s3333_s28, %s3333_s28, %s3334_s29  }
  0x29   :  { %s3144_s17 = scalar_lea.hbm %s3783_s7, 3072 }
  0x2a   :  { %p3145_p2 = scmp.ne.s32.totalorder %s3783_s7, %s3144_s17  ;;  %p3148_p3 = scmp.lt.u32.totalorder %s3144_s17, %s3783_s7 }
  0x2c   :  { %p3150_p4 = pnand %p3148_p3, %p3145_p2 }
  0x2e   :  { %3153 = shalt.err (!%p3150_p4)
}
  0x2f   :  { %s3154_s25 = scalar_lea.vmem %s92_s21, 3072  ;;  %p3159_p6 = scmp.lt.s32.totalorder %s92_s21, %s92_s21 }
  0x30   :  { %p3155_p5 = scmp.ne.s32.totalorder %s92_s21, %s3154_s25  ;;  %p3160_p7 = scmp.lt.s32.totalorder %s3154_s25, %s3154_s25 }
  0x32   :  { %p3161_p8 = por %p3160_p7, %p3159_p6 }
  0x34   :  { %p3162_p9 = pnand %p3161_p8, %p3155_p5 }
  0x36   :  { %3165 = shalt.err (!%p3162_p9)
}
  0x37   :  { %s3337_s3 = smov 64   ;;  %s3338_s18 = smov 4  }
  0x38   :  { %97 = dma.hbm_to_vmem [thread:$0]  %s3783_s7, 3072, %s92_s21, [#allocation12], %s3337_s3, %s3337_s3, %s3338_s18  }
  0x39   :  { %s3339_s1 = smov [#allocation14]   ;;  %s3340_s30 = smov [#allocation2]  }
  0x3a   :  { %s119_s19 = sshll.u32 %s3339_s1, 4  ;;  %s32_s16 = sshll.u32 %s3340_s30, 4  ;;  %s120_s19 = int_to_ptr.vmem [resolvable:$true] %s119_s19  ;;  %s33_s16 = int_to_ptr.vmem [resolvable:$true] %s32_s16 }
  0x3b   :  { %s3166_s20 = scalar_lea.hbm %s3787_s11, 1024 }
  0x3c   :  { %p3167_p10 = scmp.ne.s32.totalorder %s3787_s11, %s3166_s20  ;;  %p3170_p11 = scmp.lt.u32.totalorder %s3166_s20, %s3787_s11 }
  0x3e   :  { %p3172_p12 = pnand %p3170_p11, %p3167_p10 }
  0x40   :  { %3175 = shalt.err (!%p3172_p12)
}
  0x41   :  { %s3176_s7 = scalar_lea.vmem %s120_s19, 1024  ;;  %p3181_p0 = scmp.lt.s32.totalorder %s120_s19, %s120_s19 }
  0x42   :  { %p3177_p13 = scmp.ne.s32.totalorder %s120_s19, %s3176_s7  ;;  %p3182_p1 = scmp.lt.s32.totalorder %s3176_s7, %s3176_s7 }
  0x44   :  { %p3183_p2 = por %p3182_p1, %p3181_p0 }
  0x46   :  { %p3184_p3 = pnand %p3183_p2, %p3177_p13 }
  0x48   :  { %3187 = shalt.err (!%p3184_p3)
}
  0x49   :  { %125 = dma.hbm_to_vmem [thread:$0]  %s3787_s11, 1024, %s120_s19, [#allocation15], %s3337_s3, %s3337_s3, %s3338_s18  }
  0x4a   :  { %s3188_s30 = scalar_lea.hbm %s3776_s0, 384 }
  0x4b   :  { %p3189_p4 = scmp.ne.s32.totalorder %s3776_s0, %s3188_s30  ;;  %p3192_p5 = scmp.lt.u32.totalorder %s3188_s30, %s3776_s0 }
  0x4d   :  { %p3194_p6 = pnand %p3192_p5, %p3189_p4 }
  0x4f   :  { %3197 = shalt.err (!%p3194_p6)
}
  0x50   :  { %s3198_s23 = scalar_lea.vmem %s33_s16, 384  ;;  %p3203_p8 = scmp.lt.s32.totalorder %s33_s16, %s33_s16 }
  0x51   :  { %p3199_p7 = scmp.ne.s32.totalorder %s33_s16, %s3198_s23  ;;  %p3204_p9 = scmp.lt.s32.totalorder %s3198_s23, %s3198_s23 }
  0x53   :  { %p3205_p10 = por %p3204_p9, %p3203_p8 }
  0x55   :  { %p3206_p11 = pnand %p3205_p10, %p3199_p7 }
  0x57   :  { %3209 = shalt.err (!%p3206_p11)
}
  0x58   :  { %35 = dma.hbm_to_vmem [thread:$0]  %s3776_s0, 384, %s33_s16, [#allocation3]  }
  0x59   :  { %s3341_s24 = smov [#allocation7]   ;;  %s3342_s7 = smov [#allocation10]  }
  0x5a   :  { %s54_s25 = sshll.u32 %s3341_s24, 4  ;;  %s77_s21 = sshll.u32 %s3342_s7, 4  ;;  %s55_s25 = int_to_ptr.vmem [resolvable:$true] %s54_s25  ;;  %s78_s21 = int_to_ptr.vmem [resolvable:$true] %s77_s21 }
  0x5b   :  { %s3210_s1 = scalar_lea.hbm %s3778_s2, 128 }
  0x5c   :  { %p3211_p12 = scmp.ne.s32.totalorder %s3778_s2, %s3210_s1  ;;  %p3214_p13 = scmp.lt.u32.totalorder %s3210_s1, %s3778_s2 }
  0x5e   :  { %p3216_p0 = pnand %p3214_p13, %p3211_p12 }
  0x60   :  { %3219 = shalt.err (!%p3216_p0)
}
  0x61   :  { %s3220_s0 = scalar_lea.vmem %s55_s25, 128  ;;  %p3225_p2 = scmp.lt.s32.totalorder %s55_s25, %s55_s25 }
  0x62   :  { %p3221_p1 = scmp.ne.s32.totalorder %s55_s25, %s3220_s0  ;;  %p3226_p3 = scmp.lt.s32.totalorder %s3220_s0, %s3220_s0 }
  0x64   :  { %p3227_p4 = por %p3226_p3, %p3225_p2 }
  0x66   :  { %p3228_p5 = pnand %p3227_p4, %p3221_p1 }
  0x68   :  { %3231 = shalt.err (!%p3228_p5)
}
  0x69   :  { %57 = dma.hbm_to_vmem [thread:$0]  %s3778_s2, 128, %s55_s25, [#allocation6]  }
  0x6a   :  { %s3232_s19 = scalar_lea.hbm %s3781_s5, 6144 }
  0x6b   :  { %p3233_p6 = scmp.ne.s32.totalorder %s3781_s5, %s3232_s19  ;;  %p3236_p7 = scmp.lt.u32.totalorder %s3232_s19, %s3781_s5 }
  0x6d   :  { %p3238_p8 = pnand %p3236_p7, %p3233_p6 }
  0x6f   :  { %3241 = shalt.err (!%p3238_p8)
}
  0x70   :  { %s3242_s1 = scalar_lea.vmem %s78_s21, 6144  ;;  %p3247_p10 = scmp.lt.s32.totalorder %s78_s21, %s78_s21 }
  0x71   :  { %p3243_p9 = scmp.ne.s32.totalorder %s78_s21, %s3242_s1  ;;  %p3248_p11 = scmp.lt.s32.totalorder %s3242_s1, %s3242_s1 }
  0x73   :  { %p3249_p12 = por %p3248_p11, %p3247_p10 }
  0x75   :  { %p3250_p13 = pnand %p3249_p12, %p3243_p9 }
  0x77   :  { %3253 = shalt.err (!%p3250_p13)
}
  0x78   :  { %83 = dma.hbm_to_vmem [thread:$0]  %s3781_s5, 6144, %s78_s21, [#allocation9], %s3333_s28, %s3333_s28, %s3334_s29  }
  0x79   :  { %s3343_s30 = smov [#allocation13]   ;;  %s3344_s17 = smov [#allocation16]  }
  0x7a   :  { %s105_s15 = sshll.u32 %s3343_s30, 4  ;;  %s133_s20 = sshll.u32 %s3344_s17, 4  ;;  %s106_s15 = int_to_ptr.vmem [resolvable:$true] %s105_s15  ;;  %s134_s20 = int_to_ptr.vmem [resolvable:$true] %s133_s20 }
  0x7b   :  { %s3254_s22 = scalar_lea.hbm %s3785_s9, 2048 }
  0x7c   :  { %p3255_p0 = scmp.ne.s32.totalorder %s3785_s9, %s3254_s22  ;;  %p3258_p1 = scmp.lt.u32.totalorder %s3254_s22, %s3785_s9 }
  0x7e   :  { %p3260_p2 = pnand %p3258_p1, %p3255_p0 }
  0x80   :  { %3263 = shalt.err (!%p3260_p2)
}
  0x81   :  { %s3264_s5 = scalar_lea.vmem %s106_s15, 2048  ;;  %p3269_p4 = scmp.lt.s32.totalorder %s106_s15, %s106_s15 }
  0x82   :  { %p3265_p3 = scmp.ne.s32.totalorder %s106_s15, %s3264_s5  ;;  %p3270_p5 = scmp.lt.s32.totalorder %s3264_s5, %s3264_s5 }
  0x84   :  { %p3271_p6 = por %p3270_p5, %p3269_p4 }
  0x86   :  { %p3272_p7 = pnand %p3271_p6, %p3265_p3 }
  0x88   :  { %3275 = shalt.err (!%p3272_p7)
}
  0x89   :  { %111 = dma.hbm_to_vmem [thread:$0]  %s3785_s9, 2048, %s106_s15, [#allocation12], %s3333_s28, %s3333_s28, %s3334_s29  }
  0x8a   :  { %s3276_s1 = scalar_lea.hbm %s3789_s13, 1024 }
  0x8b   :  { %p3277_p8 = scmp.ne.s32.totalorder %s3789_s13, %s3276_s1  ;;  %p3280_p9 = scmp.lt.u32.totalorder %s3276_s1, %s3789_s13 }
  0x8d   :  { %p3282_p10 = pnand %p3280_p9, %p3277_p8 }
  0x8f   :  { %3285 = shalt.err (!%p3282_p10)
}
  0x90   :  { %s3286_s0 = scalar_lea.vmem %s134_s20, 1024  ;;  %p3291_p12 = scmp.lt.s32.totalorder %s134_s20, %s134_s20 }
  0x91   :  { %p3287_p11 = scmp.ne.s32.totalorder %s134_s20, %s3286_s0  ;;  %p3292_p13 = scmp.lt.s32.totalorder %s3286_s0, %s3286_s0 }
  0x93   :  { %p3293_p0 = por %p3292_p13, %p3291_p12 }
  0x95   :  { %p3294_p1 = pnand %p3293_p0, %p3287_p11 }
  0x97   :  { %3297 = shalt.err (!%p3294_p1)
}
  0x98   :  { %139 = dma.hbm_to_vmem [thread:$0]  %s3789_s13, 1024, %s134_s20, [#allocation15], %s3337_s3, %s3337_s3, %s3338_s18  }
  0x99   :  { %3320 = dma.done.wait [#allocation3], 384  }
  0x9a   :  { %3321 = vsyncadd [#allocation3], 4294966912 }
  0x9b   :  { %3322 = dma.done.wait [#allocation6], 6272  }
  0x9c   :  { %3323 = vsyncadd [#allocation6], 4294961024 }
  0x9d   :  { %3324 = dma.done.wait [#allocation9], 12288  }
  0x9e   :  { %3325 = vsyncadd [#allocation9], 4294955008 }
  0x9f   :  { %3326 = dma.done.wait [#allocation12], 5120  }
  0xa0   :  { %3327 = vsyncadd [#allocation12], 4294962176 }
  0xa1   :  { %3328 = dma.done.wait [#allocation15], 2048  }
  0xa2   :  { %3329 = vsyncadd [#allocation15], 4294965248  ;;  %v3345_v0 = vmov 0   ;;  %v2786_v1 = vld [vmem:[#allocation5 + $0x4] ss:$8 sps:$4 sm:$0xff]   ;;  %v3560_v32 = vld [vmem:[#allocation2 + $0x8] sm:$0xff]  ;;  %v192_v55 = vlaneseq }
  0xa3   :  { %314 = vmatprep.mubr.bf16.mxu0 %v3345_v0  ;;  %468 = vmatprep.mubr.bf16.mxu1 %v3345_v0  ;;  %v2788_v2 = vld [vmem:[#allocation5] ss:$8 sps:$4 sm:$0xff]   ;;  %v2789_v3 = vld [vmem:[#allocation8 + $0x4] ss:$8 sps:$4 sm:$0xff]   ;;  %v2794_v6 = vld [vmem:[#allocation5 + $0x10] ss:$8 sps:$4 sm:$0xff]   ;;  %v189_v36 = vpack.c.bf16 %v3560_v32, %v3560_v32 }
  0xa4   :  { %282 = vmatprep.subr.bf16.mxu0 %v2786_v1  ;;  %v2791_v4 = vld [vmem:[#allocation8] ss:$8 sps:$4 sm:$0xff]   ;;  %v2792_v5 = vld [vmem:[#allocation5 + $0x14] ss:$8 sps:$4 sm:$0xff]   ;;  %436 = vmatprep.subr.bf16.mxu1 %v2789_v3  ;;  %v2797_v8 = vld [vmem:[#allocation8 + $0x10] ss:$8 sps:$4 sm:$0xff]  }
  0xa5   :  { %283 = vmatpush1.bf16.msra.mxu0 %v2788_v2  ;;  %v2795_v7 = vld [vmem:[#allocation8 + $0x14] ss:$8 sps:$4 sm:$0xff]   ;;  %437 = vmatpush1.bf16.msra.mxu1 %v2791_v4  ;;  %v2800_v10 = vld [vmem:[#allocation5 + $0x20] ss:$8 sps:$4 sm:$0xff]   ;;  %v2801_v11 = vld [vmem:[#allocation8 + $0x24] ss:$8 sps:$4 sm:$0xff]  }
  0xa6   :  { %284 = vmatprep.subr.bf16.mxu0 %v2792_v5  ;;  %438 = vmatprep.subr.bf16.mxu1 %v2795_v7  ;;  %v2798_v9 = vld [vmem:[#allocation5 + $0x24] ss:$8 sps:$4 sm:$0xff]   ;;  %v2804_v12 = vld [vmem:[#allocation5 + $0x34] ss:$8 sps:$4 sm:$0xff]   ;;  %v2803_v13 = vld [vmem:[#allocation8 + $0x20] ss:$8 sps:$4 sm:$0xff]  }
  0xa7   :  { %v2807_v14 = vld [vmem:[#allocation8 + $0x34] ss:$8 sps:$4 sm:$0xff]   ;;  %v2806_v15 = vld [vmem:[#allocation5 + $0x30] ss:$8 sps:$4 sm:$0xff]   ;;  %v2813_v18 = vld [vmem:[#allocation8 + $0x44] ss:$8 sps:$4 sm:$0xff]  }
  0xa8   :  { %v2810_v16 = vld [vmem:[#allocation5 + $0x44] ss:$8 sps:$4 sm:$0xff]   ;;  %v2809_v17 = vld [vmem:[#allocation8 + $0x30] ss:$8 sps:$4 sm:$0xff]   ;;  %v2816_v20 = vld [vmem:[#allocation5 + $0x54] ss:$8 sps:$4 sm:$0xff]  }
  0xa9   :  { %285 = vmatpush1.bf16.msra.mxu0 %v2794_v6  ;;  %439 = vmatpush1.bf16.msra.mxu1 %v2797_v8  ;;  %v2812_v19 = vld [vmem:[#allocation5 + $0x40] ss:$8 sps:$4 sm:$0xff]   ;;  %v2819_v22 = vld [vmem:[#allocation8 + $0x54] ss:$8 sps:$4 sm:$0xff]   ;;  %v2818_v23 = vld [vmem:[#allocation5 + $0x50] ss:$8 sps:$4 sm:$0xff]  }
  0xaa   :  { %286 = vmatprep.subr.bf16.mxu0 %v2798_v9  ;;  %440 = vmatprep.subr.bf16.mxu1 %v2801_v11  ;;  %v2815_v21 = vld [vmem:[#allocation8 + $0x40] ss:$8 sps:$4 sm:$0xff]   ;;  %v2822_v24 = vld [vmem:[#allocation5 + $0x64] ss:$8 sps:$4 sm:$0xff]   ;;  %v2821_v25 = vld [vmem:[#allocation8 + $0x50] ss:$8 sps:$4 sm:$0xff]  }
  0xab   :  { %v2825_v26 = vld [vmem:[#allocation8 + $0x64] ss:$8 sps:$4 sm:$0xff]   ;;  %v2824_v27 = vld [vmem:[#allocation5 + $0x60] ss:$8 sps:$4 sm:$0xff]   ;;  %v2830_v30 = vld [vmem:[#allocation5 + $0x70] ss:$8 sps:$4 sm:$0xff]  }
  0xac   :  { %v2828_v28 = vld [vmem:[#allocation5 + $0x74] ss:$8 sps:$4 sm:$0xff]   ;;  %v2827_v29 = vld [vmem:[#allocation8 + $0x60] ss:$8 sps:$4 sm:$0xff]   ;;  %v2833_v34 = vld [vmem:[#allocation8 + $0x70] ss:$8 sps:$4 sm:$0xff]  }
  0xad   :  { %287 = vmatpush1.bf16.msra.mxu0 %v2800_v10  ;;  %441 = vmatpush1.bf16.msra.mxu1 %v2803_v13  ;;  %v2831_v31 = vld [vmem:[#allocation8 + $0x74] ss:$8 sps:$4 sm:$0xff]   ;;  %v2836_v33 = vld [vmem:[#allocation10 + $0x4] ss:$8 sps:$4 sm:$0xff]   ;;  %v2834_v37 = vld [vmem:[#allocation10] ss:$8 sps:$4 sm:$0xff]  }
  0xae   :  { %288 = vmatprep.subr.bf16.mxu0 %v2804_v12  ;;  %442 = vmatprep.subr.bf16.mxu1 %v2807_v14  ;;  %v3562_v35 = vld [vmem:[#allocation2] sm:$0xff]  ;;  %v2839_v39 = vld [vmem:[#allocation10 + $0x14] ss:$8 sps:$4 sm:$0xff]   ;;  %v2837_v40 = vld [vmem:[#allocation10 + $0x10] ss:$8 sps:$4 sm:$0xff]   ;;  %v193_v56 = vshrl.u32 %v192_v55, 7 }
  0xaf   :  { %v343_v38 = vpack.c.bf16 %v3562_v35, %v3562_v35  ;;  %v2842_v41 = vld [vmem:[#allocation10 + $0x24] ss:$8 sps:$4 sm:$0xff]   ;;  %v2840_v42 = vld [vmem:[#allocation10 + $0x20] ss:$8 sps:$4 sm:$0xff]   ;;  %v2845_v43 = vld [vmem:[#allocation10 + $0x34] ss:$8 sps:$4 sm:$0xff]  }
  0xb0   :  { %v2843_v44 = vld [vmem:[#allocation10 + $0x30] ss:$8 sps:$4 sm:$0xff]   ;;  %v2848_v45 = vld [vmem:[#allocation10 + $0x44] ss:$8 sps:$4 sm:$0xff]   ;;  %v2846_v46 = vld [vmem:[#allocation10 + $0x40] ss:$8 sps:$4 sm:$0xff]  }
  0xb1   :  { %289 = vmatpush1.bf16.msra.mxu0 %v2806_v15  ;;  %443 = vmatpush1.bf16.msra.mxu1 %v2809_v17  ;;  %v2851_v47 = vld [vmem:[#allocation10 + $0x54] ss:$8 sps:$4 sm:$0xff]   ;;  %v2849_v48 = vld [vmem:[#allocation10 + $0x50] ss:$8 sps:$4 sm:$0xff]   ;;  %v2854_v49 = vld [vmem:[#allocation10 + $0x64] ss:$8 sps:$4 sm:$0xff]  }
  0xb2   :  { %290 = vmatprep.subr.bf16.mxu0 %v2810_v16  ;;  %444 = vmatprep.subr.bf16.mxu1 %v2813_v18  ;;  %v2852_v50 = vld [vmem:[#allocation10 + $0x60] ss:$8 sps:$4 sm:$0xff]   ;;  %v2857_v51 = vld [vmem:[#allocation10 + $0x74] ss:$8 sps:$4 sm:$0xff]   ;;  %v2855_v52 = vld [vmem:[#allocation10 + $0x70] ss:$8 sps:$4 sm:$0xff]  }
  0xb3   :  { %v3569_v53 = vld [vmem:[#allocation2 + $0x10] sm:$0xff]  ;;  %v3574_v57 = vsub.s32 0, %v193_v56  ;;  %v190_v58 = vld [vmem:[#allocation7] ss:$4 sm:$0x3]  ;;  %v3576_v59 = vsub.s32 1, %v193_v56 }
  0xb4   :  { %v493_v54 = vpack.c.bf16 %v3569_v53, %v3569_v53  ;;  %v344_v60 = vld [vmem:[%s3780_s4] ss:$4 sm:$0x3]  ;;  %vm3347_vm0 = vmmov 0  }
  0xb5   :  { %291 = vmatpush1.bf16.msra.mxu0 %v2812_v19  ;;  %445 = vmatpush1.bf16.msra.mxu1 %v2815_v21  ;;  %v195_v61 = vrot.slane %v190_v58, %v3574_v57  ;;  %v199_v62 = vrot.slane %v190_v58, %v3576_v59  ;;  %v349_v63 = vrot.slane %v344_v60, %v3574_v57  ;;  %v494_v16 = vld [vmem:[%s3782_s6] ss:$4 sm:$0x3] }
  0xb6   :  { %292 = vmatprep.subr.bf16.mxu0 %v2816_v20  ;;  %446 = vmatprep.subr.bf16.mxu1 %v2819_v22  ;;  %v353_v2 = vrot.slane %v344_v60, %v3576_v59  ;;  %v499_v17 = vrot.slane %v494_v16, %v3574_v57  ;;  %v503_v18 = vrot.slane %v494_v16, %v3576_v59  ;;  %v2874_v55 = vld [vmem:[#allocation8 + $0xa4] ss:$8 sps:$4 sm:$0xff]   ;;  %v2872_v56 = vld [vmem:[#allocation8 + $0xa0] ss:$8 sps:$4 sm:$0xff]   ;;  %v2877_v60 = vld [vmem:[#allocation8 + $0xb4] ss:$8 sps:$4 sm:$0xff]  }
  0xb7   :  { %v2898_v16 = vld [vmem:[#allocation5 + $0xa4] ss:$8 sps:$4 sm:$0xff]  }
  0xb9   :  { %293 = vmatpush1.bf16.msra.mxu0 %v2818_v23  ;;  %447 = vmatpush1.bf16.msra.mxu1 %v2821_v25 }
  0xba   :  { %294 = vmatprep.subr.bf16.mxu0 %v2822_v24  ;;  %448 = vmatprep.subr.bf16.mxu1 %v2825_v26  ;;  %v2858_v26 = vld [vmem:[#allocation11] sm:$0xff]  }
  0xbd   :  { %295 = vmatpush1.bf16.msra.mxu0 %v2824_v27  ;;  %449 = vmatpush1.bf16.msra.mxu1 %v2827_v29  ;;  %v3346_v27 = vmov 0.0   ;;  %v2860_v29 = vld [vmem:[#allocation11 + $0x10] sm:$0xff]  }
  0xbe   :  { %296 = vmatprep.subr.bf16.mxu0 %v2828_v28  ;;  %450 = vmatprep.subr.bf16.mxu1 %v2831_v31  ;;  %v2859_v28 = vld [vmem:[#allocation11 + $0x8] sm:$0xff]  }
  0xc1   :  { %297 = vmatpush1.bf16.msra.mxu0 %v2830_v30  ;;  %451 = vmatpush1.bf16.msra.mxu1 %v2833_v34  ;;  %v2861_v30 = vld [vmem:[#allocation11 + $0x18] sm:$0xff]  }
  0xc2   :  { %586 = vmatprep.subr.bf16.mxu0 %v2836_v33  ;;  %2669 = vmatprep.subr.bf16.mxu1 %v3346_v27 }
  0xc4   :  { %315 = vmatmul.mubr.bf16.vlgmr.msra.gmra.mrb[0].mxu0 %v189_v36  ;;  %469 = vmatmul.mubr.bf16.vlgmr.msra.gmra.mrb[0].mxu1 %v343_v38 }
  0xc5   :  { %587 = vmatpush1.bf16.msra.mxu0 %v2834_v37  ;;  %618 = vmatprep.mubr.bf16.mxu0 %v3345_v0 }
  0xc6   :  { %588 = vmatprep.subr.bf16.mxu0 %v2839_v39  ;;  %2670 = vmatpush3.bf16.msra.mxu1 %v2858_v26 }
  0xc7   :  { %2671 = vmatprep.subr.bf16.mxu1 %v3346_v27  ;;  %2685 = vmatprep.mubr.msk.bf16.mxu1 %vm3347_vm0, %v3346_v27 }
  0xc9   :  { %589 = vmatpush1.bf16.msra.mxu0 %v2837_v40 }
  0xca   :  { %590 = vmatprep.subr.bf16.mxu0 %v2842_v41  ;;  %2672 = vmatpush3.bf16.msra.mxu1 %v2859_v28 }
  0xcb   :  { %2673 = vmatprep.subr.bf16.mxu1 %v3346_v27 }
  0xcd   :  { %591 = vmatpush1.bf16.msra.mxu0 %v2840_v42 }
  0xce   :  { %592 = vmatprep.subr.bf16.mxu0 %v2845_v43  ;;  %2674 = vmatpush3.bf16.msra.mxu1 %v2860_v29  ;;  %v2862_v43 = vld [vmem:[#allocation11 + $0x20] sm:$0xff]  }
  0xcf   :  { %2675 = vmatprep.subr.bf16.mxu1 %v3346_v27 }
  0xd1   :  { %593 = vmatpush1.bf16.msra.mxu0 %v2843_v44  ;;  %v2863_v44 = vld [vmem:[#allocation11 + $0x28] sm:$0xff]  }
  0xd2   :  { %594 = vmatprep.subr.bf16.mxu0 %v2848_v45  ;;  %2676 = vmatpush3.bf16.msra.mxu1 %v2861_v30  ;;  %v2865_v45 = vld [vmem:[#allocation11 + $0x38] sm:$0xff]  }
  0xd3   :  { %2677 = vmatprep.subr.bf16.mxu1 %v3346_v27  ;;  %v2904_v30 = vld [vmem:[#allocation5 + $0xc4] ss:$8 sps:$4 sm:$0xff]  }
  0xd5   :  { %595 = vmatpush1.bf16.msra.mxu0 %v2846_v46  ;;  %v2868_v46 = vld [vmem:[#allocation8 + $0x84] ss:$8 sps:$4 sm:$0xff]  }
  0xd6   :  { %596 = vmatprep.subr.bf16.mxu0 %v2851_v47  ;;  %2678 = vmatpush3.bf16.msra.mxu1 %v2862_v43 }
  0xd7   :  { %2679 = vmatprep.subr.bf16.mxu1 %v3346_v27 }
  0xd9   :  { %597 = vmatpush1.bf16.msra.mxu0 %v2849_v48 }
  0xda   :  { %598 = vmatprep.subr.bf16.mxu0 %v2854_v49  ;;  %2680 = vmatpush3.bf16.msra.mxu1 %v2863_v44 }
  0xdb   :  { %2681 = vmatprep.subr.bf16.mxu1 %v3346_v27 }
  0xdd   :  { %599 = vmatpush1.bf16.msra.mxu0 %v2852_v50 }
  0xde   :  { %600 = vmatprep.subr.bf16.mxu0 %v2857_v51  ;;  %v2866_v51 = vld [vmem:[#allocation8 + $0x80] ss:$8 sps:$4 sm:$0xff]  }
  0xe1   :  { %601 = vmatpush1.bf16.msra.mxu0 %v2855_v52 }
  0xe4   :  { %619 = vmatmul.mubr.bf16.vlgmr.msra.gmra.mrb[4].mxu0 %v493_v54  ;;  %v2869_v54 = vld [vmem:[#allocation8 + $0x90] ss:$8 sps:$4 sm:$0xff]  }
  0xe5   :  { %915 = vmatprep.mubr.bf16.mxu0 %v3345_v0 }
 0x197   :  { %v316_v1 = vpop.f32.mrb[0].mxu0  ;;  %v470_v6 = vpop.f32.mrb[0].mxu1 }
 0x198   :  { %v317_v3 = vadd.f32 %v316_v1, %v195_v61  ;;  %v318_v4 = vpop.f32.mrb[1].mxu0  ;;  %v471_v8 = vadd.f32 %v470_v6, %v349_v63  ;;  %v472_v10 = vpop.f32.mrb[1].mxu1  ;;  %v2880_v63 = vld [vmem:[#allocation8 + $0xc4] ss:$8 sps:$4 sm:$0xff]   ;;  %v2878_v1 = vld [vmem:[#allocation8 + $0xc0] ss:$8 sps:$4 sm:$0xff]  }
 0x199   :  { %v319_v5 = vadd.f32 %v318_v4, %v199_v62  ;;  %v320_v7 = vpop.f32.mrb[2].mxu0  ;;  %v3585_v12 = vadd.f32 %v472_v10, %v353_v2  ;;  %v474_v13 = vpop.f32.mrb[2].mxu1  ;;  %v2875_v62 = vld [vmem:[#allocation8 + $0xb0] ss:$8 sps:$4 sm:$0xff]   ;;  %v2883_v2 = vld [vmem:[#allocation8 + $0xd4] ss:$8 sps:$4 sm:$0xff]  }
 0x19a   :  { %v321_v9 = vpop.f32.mrb[3].mxu0  ;;  %v627_v14 = vmul.f32 %v471_v8, %v317_v3  ;;  %v475_v15 = vpop.f32.mrb[3].mxu1  ;;  %v2886_v4 = vld [vmem:[#allocation8 + $0xe4] ss:$8 sps:$4 sm:$0xff]   ;;  %v2889_v6 = vld [vmem:[#allocation8 + $0xf4] ss:$8 sps:$4 sm:$0xff]  }
 0x19b   :  { %v323_v11 = vmul.f32 %v319_v5, %v317_v3  ;;  %v637_v42 = vmul.f32 %v3585_v12, %v3585_v12  ;;  %v2884_v5 = vld [vmem:[#allocation8 + $0xe0] ss:$8 sps:$4 sm:$0xff]   ;;  %v2887_v8 = vld [vmem:[#allocation8 + $0xf0] ss:$8 sps:$4 sm:$0xff]   ;;  %v2892_v13 = vld [vmem:[#allocation5 + $0x84] ss:$8 sps:$4 sm:$0xff]  }
 0x19c   :  { %883 = vmatprep.subr.bf16.mxu0 %v2892_v13  ;;  %v2893_v15 = vld [vmem:[#allocation5 + $0x90] ss:$8 sps:$4 sm:$0xff]  }
 0x19d   :  { %324 = vadd.xlane.f32.xlu0 %v323_v11  ;;  %v2890_v11 = vld [vmem:[#allocation5 + $0x80] ss:$8 sps:$4 sm:$0xff]  }
 0x19e   :  { %884 = vmatpush1.bf16.msra.mxu0 %v2890_v11  ;;  %v791_v11 = vld [vmem:[#allocation7 + $0x1] ss:$4 sm:$0x3] }
 0x1a1   :  { %628 = vadd.xlane.f32.xlu0 %v627_v14  ;;  %v2895_v14 = vld [vmem:[#allocation5 + $0x94] ss:$8 sps:$4 sm:$0xff]  }
 0x1a2   :  { %885 = vmatprep.subr.bf16.mxu0 %v2895_v14  ;;  %v796_v14 = vrot.slane %v791_v11, %v3574_v57 }
 0x1a3   :  { %886 = vmatpush1.bf16.msra.mxu0 %v2893_v15  ;;  %v800_v15 = vrot.slane %v791_v11, %v3576_v59  ;;  %v2963_v11 = vld [vmem:[#allocation8 + $0x154] ss:$8 sps:$4 sm:$0xff]  }
 0x1a4   :  { %887 = vmatprep.subr.bf16.mxu0 %v2898_v16 }
 0x1b7   :  { %v620_v19 = vpop.f32.mrb[4].mxu0 }
 0x1b8   :  { %v621_v20 = vadd.f32 %v620_v19, %v499_v17  ;;  %v622_v21 = vpop.f32.mrb[5].mxu0  ;;  %v2901_v17 = vld [vmem:[#allocation5 + $0xb4] ss:$8 sps:$4 sm:$0xff]   ;;  %v2463_v19 = vld [vmem:[%s3784_s8] ss:$0 sm:$0xff] }
 0x1b9   :  { %v3592_v22 = vadd.f32 %v622_v21, %v503_v18  ;;  %v624_v23 = vpop.f32.mrb[6].mxu0  ;;  %v2899_v18 = vld [vmem:[#allocation5 + $0xb0] ss:$8 sps:$4 sm:$0xff]  }
 0x1ba   :  { %v625_v24 = vpop.f32.mrb[7].mxu0  ;;  %v632_v25 = vmul.f32 %v621_v20, %v317_v3  ;;  %v2881_v3 = vld [vmem:[#allocation8 + $0xd0] ss:$8 sps:$4 sm:$0xff]  }
 0x1bb   :  { %v643_v29 = vmul.f32 %v3592_v22, %v3592_v22 }
 0x1bc   :  { %633 = vadd.xlane.f32.xlu1 %v632_v25 }
 0x22a   :  { %v325_v31 = vpop.xlane.xlu0 %324 }
 0x22b   :  { %v326_v36 = vmul.f32 %v325_v31, %v3560_v32  ;;  %v2902_v31 = vld [vmem:[#allocation5 + $0xc0] ss:$8 sps:$4 sm:$0xff]  }
 0x22e   :  { %v629_v33 = vpop.xlane.xlu0 %628 }
 0x22f   :  { %v630_v34 = vmul.f32 %v629_v33, %v3562_v35  ;;  %v2864_v35 = vld [vmem:[#allocation11 + $0x30] sm:$0xff]  }
 0x230   :  { %2682 = vmatpush3.bf16.msra.mxu1 %v2864_v35  ;;  %v2907_v33 = vld [vmem:[#allocation5 + $0xd4] ss:$8 sps:$4 sm:$0xff]  }
 0x231   :  { %v631_v38 = vadd.f32 %v630_v34, %v326_v36  ;;  %2683 = vmatprep.subr.bf16.mxu1 %v3346_v27  ;;  %v2905_v34 = vld [vmem:[#allocation5 + $0xd0] ss:$8 sps:$4 sm:$0xff]   ;;  %v3627_v36 = vld [vmem:[%s3780_s4 + $0x1] ss:$4 sm:$0x3] }
 0x232   :  { %v952_v13 = vrot.slane %v3627_v36, %v3574_v57 }
 0x234   :  { %2684 = vmatpush3.bf16.msra.mxu1 %v2865_v45 }
 0x235   :  { %1039 = vmatprep.subr.bf16.mxu1 %v2868_v46 }
 0x249   :  { %v634_v37 = vpop.xlane.xlu1 %633 }
 0x24a   :  { %v635_v39 = vmul.f32 %v634_v37, %v3569_v53  ;;  %v2871_v53 = vld [vmem:[#allocation8 + $0x94] ss:$8 sps:$4 sm:$0xff]  }
 0x24b   :  { %v2910_v37 = vld [vmem:[#allocation5 + $0xe4] ss:$8 sps:$4 sm:$0xff]  }
 0x24c   :  { %v636_v40 = vadd.f32 %v635_v39, %v631_v38  ;;  %v2913_v38 = vld [vmem:[#allocation5 + $0xf4] ss:$8 sps:$4 sm:$0xff]   ;;  %v956_v39 = vrot.slane %v3627_v36, %v3576_v59 }
 0x24e   :  { %v649_v41 = vmul.f32 %v636_v40, %v636_v40 }
 0x250   :  { %650 = vadd.xlane.f32.xlu1 %v649_v41 }
 0x254   :  { %638 = vadd.xlane.f32.xlu1 %v637_v42  ;;  %v2916_v42 = vld [vmem:[#allocation10 + $0x84] ss:$8 sps:$4 sm:$0xff]  }
 0x2dd   :  { %v651_v47 = vpop.xlane.xlu1 %650 }
 0x2de   :  { %v652_v48 = vmax.f32 %v651_v47, 1e-24 }
 0x2e0   :  { %3066 = vrsqrt.f32 %v652_v48 }
 0x2e1   :  { %v639_v58 = vpop.xlane.xlu1 %638 }
 0x2e2   :  { %v640_v61 = vmax.f32 %v639_v58, 1e-24  ;;  %v2925_v58 = vld [vmem:[#allocation10 + $0xb4] ss:$8 sps:$4 sm:$0xff]  }
 0x2e4   :  { %3068 = vrsqrt.f32 %v640_v61  ;;  %v2923_v61 = vld [vmem:[#allocation10 + $0xb0] ss:$8 sps:$4 sm:$0xff]  }
 0x2ea   :  { %v3067_v49 = vpop.eup %3066 }
 0x2eb   :  { %v654_v50 = vmul.f32 %v3067_v49, %v636_v40  ;;  %v2911_v40 = vld [vmem:[#allocation5 + $0xf0] ss:$8 sps:$4 sm:$0xff]  }
 0x2ed   :  { %v671_v52 = vpack.c.bf16 %v654_v50, %v654_v50  ;;  %v2914_v50 = vld [vmem:[#allocation10 + $0x80] ss:$8 sps:$4 sm:$0xff]  }
 0x2ee   :  { %v3069_v7 = vpop.eup %3068 }
 0x2ef   :  { %2686 = vmatmul.mubr.bf16.vlgmr.msra.gmra.mrb[4].mxu1 %v671_v52  ;;  %v3611_v9 = vmul.f32 %v3069_v7, %v3585_v12  ;;  %v2896_v12 = vld [vmem:[#allocation5 + $0xa0] ss:$8 sps:$4 sm:$0xff]   ;;  %v2919_v52 = vld [vmem:[#allocation10 + $0x94] ss:$8 sps:$4 sm:$0xff]  }
 0x2f0   :  { %1040 = vmatpush1.bf16.msra.mxu1 %v2866_v51  ;;  %1071 = vmatprep.mubr.bf16.mxu1 %v3345_v0  ;;  %v2935_v7 = vld [vmem:[#allocation10 + $0xf0] ss:$8 sps:$4 sm:$0xff]  }
 0x2f1   :  { %1041 = vmatprep.subr.bf16.mxu1 %v2871_v53  ;;  %v945_v10 = vpack.c.bf16 %v3611_v9, %v3611_v9  ;;  %888 = vmatpush1.bf16.msra.mxu0 %v2896_v12  ;;  %v2917_v53 = vld [vmem:[#allocation10 + $0x90] ss:$8 sps:$4 sm:$0xff]  }
 0x2f2   :  { %889 = vmatprep.subr.bf16.mxu0 %v2901_v17 }
 0x2f4   :  { %1042 = vmatpush1.bf16.msra.mxu1 %v2869_v54  ;;  %v2922_v54 = vld [vmem:[#allocation10 + $0xa4] ss:$8 sps:$4 sm:$0xff]  }
 0x2f5   :  { %1043 = vmatprep.subr.bf16.mxu1 %v2874_v55  ;;  %890 = vmatpush1.bf16.msra.mxu0 %v2899_v18  ;;  %v2920_v55 = vld [vmem:[#allocation10 + $0xa0] ss:$8 sps:$4 sm:$0xff]  }
 0x2f6   :  { %891 = vmatprep.subr.bf16.mxu0 %v2904_v30 }
 0x2f8   :  { %1044 = vmatpush1.bf16.msra.mxu1 %v2872_v56 }
 0x2f9   :  { %1045 = vmatprep.subr.bf16.mxu1 %v2877_v60  ;;  %892 = vmatpush1.bf16.msra.mxu0 %v2902_v31 }
 0x2fa   :  { %893 = vmatprep.subr.bf16.mxu0 %v2907_v33 }
 0x2fc   :  { %1046 = vmatpush1.bf16.msra.mxu1 %v2875_v62  ;;  %v2928_v62 = vld [vmem:[#allocation10 + $0xc4] ss:$8 sps:$4 sm:$0xff]  }
 0x2fd   :  { %1047 = vmatprep.subr.bf16.mxu1 %v2880_v63  ;;  %894 = vmatpush1.bf16.msra.mxu0 %v2905_v34  ;;  %v2926_v63 = vld [vmem:[#allocation10 + $0xc0] ss:$8 sps:$4 sm:$0xff]  }
 0x2fe   :  { %895 = vmatprep.subr.bf16.mxu0 %v2910_v37  ;;  %v2939_v37 = vld [vmem:[#allocation11 + $0x48] sm:$0xff]  }
 0x300   :  { %1048 = vmatpush1.bf16.msra.mxu1 %v2878_v1  ;;  %v2931_v1 = vld [vmem:[#allocation10 + $0xd4] ss:$8 sps:$4 sm:$0xff]  }
 0x301   :  { %1049 = vmatprep.subr.bf16.mxu1 %v2883_v2  ;;  %v2929_v2 = vld [vmem:[#allocation10 + $0xd0] ss:$8 sps:$4 sm:$0xff]  }
 0x304   :  { %1050 = vmatpush1.bf16.msra.mxu1 %v2881_v3  ;;  %v2934_v3 = vld [vmem:[#allocation10 + $0xe4] ss:$8 sps:$4 sm:$0xff]  }
 0x305   :  { %1051 = vmatprep.subr.bf16.mxu1 %v2886_v4  ;;  %v2932_v4 = vld [vmem:[#allocation10 + $0xe0] ss:$8 sps:$4 sm:$0xff]  }
 0x308   :  { %1052 = vmatpush1.bf16.msra.mxu1 %v2884_v5  ;;  %v2937_v5 = vld [vmem:[#allocation10 + $0xf4] ss:$8 sps:$4 sm:$0xff]  }
 0x309   :  { %1053 = vmatprep.subr.bf16.mxu1 %v2889_v6 }
 0x30c   :  { %1054 = vmatpush1.bf16.msra.mxu1 %v2887_v8 }
 0x30d   :  { %2689 = vmatprep.subr.bf16.mxu1 %v3346_v27 }
 0x30f   :  { %1072 = vmatmul.mubr.bf16.vlgmr.msra.gmra.mrb[8].mxu1 %v945_v10 }
 0x310   :  { %2705 = vmatprep.mubr.msk.bf16.mxu1 %vm3347_vm0, %v3346_v27 }
 0x3c2   :  { %v759_v20 = vpop.f32.mrb[4].mxu1 }
 0x3c3   :  { %v760_v21 = vadd.f32 %v2463_v19, %v759_v20  ;;  %v2687_v23 = vpop.f32.mrb[5].mxu1 }
 0x3c4   :  { %v762_v24 = vpop.f32.mrb[6].mxu1 }
 0x3c5   :  { %v765_v25 = vadd.f32 %v760_v21, %v3560_v32  ;;  %v2688_v26 = vpop.f32.mrb[7].mxu1  ;;  %v2908_v32 = vld [vmem:[#allocation5 + $0xe0] ss:$8 sps:$4 sm:$0xff]  }
 0x3c6   :  { %896 = vmatpush1.bf16.msra.mxu0 %v2908_v32  ;;  %v2505_v24 = vld [vmem:[%s3782_s6 + $0x1] ss:$4 sm:$0x3] }
 0x3c7   :  { %v766_v28 = vmul.f32 %v765_v25, %v765_v25  ;;  %897 = vmatprep.subr.bf16.mxu0 %v2913_v38  ;;  %v1108_v26 = vrot.slane %v2505_v24, %v3576_v59  ;;  %v2938_v32 = vld [vmem:[#allocation11 + $0x40] sm:$0xff]   ;;  %v2940_v38 = vld [vmem:[#allocation11 + $0x50] sm:$0xff]  }
 0x3c8   :  { %2690 = vmatpush3.bf16.msra.mxu1 %v2938_v32 }
 0x3c9   :  { %767 = vadd.xlane.f32.xlu0 %v766_v28  ;;  %2691 = vmatprep.subr.bf16.mxu1 %v3346_v27 }
 0x3ca   :  { %898 = vmatpush1.bf16.msra.mxu0 %v2911_v40 }
 0x3cb   :  { %1191 = vmatprep.subr.bf16.mxu0 %v2916_v42 }
 0x3cc   :  { %2692 = vmatpush3.bf16.msra.mxu1 %v2939_v37 }
 0x3cd   :  { %644 = vadd.xlane.f32.xlu0 %v643_v29  ;;  %2693 = vmatprep.subr.bf16.mxu1 %v3346_v27 }
 0x3d0   :  { %2694 = vmatpush3.bf16.msra.mxu1 %v2940_v38 }
 0x3d1   :  { %2695 = vmatprep.subr.bf16.mxu1 %v3346_v27 }
 0x3e2   :  { %v1073_v41 = vpop.f32.mrb[8].mxu1 }
 0x3e3   :  { %v1075_v43 = vpop.f32.mrb[9].mxu1  ;;  %v1074_v12 = vadd.f32 %v1073_v41, %v952_v13  ;;  %v2961_v13 = vld [vmem:[#allocation8 + $0x150] ss:$8 sps:$4 sm:$0xff]  }
 0x3e4   :  { %v3631_v44 = vadd.f32 %v1075_v43, %v956_v39  ;;  %v1077_v35 = vpop.f32.mrb[10].mxu1  ;;  %v2941_v39 = vld [vmem:[#allocation11 + $0x58] sm:$0xff]  }
 0x3e5   :  { %v1078_v45 = vpop.f32.mrb[11].mxu1  ;;  %2696 = vmatpush3.bf16.msra.mxu1 %v2941_v39  ;;  %v2984_v39 = vld [vmem:[#allocation5 + $0x144] ss:$8 sps:$4 sm:$0xff]  }
 0x3e6   :  { %2697 = vmatprep.subr.bf16.mxu1 %v3346_v27 }
 0x456   :  { %v768_v46 = vpop.xlane.xlu0 %767 }
 0x457   :  { %v769_v47 = vmax.f32 %v768_v46, 1e-24 }
 0x459   :  { %3070 = vrsqrt.f32 %v769_v47 }
 0x45a   :  { %v645_v56 = vpop.xlane.xlu0 %644 }
 0x45b   :  { %v646_v60 = vmax.f32 %v645_v56, 1e-24 }
 0x45d   :  { %3072 = vrsqrt.f32 %v646_v60 }
 0x463   :  { %v3071_v48 = vpop.eup %3070 }
 0x464   :  { %v3633_v49 = vmul.f32 %v3071_v48, %v765_v25  ;;  %v1104_v25 = vrot.slane %v2505_v24, %v3574_v57  ;;  %v2978_v24 = vld [vmem:[#allocation5 + $0x124] ss:$8 sps:$4 sm:$0xff]  }
 0x466   :  { %v789_v51 = vpack.c.bf16 %v3633_v49, %v3633_v49 }
 0x467   :  { %v3073_v6 = vpop.eup %3072 }
 0x468   :  { %916 = vmatmul.mubr.bf16.vlgmr.msra.gmra.mrb[8].mxu0 %v789_v51  ;;  %v648_v8 = vmul.f32 %v3073_v6, %v3592_v22  ;;  %v2942_v51 = vld [vmem:[#allocation11 + $0x60] sm:$0xff]  }
 0x469   :  { %1192 = vmatpush1.bf16.msra.mxu0 %v2914_v50  ;;  %1223 = vmatprep.mubr.bf16.mxu0 %v3345_v0  ;;  %v1242_v50 = vmul.f32 %v3631_v44, %v3631_v44 }
 0x46a   :  { %1193 = vmatprep.subr.bf16.mxu0 %v2919_v52  ;;  %v1097_v10 = vpack.c.bf16 %v648_v8, %v648_v8  ;;  %2698 = vmatpush3.bf16.msra.mxu1 %v2942_v51  ;;  %v2943_v52 = vld [vmem:[#allocation11 + $0x68] sm:$0xff]  }
 0x46b   :  { %2699 = vmatprep.subr.bf16.mxu1 %v3346_v27 }
 0x46d   :  { %1194 = vmatpush1.bf16.msra.mxu0 %v2917_v53  ;;  %v2945_v53 = vld [vmem:[#allocation11 + $0x78] sm:$0xff]  }
 0x46e   :  { %1195 = vmatprep.subr.bf16.mxu0 %v2922_v54  ;;  %2700 = vmatpush3.bf16.msra.mxu1 %v2943_v52  ;;  %v2948_v54 = vld [vmem:[#allocation8 + $0x104] ss:$8 sps:$4 sm:$0xff]  }
 0x46f   :  { %2701 = vmatprep.subr.bf16.mxu1 %v3346_v27 }
 0x471   :  { %1196 = vmatpush1.bf16.msra.mxu0 %v2920_v55 }
 0x472   :  { %1197 = vmatprep.subr.bf16.mxu0 %v2925_v58 }
 0x475   :  { %1198 = vmatpush1.bf16.msra.mxu0 %v2923_v61  ;;  %v2946_v61 = vld [vmem:[#allocation8 + $0x100] ss:$8 sps:$4 sm:$0xff]  }
 0x476   :  { %1199 = vmatprep.subr.bf16.mxu0 %v2928_v62 }
 0x479   :  { %1200 = vmatpush1.bf16.msra.mxu0 %v2926_v63  ;;  %v2951_v63 = vld [vmem:[#allocation8 + $0x114] ss:$8 sps:$4 sm:$0xff]  }
 0x47a   :  { %1201 = vmatprep.subr.bf16.mxu0 %v2931_v1  ;;  %v2949_v1 = vld [vmem:[#allocation8 + $0x110] ss:$8 sps:$4 sm:$0xff]  }
 0x47d   :  { %1202 = vmatpush1.bf16.msra.mxu0 %v2929_v2  ;;  %v2954_v2 = vld [vmem:[#allocation8 + $0x124] ss:$8 sps:$4 sm:$0xff]  }
 0x47e   :  { %1203 = vmatprep.subr.bf16.mxu0 %v2934_v3  ;;  %v2952_v3 = vld [vmem:[#allocation8 + $0x120] ss:$8 sps:$4 sm:$0xff]  }
 0x481   :  { %1204 = vmatpush1.bf16.msra.mxu0 %v2932_v4 }
 0x482   :  { %1205 = vmatprep.subr.bf16.mxu0 %v2937_v5  ;;  %v2957_v5 = vld [vmem:[#allocation8 + $0x134] ss:$8 sps:$4 sm:$0xff]  }
 0x485   :  { %1206 = vmatpush1.bf16.msra.mxu0 %v2935_v7  ;;  %v2955_v7 = vld [vmem:[#allocation8 + $0x130] ss:$8 sps:$4 sm:$0xff]  }
 0x488   :  { %1224 = vmatmul.mubr.bf16.vlgmr.msra.gmra.mrb[12].mxu0 %v1097_v10  ;;  %v2958_v10 = vld [vmem:[#allocation8 + $0x140] ss:$8 sps:$4 sm:$0xff]  }
 0x489   :  { %1521 = vmatprep.mubr.bf16.mxu0 %v3345_v0 }
 0x53b   :  { %v917_v16 = vpop.f32.mrb[8].mxu0 }
 0x53c   :  { %v918_v17 = vadd.f32 %v917_v16, %v796_v14  ;;  %v919_v18 = vpop.f32.mrb[9].mxu0  ;;  %v2966_v14 = vld [vmem:[#allocation8 + $0x164] ss:$8 sps:$4 sm:$0xff]   ;;  %v2969_v16 = vld [vmem:[#allocation8 + $0x174] ss:$8 sps:$4 sm:$0xff]  }
 0x53d   :  { %v920_v19 = vadd.f32 %v919_v18, %v800_v15  ;;  %v921_v20 = vpop.f32.mrb[10].mxu0  ;;  %v2964_v15 = vld [vmem:[#allocation8 + $0x160] ss:$8 sps:$4 sm:$0xff]  }
 0x53e   :  { %v922_v22 = vpop.f32.mrb[11].mxu0  ;;  %v1232_v21 = vmul.f32 %v1074_v12, %v918_v17  ;;  %v2970_v20 = vld [vmem:[#allocation5 + $0x100] ss:$8 sps:$4 sm:$0xff]  }
 0x53f   :  { %v924_v23 = vmul.f32 %v920_v19, %v918_v17  ;;  %v2972_v22 = vld [vmem:[#allocation5 + $0x104] ss:$8 sps:$4 sm:$0xff]  }
 0x540   :  { %1233 = vadd.xlane.f32.xlu0 %v1232_v21  ;;  %v2975_v21 = vld [vmem:[#allocation5 + $0x114] ss:$8 sps:$4 sm:$0xff]   ;;  %1489 = vmatprep.subr.bf16.mxu0 %v2972_v22 }
 0x541   :  { %925 = vadd.xlane.f32.xlu1 %v924_v23  ;;  %1490 = vmatpush1.bf16.msra.mxu0 %v2970_v20  ;;  %v2973_v23 = vld [vmem:[#allocation5 + $0x110] ss:$8 sps:$4 sm:$0xff]   ;;  %v1397_v20 = vld [vmem:[#allocation7 + $0x2] ss:$4 sm:$0x3] }
 0x542   :  { %1491 = vmatprep.subr.bf16.mxu0 %v2975_v21  ;;  %v1402_v21 = vrot.slane %v1397_v20, %v3574_v57 }
 0x545   :  { %1492 = vmatpush1.bf16.msra.mxu0 %v2973_v23  ;;  %v1406_v23 = vrot.slane %v1397_v20, %v3576_v59  ;;  %v3034_v20 = vld [vmem:[#allocation13] ss:$8 sps:$4 sm:$0xff]  }
 0x546   :  { %1493 = vmatprep.subr.bf16.mxu0 %v2978_v24 }
 0x55b   :  { %v1225_v28 = vpop.f32.mrb[12].mxu0 }
 0x55c   :  { %v1226_v29 = vadd.f32 %v1225_v28, %v1104_v25  ;;  %v1227_v30 = vpop.f32.mrb[13].mxu0  ;;  %v2981_v25 = vld [vmem:[#allocation5 + $0x134] ss:$8 sps:$4 sm:$0xff]   ;;  %v2522_v28 = vld [vmem:[%s3784_s8 + $0x1] ss:$0 sm:$0xff] }
 0x55d   :  { %v3649_v31 = vadd.f32 %v1227_v30, %v1108_v26  ;;  %v1229_v33 = vpop.f32.mrb[14].mxu0  ;;  %v2979_v26 = vld [vmem:[#allocation5 + $0x130] ss:$8 sps:$4 sm:$0xff]  }
 0x55e   :  { %v1230_v34 = vpop.f32.mrb[15].mxu0  ;;  %v1237_v36 = vmul.f32 %v1226_v29, %v918_v17  ;;  %v2967_v17 = vld [vmem:[#allocation8 + $0x170] ss:$8 sps:$4 sm:$0xff]  }
 0x55f   :  { %v1248_v38 = vmul.f32 %v3649_v31, %v3649_v31 }
 0x560   :  { %1238 = vadd.xlane.f32.xlu1 %v1237_v36 }
 0x5cd   :  { %v1234_v40 = vpop.xlane.xlu0 %1233 }
 0x5ce   :  { %v926_v41 = vpop.xlane.xlu1 %925  ;;  %v1235_v42 = vmul.f32 %v1234_v40, %v3611_v9  ;;  %v2944_v9 = vld [vmem:[#allocation11 + $0x70] sm:$0xff]   ;;  %v2982_v40 = vld [vmem:[#allocation5 + $0x140] ss:$8 sps:$4 sm:$0xff]  }
 0x5cf   :  { %v927_v43 = vmul.f32 %v926_v41, %v3633_v49  ;;  %2702 = vmatpush3.bf16.msra.mxu1 %v2944_v9  ;;  %v2987_v41 = vld [vmem:[#allocation5 + $0x154] ss:$8 sps:$4 sm:$0xff]  }
 0x5d0   :  { %2703 = vmatprep.subr.bf16.mxu1 %v3346_v27 }
 0x5d1   :  { %v1236_v45 = vadd.f32 %v1235_v42, %v927_v43  ;;  %v2985_v42 = vld [vmem:[#allocation5 + $0x150] ss:$8 sps:$4 sm:$0xff]   ;;  %v3680_v43 = vld [vmem:[%s3780_s4 + $0x2] ss:$4 sm:$0x3] }
 0x5d2   :  { %v1558_v22 = vrot.slane %v3680_v43, %v3574_v57 }
 0x5d3   :  { %2704 = vmatpush3.bf16.msra.mxu1 %v2945_v53 }
 0x5d4   :  { %1645 = vmatprep.subr.bf16.mxu1 %v2948_v54 }
 0x5ed   :  { %v1239_v35 = vpop.xlane.xlu1 %1238 }
 0x5ee   :  { %v1240_v46 = vmul.f32 %v1239_v35, %v648_v8  ;;  %v2960_v8 = vld [vmem:[#allocation8 + $0x144] ss:$8 sps:$4 sm:$0xff]  }
 0x5ef   :  { %v2990_v35 = vld [vmem:[#allocation5 + $0x164] ss:$8 sps:$4 sm:$0xff]  }
 0x5f0   :  { %v1241_v47 = vadd.f32 %v1240_v46, %v1236_v45  ;;  %v2993_v45 = vld [vmem:[#allocation5 + $0x174] ss:$8 sps:$4 sm:$0xff]   ;;  %v1562_v46 = vrot.slane %v3680_v43, %v3576_v59  ;;  %v3018_v43 = vld [vmem:[#allocation11 + $0x80] sm:$0xff]  }
 0x5f2   :  { %v1254_v48 = vmul.f32 %v1241_v47, %v1241_v47 }
 0x5f4   :  { %1255 = vadd.xlane.f32.xlu0 %v1254_v48 }
 0x5f8   :  { %1243 = vadd.xlane.f32.xlu0 %v1242_v50  ;;  %v2996_v50 = vld [vmem:[#allocation10 + $0x104] ss:$8 sps:$4 sm:$0xff]  }
 0x681   :  { %v1256_v55 = vpop.xlane.xlu0 %1255 }
 0x682   :  { %v1257_v56 = vmax.f32 %v1256_v55, 1e-24 }
 0x684   :  { %3074 = vrsqrt.f32 %v1257_v56 }
 0x685   :  { %v1244_v4 = vpop.xlane.xlu0 %1243 }
 0x686   :  { %v1245_v6 = vmax.f32 %v1244_v4, 1e-24  ;;  %v3005_v4 = vld [vmem:[#allocation10 + $0x134] ss:$8 sps:$4 sm:$0xff]  }
 0x688   :  { %3076 = vrsqrt.f32 %v1245_v6  ;;  %v3003_v6 = vld [vmem:[#allocation10 + $0x130] ss:$8 sps:$4 sm:$0xff]  }
 0x68e   :  { %v3075_v58 = vpop.eup %3074 }
 0x68f   :  { %v1259_v60 = vmul.f32 %v3075_v58, %v1241_v47  ;;  %v2991_v47 = vld [vmem:[#allocation5 + $0x170] ss:$8 sps:$4 sm:$0xff]  }
 0x691   :  { %v1277_v62 = vpack.c.bf16 %v1259_v60, %v1259_v60  ;;  %v2994_v60 = vld [vmem:[#allocation10 + $0x100] ss:$8 sps:$4 sm:$0xff]  }
 0x692   :  { %v3077_v12 = vpop.eup %3076 }
 0x693   :  { %2706 = vmatmul.mubr.bf16.vlgmr.msra.gmra.mrb[12].mxu1 %v1277_v62  ;;  %v3664_v18 = vmul.f32 %v3077_v12, %v3631_v44  ;;  %v2976_v44 = vld [vmem:[#allocation5 + $0x120] ss:$8 sps:$4 sm:$0xff]   ;;  %v2999_v62 = vld [vmem:[#allocation10 + $0x114] ss:$8 sps:$4 sm:$0xff]  }
 0x694   :  { %1646 = vmatpush1.bf16.msra.mxu1 %v2946_v61  ;;  %1677 = vmatprep.mubr.bf16.mxu1 %v3345_v0  ;;  %v3015_v12 = vld [vmem:[#allocation10 + $0x170] ss:$8 sps:$4 sm:$0xff]  }
 0x695   :  { %1647 = vmatprep.subr.bf16.mxu1 %v2951_v63  ;;  %v1551_v19 = vpack.c.bf16 %v3664_v18, %v3664_v18  ;;  %1494 = vmatpush1.bf16.msra.mxu0 %v2976_v44  ;;  %v2997_v63 = vld [vmem:[#allocation10 + $0x110] ss:$8 sps:$4 sm:$0xff]  }
 0x696   :  { %1495 = vmatprep.subr.bf16.mxu0 %v2981_v25 }
 0x698   :  { %1648 = vmatpush1.bf16.msra.mxu1 %v2949_v1  ;;  %v3002_v1 = vld [vmem:[#allocation10 + $0x124] ss:$8 sps:$4 sm:$0xff]  }
 0x699   :  { %1649 = vmatprep.subr.bf16.mxu1 %v2954_v2  ;;  %1496 = vmatpush1.bf16.msra.mxu0 %v2979_v26  ;;  %v3000_v2 = vld [vmem:[#allocation10 + $0x120] ss:$8 sps:$4 sm:$0xff]  }
 0x69a   :  { %1497 = vmatprep.subr.bf16.mxu0 %v2984_v39 }
 0x69c   :  { %1650 = vmatpush1.bf16.msra.mxu1 %v2952_v3 }
 0x69d   :  { %1651 = vmatprep.subr.bf16.mxu1 %v2957_v5  ;;  %1498 = vmatpush1.bf16.msra.mxu0 %v2982_v40 }
 0x69e   :  { %1499 = vmatprep.subr.bf16.mxu0 %v2987_v41 }
 0x6a0   :  { %1652 = vmatpush1.bf16.msra.mxu1 %v2955_v7  ;;  %v3008_v7 = vld [vmem:[#allocation10 + $0x144] ss:$8 sps:$4 sm:$0xff]  }
 0x6a1   :  { %1653 = vmatprep.subr.bf16.mxu1 %v2960_v8  ;;  %1500 = vmatpush1.bf16.msra.mxu0 %v2985_v42  ;;  %v3006_v8 = vld [vmem:[#allocation10 + $0x140] ss:$8 sps:$4 sm:$0xff]  }
 0x6a2   :  { %1501 = vmatprep.subr.bf16.mxu0 %v2990_v35  ;;  %v3020_v35 = vld [vmem:[#allocation11 + $0x90] sm:$0xff]  }
 0x6a4   :  { %1654 = vmatpush1.bf16.msra.mxu1 %v2958_v10  ;;  %v3011_v10 = vld [vmem:[#allocation10 + $0x154] ss:$8 sps:$4 sm:$0xff]  }
 0x6a5   :  { %1655 = vmatprep.subr.bf16.mxu1 %v2963_v11  ;;  %v3009_v11 = vld [vmem:[#allocation10 + $0x150] ss:$8 sps:$4 sm:$0xff]  }
 0x6a8   :  { %1656 = vmatpush1.bf16.msra.mxu1 %v2961_v13  ;;  %v3014_v13 = vld [vmem:[#allocation10 + $0x164] ss:$8 sps:$4 sm:$0xff]  }
 0x6a9   :  { %1657 = vmatprep.subr.bf16.mxu1 %v2966_v14  ;;  %v3012_v14 = vld [vmem:[#allocation10 + $0x160] ss:$8 sps:$4 sm:$0xff]  }
 0x6ac   :  { %1658 = vmatpush1.bf16.msra.mxu1 %v2964_v15  ;;  %v3017_v15 = vld [vmem:[#allocation10 + $0x174] ss:$8 sps:$4 sm:$0xff]  }
 0x6ad   :  { %1659 = vmatprep.subr.bf16.mxu1 %v2969_v16 }
 0x6b0   :  { %1660 = vmatpush1.bf16.msra.mxu1 %v2967_v17 }
 0x6b1   :  { %2709 = vmatprep.subr.bf16.mxu1 %v3346_v27 }
 0x6b3   :  { %1678 = vmatmul.mubr.bf16.vlgmr.msra.gmra.mrb[16].mxu1 %v1551_v19 }
 0x6b4   :  { %2725 = vmatprep.mubr.msk.bf16.mxu1 %vm3347_vm0, %v3346_v27  ;;  %2710 = vmatpush3.bf16.msra.mxu1 %v3018_v43  ;;  %v3057_v43 = vld [vmem:[#allocation13 + $0x74] ss:$8 sps:$4 sm:$0xff]  }
 0x6b5   :  { %2711 = vmatprep.subr.bf16.mxu1 %v3346_v27 }
 0x766   :  { %v1365_v29 = vpop.f32.mrb[12].mxu1 }
 0x767   :  { %v1366_v30 = vadd.f32 %v2522_v28, %v1365_v29  ;;  %v2707_v33 = vpop.f32.mrb[13].mxu1 }
 0x768   :  { %v1368_v34 = vpop.f32.mrb[14].mxu1 }
 0x769   :  { %v1371_v36 = vadd.f32 %v1366_v30, %v3633_v49  ;;  %v2708_v32 = vpop.f32.mrb[15].mxu1  ;;  %v2988_v49 = vld [vmem:[#allocation5 + $0x160] ss:$8 sps:$4 sm:$0xff]  }
 0x76a   :  { %1502 = vmatpush1.bf16.msra.mxu0 %v2988_v49  ;;  %v3019_v49 = vld [vmem:[#allocation11 + $0x88] sm:$0xff]  }
 0x76b   :  { %v1372_v37 = vmul.f32 %v1371_v36, %v1371_v36  ;;  %1503 = vmatprep.subr.bf16.mxu0 %v2993_v45  ;;  %2712 = vmatpush3.bf16.msra.mxu1 %v3019_v49  ;;  %v3021_v45 = vld [vmem:[#allocation11 + $0x98] sm:$0xff]  }
 0x76c   :  { %2713 = vmatprep.subr.bf16.mxu1 %v3346_v27 }
 0x76d   :  { %1373 = vadd.xlane.f32.xlu1 %v1372_v37 }
 0x76e   :  { %1504 = vmatpush1.bf16.msra.mxu0 %v2991_v47 }
 0x76f   :  { %1797 = vmatprep.subr.bf16.mxu0 %v2996_v50  ;;  %2714 = vmatpush3.bf16.msra.mxu1 %v3020_v35 }
 0x770   :  { %2715 = vmatprep.subr.bf16.mxu1 %v3346_v27 }
 0x771   :  { %1249 = vadd.xlane.f32.xlu1 %v1248_v38 }
 0x773   :  { %2716 = vmatpush3.bf16.msra.mxu1 %v3021_v45 }
 0x774   :  { %2717 = vmatprep.subr.bf16.mxu1 %v3346_v27 }
 0x786   :  { %v1679_v48 = vpop.f32.mrb[16].mxu1 }
 0x787   :  { %v1681_v51 = vpop.f32.mrb[17].mxu1  ;;  %v1680_v44 = vadd.f32 %v1679_v48, %v1558_v22  ;;  %v3036_v22 = vld [vmem:[#allocation13 + $0x4] ss:$8 sps:$4 sm:$0xff]  }
 0x788   :  { %v3684_v52 = vadd.f32 %v1681_v51, %v1562_v46  ;;  %v1683_v9 = vpop.f32.mrb[18].mxu1 }
 0x789   :  { %v1684_v53 = vpop.f32.mrb[19].mxu1 }
 0x7fa   :  { %v1374_v54 = vpop.xlane.xlu1 %1373 }
 0x7fb   :  { %v1375_v55 = vmax.f32 %v1374_v54, 1e-24 }
 0x7fd   :  { %3078 = vrsqrt.f32 %v1375_v55 }
 0x7fe   :  { %v1250_v3 = vpop.xlane.xlu1 %1249 }
 0x7ff   :  { %v1251_v5 = vmax.f32 %v1250_v3, 1e-24 }
 0x801   :  { %3080 = vrsqrt.f32 %v1251_v5 }
 0x807   :  { %v3079_v56 = vpop.eup %3078 }
 0x808   :  { %v3686_v58 = vmul.f32 %v3079_v56, %v1371_v36  ;;  %v1848_v56 = vmul.f32 %v3684_v52, %v3684_v52 }
 0x80a   :  { %v1395_v61 = vpack.c.bf16 %v3686_v58, %v3686_v58 }
 0x80b   :  { %v3081_v16 = vpop.eup %3080 }
 0x80c   :  { %1522 = vmatmul.mubr.bf16.vlgmr.msra.gmra.mrb[16].mxu0 %v1395_v61  ;;  %v1253_v17 = vmul.f32 %v3081_v16, %v3649_v31  ;;  %v3023_v61 = vld [vmem:[#allocation11 + $0xa8] sm:$0xff]  }
 0x80d   :  { %1798 = vmatpush1.bf16.msra.mxu0 %v2994_v60  ;;  %1829 = vmatprep.mubr.bf16.mxu0 %v3345_v0  ;;  %v3022_v60 = vld [vmem:[#allocation11 + $0xa0] sm:$0xff]  }
 0x80e   :  { %1799 = vmatprep.subr.bf16.mxu0 %v2999_v62  ;;  %v1703_v19 = vpack.c.bf16 %v1253_v17, %v1253_v17  ;;  %2718 = vmatpush3.bf16.msra.mxu1 %v3022_v60  ;;  %v3025_v62 = vld [vmem:[#allocation11 + $0xb8] sm:$0xff]  }
 0x80f   :  { %2719 = vmatprep.subr.bf16.mxu1 %v3346_v27 }
 0x811   :  { %1800 = vmatpush1.bf16.msra.mxu0 %v2997_v63 }
 0x812   :  { %1801 = vmatprep.subr.bf16.mxu0 %v3002_v1  ;;  %2720 = vmatpush3.bf16.msra.mxu1 %v3023_v61  ;;  %v3061_v61 = vld [vmem:[#allocation16 + $0x18] sm:$0xff]  }
 0x813   :  { %2721 = vmatprep.subr.bf16.mxu1 %v3346_v27 }
 0x815   :  { %1802 = vmatpush1.bf16.msra.mxu0 %v3000_v2 }
 0x816   :  { %1803 = vmatprep.subr.bf16.mxu0 %v3005_v4  ;;  %v3026_v4 = vld [vmem:[#allocation14] sm:$0xff]  }
 0x819   :  { %1804 = vmatpush1.bf16.msra.mxu0 %v3003_v6  ;;  %v3027_v6 = vld [vmem:[#allocation14 + $0x8] sm:$0xff]  }
 0x81a   :  { %1805 = vmatprep.subr.bf16.mxu0 %v3008_v7  ;;  %v3028_v7 = vld [vmem:[#allocation14 + $0x10] sm:$0xff]  }
 0x81d   :  { %1806 = vmatpush1.bf16.msra.mxu0 %v3006_v8 }
 0x81e   :  { %1807 = vmatprep.subr.bf16.mxu0 %v3011_v10 }
 0x821   :  { %1808 = vmatpush1.bf16.msra.mxu0 %v3009_v11  ;;  %v3029_v11 = vld [vmem:[#allocation14 + $0x18] sm:$0xff]  }
 0x822   :  { %1809 = vmatprep.subr.bf16.mxu0 %v3014_v13  ;;  %v3030_v13 = vld [vmem:[#allocation14 + $0x20] sm:$0xff]  }
 0x825   :  { %1810 = vmatpush1.bf16.msra.mxu0 %v3012_v14  ;;  %v3031_v14 = vld [vmem:[#allocation14 + $0x28] sm:$0xff]  }
 0x826   :  { %1811 = vmatprep.subr.bf16.mxu0 %v3017_v15  ;;  %v3032_v15 = vld [vmem:[#allocation14 + $0x30] sm:$0xff]  }
 0x829   :  { %1812 = vmatpush1.bf16.msra.mxu0 %v3015_v12  ;;  %v3033_v12 = vld [vmem:[#allocation14 + $0x38] sm:$0xff]  }
 0x82a   :  { %2093 = vmatprep.subr.bf16.mxu0 %v3036_v22 }
 0x82c   :  { %1830 = vmatmul.mubr.bf16.vlgmr.msra.gmra.mrb[20].mxu0 %v1703_v19 }
 0x82d   :  { %2125 = vmatprep.mubr.bf16.mxu0 %v3345_v0  ;;  %v2564_v0 = vld [vmem:[%s3782_s6 + $0x2] ss:$4 sm:$0x3]  ;;  %2094 = vmatpush1.bf16.msra.mxu0 %v3034_v20 }
 0x82e   :  { %v1710_v34 = vrot.slane %v2564_v0, %v3574_v57  ;;  %v1714_v36 = vrot.slane %v2564_v0, %v3576_v59 }
 0x8df   :  { %v1523_v24 = vpop.f32.mrb[16].mxu0 }
 0x8e0   :  { %v1524_v25 = vadd.f32 %v1523_v24, %v1402_v21  ;;  %v1525_v26 = vpop.f32.mrb[17].mxu0  ;;  %v3039_v21 = vld [vmem:[#allocation13 + $0x14] ss:$8 sps:$4 sm:$0xff]   ;;  %v3042_v24 = vld [vmem:[#allocation13 + $0x24] ss:$8 sps:$4 sm:$0xff]  }
 0x8e1   :  { %v1526_v28 = vadd.f32 %v1525_v26, %v1406_v23  ;;  %v1527_v29 = vpop.f32.mrb[18].mxu0  ;;  %v3037_v23 = vld [vmem:[#allocation13 + $0x10] ss:$8 sps:$4 sm:$0xff]   ;;  %2095 = vmatprep.subr.bf16.mxu0 %v3039_v21  ;;  %v2581_v26 = vld [vmem:[%s3784_s8 + $0x2] ss:$0 sm:$0xff] }
 0x8e2   :  { %v1528_v31 = vpop.f32.mrb[19].mxu0  ;;  %v1838_v30 = vmul.f32 %v1680_v44, %v1524_v25  ;;  %2096 = vmatpush1.bf16.msra.mxu0 %v3037_v23  ;;  %v3040_v44 = vld [vmem:[#allocation13 + $0x20] ss:$8 sps:$4 sm:$0xff]  }
 0x8e3   :  { %v1530_v33 = vmul.f32 %v1526_v28, %v1524_v25  ;;  %2097 = vmatprep.subr.bf16.mxu0 %v3042_v24 }
 0x8e4   :  { %1839 = vadd.xlane.f32.xlu1 %v1838_v30 }
 0x8e5   :  { %1531 = vadd.xlane.f32.xlu0 %v1530_v33 }
 0x8e6   :  { %2098 = vmatpush1.bf16.msra.mxu0 %v3040_v44 }
 0x8ff   :  { %v1831_v32 = vpop.f32.mrb[20].mxu0 }
 0x900   :  { %v1832_v37 = vadd.f32 %v1831_v32, %v1710_v34  ;;  %v1833_v38 = vpop.f32.mrb[21].mxu0  ;;  %v3048_v32 = vld [vmem:[#allocation13 + $0x44] ss:$8 sps:$4 sm:$0xff]  }
 0x901   :  { %v3702_v39 = vadd.f32 %v1833_v38, %v1714_v36  ;;  %v1835_v40 = vpop.f32.mrb[22].mxu0  ;;  %v3051_v38 = vld [vmem:[#allocation13 + $0x54] ss:$8 sps:$4 sm:$0xff]  }
 0x902   :  { %v1836_v41 = vpop.f32.mrb[23].mxu0  ;;  %v1843_v42 = vmul.f32 %v1832_v37, %v1524_v25  ;;  %v3045_v25 = vld [vmem:[#allocation13 + $0x34] ss:$8 sps:$4 sm:$0xff]   ;;  %v3046_v37 = vld [vmem:[#allocation13 + $0x40] ss:$8 sps:$4 sm:$0xff]  }
 0x903   :  { %2099 = vmatprep.subr.bf16.mxu0 %v3045_v25  ;;  %v1854_v36 = vmul.f32 %v3702_v39, %v3702_v39  ;;  %v3049_v40 = vld [vmem:[#allocation13 + $0x50] ss:$8 sps:$4 sm:$0xff]   ;;  %v3052_v41 = vld [vmem:[#allocation13 + $0x60] ss:$8 sps:$4 sm:$0xff]  }
 0x904   :  { %1844 = vadd.xlane.f32.xlu0 %v1843_v42  ;;  %v3054_v42 = vld [vmem:[#allocation13 + $0x64] ss:$8 sps:$4 sm:$0xff]  }
 0x971   :  { %v1840_v46 = vpop.xlane.xlu1 %1839 }
 0x972   :  { %v1532_v47 = vpop.xlane.xlu0 %1531  ;;  %v1841_v48 = vmul.f32 %v1840_v46, %v3664_v18  ;;  %v3024_v18 = vld [vmem:[#allocation11 + $0xb0] sm:$0xff]  }
 0x973   :  { %v1533_v50 = vmul.f32 %v1532_v47, %v3686_v58  ;;  %2722 = vmatpush3.bf16.msra.mxu1 %v3024_v18  ;;  %v3062_v18 = vld [vmem:[#allocation16 + $0x20] sm:$0xff]  }
 0x974   :  { %2723 = vmatprep.subr.bf16.mxu1 %v3346_v27 }
 0x975   :  { %v1842_v9 = vadd.f32 %v1841_v48, %v1533_v50 }
 0x977   :  { %2724 = vmatpush3.bf16.msra.mxu1 %v3025_v62  ;;  %v3063_v62 = vld [vmem:[#allocation16 + $0x28] sm:$0xff]  }
 0x978   :  { %2729 = vmatprep.subr.bf16.mxu1 %v3346_v27 }
 0x991   :  { %v1845_v51 = vpop.xlane.xlu0 %1844 }
 0x992   :  { %v1846_v53 = vmul.f32 %v1845_v51, %v1253_v17 }
 0x994   :  { %v1847_v54 = vadd.f32 %v1846_v53, %v1842_v9  ;;  %v3058_v9 = vld [vmem:[#allocation16] sm:$0xff]  }
 0x996   :  { %v1860_v55 = vmul.f32 %v1847_v54, %v1847_v54 }
 0x998   :  { %1861 = vadd.xlane.f32.xlu1 %v1860_v55  ;;  %v3060_v55 = vld [vmem:[#allocation16 + $0x10] sm:$0xff]  }
 0x99c   :  { %1849 = vadd.xlane.f32.xlu1 %v1848_v56 }
 0xa25   :  { %v1862_v63 = vpop.xlane.xlu1 %1861 }
 0xa26   :  { %v1863_v1 = vmax.f32 %v1862_v63, 1e-24  ;;  %v3064_v63 = vld [vmem:[#allocation16 + $0x30] sm:$0xff]  }
 0xa28   :  { %3082 = vrsqrt.f32 %v1863_v1 }
 0xa29   :  { %v1850_v8 = vpop.xlane.xlu1 %1849 }
 0xa2a   :  { %v1851_v10 = vmax.f32 %v1850_v8, 1e-24 }
 0xa2c   :  { %3084 = vrsqrt.f32 %v1851_v10 }
 0xa32   :  { %v3083_v2 = vpop.eup %3082 }
 0xa33   :  { %v1865_v3 = vmul.f32 %v3083_v2, %v1847_v54  ;;  %v3059_v54 = vld [vmem:[#allocation16 + $0x8] sm:$0xff]   ;;  %v3065_v2 = vld [vmem:[#allocation16 + $0x38] sm:$0xff]  }
 0xa35   :  { %v1883_v5 = vpack.c.bf16 %v1865_v3, %v1865_v3 }
 0xa36   :  { %v3085_v16 = vpop.eup %3084 }
 0xa37   :  { %2726 = vmatmul.mubr.bf16.vlgmr.msra.gmra.mrb[20].mxu1 %v1883_v5  ;;  %v3726_v17 = vmul.f32 %v3085_v16, %v3684_v52  ;;  %v3043_v52 = vld [vmem:[#allocation13 + $0x30] ss:$8 sps:$4 sm:$0xff]   ;;  %v2001_v5 = vld [vmem:[%s3786_s10] sm:$0x3] }
 0xa38   :  { %2730 = vmatpush3.bf16.msra.mxu1 %v3026_v4  ;;  %2745 = vmatprep.mubr.msk.bf16.mxu1 %vm3347_vm0, %v3346_v27  ;;  %v2010_v8 = vrot.slane %v2001_v5, %v3576_v59 }
 0xa39   :  { %2731 = vmatprep.subr.bf16.mxu1 %v3346_v27  ;;  %v2150_v19 = vpack.c.bf16 %v3726_v17, %v3726_v17  ;;  %2100 = vmatpush1.bf16.msra.mxu0 %v3043_v52 }
 0xa3a   :  { %2101 = vmatprep.subr.bf16.mxu0 %v3048_v32 }
 0xa3c   :  { %2732 = vmatpush3.bf16.msra.mxu1 %v3027_v6  ;;  %v2006_v6 = vrot.slane %v2001_v5, %v3574_v57  ;;  %v2615_v57 = vld [vmem:[%s3790_s14] ss:$0 sm:$0xff] }
 0xa3d   :  { %2733 = vmatprep.subr.bf16.mxu1 %v3346_v27  ;;  %2102 = vmatpush1.bf16.msra.mxu0 %v3046_v37 }
 0xa3e   :  { %2103 = vmatprep.subr.bf16.mxu0 %v3051_v38 }
 0xa40   :  { %2734 = vmatpush3.bf16.msra.mxu1 %v3028_v7  ;;  %v2606_v7 = vld [vmem:[%s3788_s12] ss:$0 sm:$0xff]  ;;  %s3348_s12 = smov [#allocation17]  }
 0xa41   :  { %2735 = vmatprep.subr.bf16.mxu1 %v3346_v27  ;;  %2104 = vmatpush1.bf16.msra.mxu0 %v3049_v40  ;;  %s2402_s14 = sshll.u32 %s3348_s12, 4  ;;  %s2403_s14 = int_to_ptr.vmem [resolvable:$true] %s2402_s14 }
 0xa42   :  { %2105 = vmatprep.subr.bf16.mxu0 %v3054_v42  ;;  %s3298_s30 = scalar_lea.vmem %s2403_s14, 128  ;;  %p3303_p3 = scmp.lt.s32.totalorder %s2403_s14, %s2403_s14 }
 0xa43   :  { %p3299_p2 = scmp.ne.s32.totalorder %s2403_s14, %s3298_s30  ;;  %p3304_p4 = scmp.lt.s32.totalorder %s3298_s30, %s3298_s30 }
 0xa44   :  { %2736 = vmatpush3.bf16.msra.mxu1 %v3029_v11 }
 0xa45   :  { %2737 = vmatprep.subr.bf16.mxu1 %v3346_v27  ;;  %2106 = vmatpush1.bf16.msra.mxu0 %v3052_v41  ;;  %p3305_p5 = por %p3304_p4, %p3303_p3 }
 0xa46   :  { %2107 = vmatprep.subr.bf16.mxu0 %v3057_v43 }
 0xa47   :  { %p3306_p6 = pnand %p3305_p5, %p3299_p2 }
 0xa48   :  { %2738 = vmatpush3.bf16.msra.mxu1 %v3030_v13 }
 0xa49   :  { %2739 = vmatprep.subr.bf16.mxu1 %v3346_v27 }
 0xa4c   :  { %2740 = vmatpush3.bf16.msra.mxu1 %v3031_v14 }
 0xa4d   :  { %2741 = vmatprep.subr.bf16.mxu1 %v3346_v27 }
 0xa50   :  { %2742 = vmatpush3.bf16.msra.mxu1 %v3032_v15 }
 0xa51   :  { %2743 = vmatprep.subr.bf16.mxu1 %v3346_v27 }
 0xa54   :  { %2744 = vmatpush3.bf16.msra.mxu1 %v3033_v12 }
 0xa57   :  { %2746 = vmatmul.mubr.bf16.vlgmr.msra.gmra.mrb[24].mxu1 %v2150_v19 }
 0xb0a   :  { %v1971_v28 = vpop.f32.mrb[20].mxu1 }
 0xb0b   :  { %v1972_v29 = vadd.f32 %v2581_v26, %v1971_v28  ;;  %v2727_v31 = vpop.f32.mrb[21].mxu1 }
 0xb0c   :  { %v1974_v30 = vpop.f32.mrb[22].mxu1 }
 0xb0d   :  { %v1977_v33 = vadd.f32 %v1972_v29, %v3686_v58  ;;  %v2728_v0 = vpop.f32.mrb[23].mxu1  ;;  %v3055_v58 = vld [vmem:[#allocation13 + $0x70] ss:$8 sps:$4 sm:$0xff]  }
 0xb0e   :  { %2108 = vmatpush1.bf16.msra.mxu0 %v3055_v58 }
 0xb0f   :  { %v1978_v34 = vmul.f32 %v1977_v33, %v1977_v33  ;;  %2749 = vmatprep.subr.bf16.mxu0 %v3346_v27 }
 0xb11   :  { %1979 = vadd.xlane.f32.xlu0 %v1978_v34 }
 0xb15   :  { %1855 = vadd.xlane.f32.xlu0 %v1854_v36 }
 0xb2a   :  { %v2240_v49 = vpop.f32.mrb[24].mxu1 }
 0xb2b   :  { %v2747_v35 = vpop.f32.mrb[25].mxu1  ;;  %v2241_v11 = vadd.f32 %v2606_v7, %v2240_v49 }
 0xb2c   :  { %v2243_v45 = vpop.f32.mrb[26].mxu1 }
 0xb2d   :  { %v2748_v46 = vpop.f32.mrb[27].mxu1 }
 0xb9e   :  { %v1980_v47 = vpop.xlane.xlu0 %1979 }
 0xb9f   :  { %v1981_v48 = vmax.f32 %v1980_v47, 1e-24 }
 0xba1   :  { %3086 = vrsqrt.f32 %v1981_v48 }
 0xba2   :  { %v1856_v56 = vpop.xlane.xlu0 %1855 }
 0xba3   :  { %v1857_v60 = vmax.f32 %v1856_v56, 1e-24 }
 0xba5   :  { %3088 = vrsqrt.f32 %v1857_v60 }
 0xbab   :  { %v3087_v50 = vpop.eup %3086 }
 0xbac   :  { %v3737_v51 = vmul.f32 %v3087_v50, %v1977_v33 }
 0xbae   :  { %v2000_v53 = vpack.c.bf16 %v3737_v51, %v3737_v51 }
 0xbaf   :  { %v3089_v1 = vpop.eup %3088 }
 0xbb0   :  { %2126 = vmatmul.mubr.bf16.vlgmr.msra.gmra.mrb[24].mxu0 %v2000_v53  ;;  %v1859_v3 = vmul.f32 %v3089_v1, %v3702_v39 }
 0xbb1   :  { %2750 = vmatpush3.bf16.msra.mxu0 %v3058_v9  ;;  %2765 = vmatprep.mubr.msk.bf16.mxu0 %vm3347_vm0, %v3346_v27 }
 0xbb2   :  { %2751 = vmatprep.subr.bf16.mxu0 %v3346_v27  ;;  %v2268_v4 = vpack.c.bf16 %v1859_v3, %v1859_v3 }
 0xbb5   :  { %2752 = vmatpush3.bf16.msra.mxu0 %v3059_v54 }
 0xbb6   :  { %2753 = vmatprep.subr.bf16.mxu0 %v3346_v27 }
 0xbb9   :  { %2754 = vmatpush3.bf16.msra.mxu0 %v3060_v55 }
 0xbba   :  { %2755 = vmatprep.subr.bf16.mxu0 %v3346_v27 }
 0xbbd   :  { %2756 = vmatpush3.bf16.msra.mxu0 %v3061_v61 }
 0xbbe   :  { %2757 = vmatprep.subr.bf16.mxu0 %v3346_v27 }
 0xbc1   :  { %2758 = vmatpush3.bf16.msra.mxu0 %v3062_v18 }
 0xbc2   :  { %2759 = vmatprep.subr.bf16.mxu0 %v3346_v27 }
 0xbc5   :  { %2760 = vmatpush3.bf16.msra.mxu0 %v3063_v62 }
 0xbc6   :  { %2761 = vmatprep.subr.bf16.mxu0 %v3346_v27 }
 0xbc9   :  { %2762 = vmatpush3.bf16.msra.mxu0 %v3064_v63 }
 0xbca   :  { %2763 = vmatprep.subr.bf16.mxu0 %v3346_v27 }
 0xbcd   :  { %2764 = vmatpush3.bf16.msra.mxu0 %v3065_v2 }
 0xbd0   :  { %2766 = vmatmul.mubr.bf16.vlgmr.msra.gmra.mrb[28].mxu0 %v2268_v4 }
 0xc83   :  { %v2127_v10 = vpop.f32.mrb[24].mxu0 }
 0xc84   :  { %v2128_v27 = vadd.f32 %v2127_v10, %v2006_v6  ;;  %v2129_v13 = vpop.f32.mrb[25].mxu0 }
 0xc85   :  { %v2130_v39 = vadd.f32 %v2129_v13, %v2010_v8  ;;  %v2131_v14 = vpop.f32.mrb[26].mxu0 }
 0xc86   :  { %v2132_v15 = vpop.f32.mrb[27].mxu0  ;;  %v2246_v16 = vmul.f32 %v2241_v11, %v2128_v27 }
 0xc87   :  { %v2249_v12 = vmul.f32 %v2130_v39, %v2128_v27 }
 0xc88   :  { %2247 = vadd.xlane.f32.xlu1 %v2246_v16 }
 0xc89   :  { %2250 = vadd.xlane.f32.xlu0 %v2249_v12 }
 0xca3   :  { %v2358_v19 = vpop.f32.mrb[28].mxu0 }
 0xca4   :  { %v2359_v20 = vadd.f32 %v2615_v57, %v2358_v19  ;;  %v2767_v22 = vpop.f32.mrb[29].mxu0 }
 0xca5   :  { %v2361_v21 = vpop.f32.mrb[30].mxu0 }
 0xca6   :  { %v2768_v59 = vpop.f32.mrb[31].mxu0  ;;  %v2364_v23 = vmul.f32 %v2359_v20, %v2128_v27 }
 0xca8   :  { %2365 = vadd.xlane.f32.xlu1 %v2364_v23 }
 0xd15   :  { %v2248_v24 = vpop.xlane.xlu1 %2247 }
 0xd16   :  { %v2251_v44 = vpop.xlane.xlu0 %2250 }
 0xd17   :  { %v2367_v25 = vmax.f32 %v2248_v24, %v2251_v44 }
 0xd35   :  { %v2366_v52 = vpop.xlane.xlu1 %2365 }
 0xd36   :  { %v2368_v26 = vmax.f32 %v2367_v25, %v2366_v52 }
 0xd38   :  { %v2369_v28 = vsub.f32 %v2248_v24, %v2368_v26  ;;  %v2372_v29 = vsub.f32 %v2251_v44, %v2368_v26  ;;  %v2375_v31 = vsub.f32 %v2366_v52, %v2368_v26 }
 0xd3a   :  { %v2370_v30 = vmul.f32 1.442695, %v2369_v28  ;;  %v2373_v33 = vmul.f32 1.442695, %v2372_v29  ;;  %v2376_v0 = vmul.f32 1.442695, %v2375_v31 }
 0xd3c   :  { %3090 = vpow2.f32 %v2370_v30 }
 0xd3d   :  { %3092 = vpow2.f32 %v2373_v33 }
 0xd3e   :  { %3094 = vpow2.f32 %v2376_v0 }
 0xd46   :  { %v3091_v34 = vpop.eup %3090 }
 0xd47   :  { %v3093_v36 = vpop.eup %3092 }
 0xd48   :  { %v2378_v32 = vadd.f32 %v3093_v36, %v3091_v34  ;;  %v3095_v37 = vpop.eup %3094 }
 0xd4a   :  { %v2379_v38 = vadd.f32 %v3095_v37, %v2378_v32 }
 0xd4c   :  { %3096 = vrcp.f32 %v2379_v38 }
 0xd56   :  { %v3097_v40 = vpop.eup %3096 }
 0xd57   :  { %v2381_v41 = vmul.f32 %v3097_v40, %v3093_v36  ;;  %v2383_v42 = vmul.f32 %v3097_v40, %v3091_v34  ;;  %v2386_v43 = vmul.f32 %v3097_v40, %v3095_v37 }
 0xd59   :  { %v2382_v58 = vmul.f32 %v2381_v41, %v3737_v51  ;;  %v2384_v49 = vmul.f32 %v2383_v42, %v3726_v17  ;;  %v2387_v45 = vmul.f32 %v2386_v43, %v1859_v3 }
 0xd5b   :  { %v2385_v35 = vadd.f32 %v2384_v49, %v2382_v58 }
 0xd5d   :  { %v2388_v46 = vadd.f32 %v2387_v45, %v2385_v35 }
 0xd5f   :  { %v2389_v47 = vmul.f32 %v2388_v46, %v2388_v46 }
 0xd61   :  { %2390 = vadd.xlane.f32.xlu0 %v2389_v47 }
 0xdee   :  { %v2391_v48 = vpop.xlane.xlu0 %2390 }
 0xdef   :  { %v2392_v50 = vmax.f32 %v2391_v48, 1e-24 }
 0xdf1   :  { %3098 = vrsqrt.f32 %v2392_v50 }
 0xdfb   :  { %v3099_v9 = vpop.eup %3098 }
 0xdfc   :  { %v2394_v53 = vmul.f32 %v3099_v9, %v2388_v46 }
 0xdfe   :  { %2395 = vst [vmem:[#allocation17] sm:$0xff] %v2394_v53 }
 0xdff   :  { %3309 = shalt.err (!%p3306_p6)
}
 0xe00   :  { %s3794_s9 = sld [smem:[#allocation24_spill]] }
 0xe06   :  { %s3310_s28 = scalar_lea.hbm %s3794_s9, 128 }
 0xe07   :  { %p3311_p7 = scmp.ne.s32.totalorder %s3794_s9, %s3310_s28  ;;  %p3314_p8 = scmp.lt.u32.totalorder %s3310_s28, %s3794_s9 }
 0xe09   :  { %p3316_p9 = pnand %p3314_p8, %p3311_p7 }
 0xe0b   :  { %3319 = shalt.err (!%p3316_p9)
}
 0xe0c   :  { %2405 = dma.vmem_to_hbm [thread:$0]  %s2403_s14, 128, %s3794_s9, [#allocation4]  }
 0xe0d   :  { %3330 = dma.done.wait [#allocation4], 128  }
 0xe0e   :  { %3331 = vsyncadd [#allocation4], 4294967168 }
 0xe0f   :  { %2409 = vsyncpa [#allocation3], 1 }
 0xe10   :  { %2410 = vsyncpa [#allocation6], 1 }
 0xe11   :  { %2411 = vsyncpa [#allocation9], 1 }
 0xe12   :  { %2412 = vsyncpa [#allocation12], 1 }
 0xe13   :  { %2413 = vsyncpa [#allocation15], 1 }
 0xe14   :  { %2414 = vsyncpa [#allocation4], 1 }

// kernel: tpu_custom_call.1
= control target key start
LH: loop header
LB: loop body
LE: loop exit
PB: predicated region body
PF: predicated region fallthrough
CT: control target
= control target key end

     0   :  { %s3776_s0 = inlined_call_operand.hbm [shape: f32[8,384], index: 0, kind: input, shape index: {}]   ;;  %s3777_s1 = inlined_call_operand.hbm [shape: bf16[3,128,256], index: 1, kind: input, shape index: {}]   ;;  %s3778_s2 = inlined_call_operand.hbm [shape: f32[3,256], index: 2, kind: input, shape index: {}]   ;;  %s3779_s3 = inlined_call_operand.hbm [shape: bf16[3,128,256], index: 3, kind: input, shape index: {}]   ;;  %s3780_s4 = inlined_call_operand.vmem [shape: f32[3,256], index: 4, kind: input, shape index: {}]   ;;  %s3781_s5 = inlined_call_operand.hbm [shape: bf16[3,128,256], index: 5, kind: input, shape index: {}]   ;;  %s3782_s6 = inlined_call_operand.vmem [shape: f32[3,256], index: 6, kind: input, shape index: {}]   ;;  %s3783_s7 = inlined_call_operand.hbm [shape: bf16[3,128,128], index: 7, kind: input, shape index: {}]   ;;  %s3784_s8 = inlined_call_operand.vmem [shape: f32[3,128], index: 8, kind: input, shape index: {}]   ;;  %s3785_s9 = inlined_call_operand.hbm [shape: bf16[128,256], index: 9, kind: input, shape index: {}]   ;;  %s3786_s10 = inlined_call_operand.vmem [shape: f32[1,256], index: 10, kind: input, shape index: {}]   ;;  %s3787_s11 = inlined_call_operand.hbm [shape: bf16[1,128,128], index: 11, kind: input, shape index: {}]   ;;  %s3788_s12 = inlined_call_operand.vmem [shape: f32[1,128], index: 12, kind: input, shape index: {}]   ;;  %s3789_s13 = inlined_call_operand.hbm [shape: bf16[1,128,128], index: 13, kind: input, shape index: {}]   ;;  %s3790_s14 = inlined_call_operand.vmem [shape: f32[1,128], index: 14, kind: input, shape index: {}]   ;;  %s3791_s15 = inlined_call_operand.hbm [shape: f32[8,128], index: 15, kind: output, shape index: {}]  }
   0x1   :  { %3793 = sst [smem:[#allocation24_spill]] %s3791_s15 }
   0x2   :  { %20 = vsyncpa [#allocation3], 0 }
   0x3   :  { %21 = vsyncpa [#allocation6], 0 }
   0x4   :  { %22 = vsyncpa [#allocation9], 0 }
   0x5   :  { %23 = vsyncpa [#allocation12], 0 }
   0x6   :  { %24 = vsyncpa [#allocation15], 0 }
   0x7   :  { %25 = vsyncpa [#allocation4], 0  ;;  %s3332_s18 = smov [#allocation5]   ;;  %s3100_s22 = scalar_lea.hbm %s3777_s1, 6144 }
   0x8   :  { %s41_s19 = sshll.u32 %s3332_s18, 4  ;;  %p3101_p0 = scmp.ne.s32.totalorder %s3777_s1, %s3100_s22  ;;  %s42_s19 = int_to_ptr.vmem [resolvable:$true] %s41_s19 }
   0x9   :  { %p3104_p1 = scmp.lt.u32.totalorder %s3100_s22, %s3777_s1 }
   0xb   :  { %p3106_p2 = pnand %p3104_p1, %p3101_p0 }
   0xd   :  { %3109 = shalt.err (!%p3106_p2)
}
   0xe   :  { %s3110_s27 = scalar_lea.vmem %s42_s19, 6144  ;;  %p3115_p4 = scmp.lt.s32.totalorder %s42_s19, %s42_s19 }
   0xf   :  { %p3111_p3 = scmp.ne.s32.totalorder %s42_s19, %s3110_s27  ;;  %p3116_p5 = scmp.lt.s32.totalorder %s3110_s27, %s3110_s27 }
  0x11   :  { %p3117_p6 = por %p3116_p5, %p3115_p4 }
  0x13   :  { %p3118_p7 = pnand %p3117_p6, %p3111_p3 }
  0x15   :  { %3121 = shalt.err (!%p3118_p7)
}
  0x16   :  { %s3333_s28 = smov 128   ;;  %s3334_s29 = smov 8  }
  0x17   :  { %47 = dma.hbm_to_vmem [thread:$0]  %s3777_s1, 6144, %s42_s19, [#allocation6], %s3333_s28, %s3333_s28, %s3334_s29  }
  0x18   :  { %s3335_s17 = smov [#allocation8]   ;;  %s3336_s20 = smov [#allocation11]  }
  0x19   :  { %s63_s18 = sshll.u32 %s3335_s17, 4  ;;  %s91_s21 = sshll.u32 %s3336_s20, 4  ;;  %s64_s18 = int_to_ptr.vmem [resolvable:$true] %s63_s18  ;;  %s92_s21 = int_to_ptr.vmem [resolvable:$true] %s91_s21 }
  0x1a   :  { %s3122_s24 = scalar_lea.hbm %s3779_s3, 6144 }
  0x1b   :  { %p3123_p8 = scmp.ne.s32.totalorder %s3779_s3, %s3122_s24  ;;  %p3126_p9 = scmp.lt.u32.totalorder %s3122_s24, %s3779_s3 }
  0x1d   :  { %p3128_p10 = pnand %p3126_p9, %p3123_p8 }
  0x1f   :  { %3131 = shalt.err (!%p3128_p10)
}
  0x20   :  { %s3132_s1 = scalar_lea.vmem %s64_s18, 6144  ;;  %p3137_p12 = scmp.lt.s32.totalorder %s64_s18, %s64_s18 }
  0x21   :  { %p3133_p11 = scmp.ne.s32.totalorder %s64_s18, %s3132_s1  ;;  %p3138_p13 = scmp.lt.s32.totalorder %s3132_s1, %s3132_s1 }
  0x23   :  { %p3139_p0 = por %p3138_p13, %p3137_p12 }
  0x25   :  { %p3140_p1 = pnand %p3139_p0, %p3133_p11 }
  0x27   :  { %3143 = shalt.err (!%p3140_p1)
}
  0x28   :  { %69 = dma.hbm_to_vmem [thread:$0]  %s3779_s3, 6144, %s64_s18, [#allocation9], %s3333_s28, %s3333_s28, %s3334_s29  }
  0x29   :  { %s3144_s17 = scalar_lea.hbm %s3783_s7, 3072 }
  0x2a   :  { %p3145_p2 = scmp.ne.s32.totalorder %s3783_s7, %s3144_s17  ;;  %p3148_p3 = scmp.lt.u32.totalorder %s3144_s17, %s3783_s7 }
  0x2c   :  { %p3150_p4 = pnand %p3148_p3, %p3145_p2 }
  0x2e   :  { %3153 = shalt.err (!%p3150_p4)
}
  0x2f   :  { %s3154_s25 = scalar_lea.vmem %s92_s21, 3072  ;;  %p3159_p6 = scmp.lt.s32.totalorder %s92_s21, %s92_s21 }
  0x30   :  { %p3155_p5 = scmp.ne.s32.totalorder %s92_s21, %s3154_s25  ;;  %p3160_p7 = scmp.lt.s32.totalorder %s3154_s25, %s3154_s25 }
  0x32   :  { %p3161_p8 = por %p3160_p7, %p3159_p6 }
  0x34   :  { %p3162_p9 = pnand %p3161_p8, %p3155_p5 }
  0x36   :  { %3165 = shalt.err (!%p3162_p9)
}
  0x37   :  { %s3337_s3 = smov 64   ;;  %s3338_s18 = smov 4  }
  0x38   :  { %97 = dma.hbm_to_vmem [thread:$0]  %s3783_s7, 3072, %s92_s21, [#allocation12], %s3337_s3, %s3337_s3, %s3338_s18  }
  0x39   :  { %s3339_s1 = smov [#allocation14]   ;;  %s3340_s30 = smov [#allocation2]  }
  0x3a   :  { %s119_s19 = sshll.u32 %s3339_s1, 4  ;;  %s32_s16 = sshll.u32 %s3340_s30, 4  ;;  %s120_s19 = int_to_ptr.vmem [resolvable:$true] %s119_s19  ;;  %s33_s16 = int_to_ptr.vmem [resolvable:$true] %s32_s16 }
  0x3b   :  { %s3166_s20 = scalar_lea.hbm %s3787_s11, 1024 }
  0x3c   :  { %p3167_p10 = scmp.ne.s32.totalorder %s3787_s11, %s3166_s20  ;;  %p3170_p11 = scmp.lt.u32.totalorder %s3166_s20, %s3787_s11 }
  0x3e   :  { %p3172_p12 = pnand %p3170_p11, %p3167_p10 }
  0x40   :  { %3175 = shalt.err (!%p3172_p12)
}
  0x41   :  { %s3176_s7 = scalar_lea.vmem %s120_s19, 1024  ;;  %p3181_p0 = scmp.lt.s32.totalorder %s120_s19, %s120_s19 }
  0x42   :  { %p3177_p13 = scmp.ne.s32.totalorder %s120_s19, %s3176_s7  ;;  %p3182_p1 = scmp.lt.s32.totalorder %s3176_s7, %s3176_s7 }
  0x44   :  { %p3183_p2 = por %p3182_p1, %p3181_p0 }
  0x46   :  { %p3184_p3 = pnand %p3183_p2, %p3177_p13 }
  0x48   :  { %3187 = shalt.err (!%p3184_p3)
}
  0x49   :  { %125 = dma.hbm_to_vmem [thread:$0]  %s3787_s11, 1024, %s120_s19, [#allocation15], %s3337_s3, %s3337_s3, %s3338_s18  }
  0x4a   :  { %s3188_s30 = scalar_lea.hbm %s3776_s0, 384 }
  0x4b   :  { %p3189_p4 = scmp.ne.s32.totalorder %s3776_s0, %s3188_s30  ;;  %p3192_p5 = scmp.lt.u32.totalorder %s3188_s30, %s3776_s0 }
  0x4d   :  { %p3194_p6 = pnand %p3192_p5, %p3189_p4 }
  0x4f   :  { %3197 = shalt.err (!%p3194_p6)
}
  0x50   :  { %s3198_s23 = scalar_lea.vmem %s33_s16, 384  ;;  %p3203_p8 = scmp.lt.s32.totalorder %s33_s16, %s33_s16 }
  0x51   :  { %p3199_p7 = scmp.ne.s32.totalorder %s33_s16, %s3198_s23  ;;  %p3204_p9 = scmp.lt.s32.totalorder %s3198_s23, %s3198_s23 }
  0x53   :  { %p3205_p10 = por %p3204_p9, %p3203_p8 }
  0x55   :  { %p3206_p11 = pnand %p3205_p10, %p3199_p7 }
  0x57   :  { %3209 = shalt.err (!%p3206_p11)
}
  0x58   :  { %35 = dma.hbm_to_vmem [thread:$0]  %s3776_s0, 384, %s33_s16, [#allocation3]  }
  0x59   :  { %s3341_s24 = smov [#allocation7]   ;;  %s3342_s7 = smov [#allocation10]  }
  0x5a   :  { %s54_s25 = sshll.u32 %s3341_s24, 4  ;;  %s77_s21 = sshll.u32 %s3342_s7, 4  ;;  %s55_s25 = int_to_ptr.vmem [resolvable:$true] %s54_s25  ;;  %s78_s21 = int_to_ptr.vmem [resolvable:$true] %s77_s21 }
  0x5b   :  { %s3210_s1 = scalar_lea.hbm %s3778_s2, 128 }
  0x5c   :  { %p3211_p12 = scmp.ne.s32.totalorder %s3778_s2, %s3210_s1  ;;  %p3214_p13 = scmp.lt.u32.totalorder %s3210_s1, %s3778_s2 }
  0x5e   :  { %p3216_p0 = pnand %p3214_p13, %p3211_p12 }
  0x60   :  { %3219 = shalt.err (!%p3216_p0)
}
  0x61   :  { %s3220_s0 = scalar_lea.vmem %s55_s25, 128  ;;  %p3225_p2 = scmp.lt.s32.totalorder %s55_s25, %s55_s25 }
  0x62   :  { %p3221_p1 = scmp.ne.s32.totalorder %s55_s25, %s3220_s0  ;;  %p3226_p3 = scmp.lt.s32.totalorder %s3220_s0, %s3220_s0 }
  0x64   :  { %p3227_p4 = por %p3226_p3, %p3225_p2 }
  0x66   :  { %p3228_p5 = pnand %p3227_p4, %p3221_p1 }
  0x68   :  { %3231 = shalt.err (!%p3228_p5)
}
  0x69   :  { %57 = dma.hbm_to_vmem [thread:$0]  %s3778_s2, 128, %s55_s25, [#allocation6]  }
  0x6a   :  { %s3232_s19 = scalar_lea.hbm %s3781_s5, 6144 }
  0x6b   :  { %p3233_p6 = scmp.ne.s32.totalorder %s3781_s5, %s3232_s19  ;;  %p3236_p7 = scmp.lt.u32.totalorder %s3232_s19, %s3781_s5 }
  0x6d   :  { %p3238_p8 = pnand %p3236_p7, %p3233_p6 }
  0x6f   :  { %3241 = shalt.err (!%p3238_p8)
}
  0x70   :  { %s3242_s1 = scalar_lea.vmem %s78_s21, 6144  ;;  %p3247_p10 = scmp.lt.s32.totalorder %s78_s21, %s78_s21 }
  0x71   :  { %p3243_p9 = scmp.ne.s32.totalorder %s78_s21, %s3242_s1  ;;  %p3248_p11 = scmp.lt.s32.totalorder %s3242_s1, %s3242_s1 }
  0x73   :  { %p3249_p12 = por %p3248_p11, %p3247_p10 }
  0x75   :  { %p3250_p13 = pnand %p3249_p12, %p3243_p9 }
  0x77   :  { %3253 = shalt.err (!%p3250_p13)
}
  0x78   :  { %83 = dma.hbm_to_vmem [thread:$0]  %s3781_s5, 6144, %s78_s21, [#allocation9], %s3333_s28, %s3333_s28, %s3334_s29  }
  0x79   :  { %s3343_s30 = smov [#allocation13]   ;;  %s3344_s17 = smov [#allocation16]  }
  0x7a   :  { %s105_s15 = sshll.u32 %s3343_s30, 4  ;;  %s133_s20 = sshll.u32 %s3344_s17, 4  ;;  %s106_s15 = int_to_ptr.vmem [resolvable:$true] %s105_s15  ;;  %s134_s20 = int_to_ptr.vmem [resolvable:$true] %s133_s20 }
  0x7b   :  { %s3254_s22 = scalar_lea.hbm %s3785_s9, 2048 }
  0x7c   :  { %p3255_p0 = scmp.ne.s32.totalorder %s3785_s9, %s3254_s22  ;;  %p3258_p1 = scmp.lt.u32.totalorder %s3254_s22, %s3785_s9 }
  0x7e   :  { %p3260_p2 = pnand %p3258_p1, %p3255_p0 }
  0x80   :  { %3263 = shalt.err (!%p3260_p2)
}
  0x81   :  { %s3264_s5 = scalar_lea.vmem %s106_s15, 2048  ;;  %p3269_p4 = scmp.lt.s32.totalorder %s106_s15, %s106_s15 }
  0x82   :  { %p3265_p3 = scmp.ne.s32.totalorder %s106_s15, %s3264_s5  ;;  %p3270_p5 = scmp.lt.s32.totalorder %s3264_s5, %s3264_s5 }
  0x84   :  { %p3271_p6 = por %p3270_p5, %p3269_p4 }
  0x86   :  { %p3272_p7 = pnand %p3271_p6, %p3265_p3 }
  0x88   :  { %3275 = shalt.err (!%p3272_p7)
}
  0x89   :  { %111 = dma.hbm_to_vmem [thread:$0]  %s3785_s9, 2048, %s106_s15, [#allocation12], %s3333_s28, %s3333_s28, %s3334_s29  }
  0x8a   :  { %s3276_s1 = scalar_lea.hbm %s3789_s13, 1024 }
  0x8b   :  { %p3277_p8 = scmp.ne.s32.totalorder %s3789_s13, %s3276_s1  ;;  %p3280_p9 = scmp.lt.u32.totalorder %s3276_s1, %s3789_s13 }
  0x8d   :  { %p3282_p10 = pnand %p3280_p9, %p3277_p8 }
  0x8f   :  { %3285 = shalt.err (!%p3282_p10)
}
  0x90   :  { %s3286_s0 = scalar_lea.vmem %s134_s20, 1024  ;;  %p3291_p12 = scmp.lt.s32.totalorder %s134_s20, %s134_s20 }
  0x91   :  { %p3287_p11 = scmp.ne.s32.totalorder %s134_s20, %s3286_s0  ;;  %p3292_p13 = scmp.lt.s32.totalorder %s3286_s0, %s3286_s0 }
  0x93   :  { %p3293_p0 = por %p3292_p13, %p3291_p12 }
  0x95   :  { %p3294_p1 = pnand %p3293_p0, %p3287_p11 }
  0x97   :  { %3297 = shalt.err (!%p3294_p1)
}
  0x98   :  { %139 = dma.hbm_to_vmem [thread:$0]  %s3789_s13, 1024, %s134_s20, [#allocation15], %s3337_s3, %s3337_s3, %s3338_s18  }
  0x99   :  { %3320 = dma.done.wait [#allocation3], 384  }
  0x9a   :  { %3321 = vsyncadd [#allocation3], 4294966912 }
  0x9b   :  { %3322 = dma.done.wait [#allocation6], 6272  }
  0x9c   :  { %3323 = vsyncadd [#allocation6], 4294961024 }
  0x9d   :  { %3324 = dma.done.wait [#allocation9], 12288  }
  0x9e   :  { %3325 = vsyncadd [#allocation9], 4294955008 }
  0x9f   :  { %3326 = dma.done.wait [#allocation12], 5120  }
  0xa0   :  { %3327 = vsyncadd [#allocation12], 4294962176 }
  0xa1   :  { %3328 = dma.done.wait [#allocation15], 2048  }
  0xa2   :  { %3329 = vsyncadd [#allocation15], 4294965248  ;;  %v3345_v0 = vmov 0   ;;  %v2786_v1 = vld [vmem:[#allocation5 + $0x4] ss:$8 sps:$4 sm:$0xff]   ;;  %v3560_v32 = vld [vmem:[#allocation2 + $0x8] sm:$0xff]  ;;  %v192_v55 = vlaneseq }
  0xa3   :  { %314 = vmatprep.mubr.bf16.mxu0 %v3345_v0  ;;  %468 = vmatprep.mubr.bf16.mxu1 %v3345_v0  ;;  %v2788_v2 = vld [vmem:[#allocation5] ss:$8 sps:$4 sm:$0xff]   ;;  %v2789_v3 = vld [vmem:[#allocation8 + $0x4] ss:$8 sps:$4 sm:$0xff]   ;;  %v2794_v6 = vld [vmem:[#allocation5 + $0x10] ss:$8 sps:$4 sm:$0xff]   ;;  %v189_v36 = vpack.c.bf16 %v3560_v32, %v3560_v32 }
  0xa4   :  { %282 = vmatprep.subr.bf16.mxu0 %v2786_v1  ;;  %v2791_v4 = vld [vmem:[#allocation8] ss:$8 sps:$4 sm:$0xff]   ;;  %v2792_v5 = vld [vmem:[#allocation5 + $0x14] ss:$8 sps:$4 sm:$0xff]   ;;  %436 = vmatprep.subr.bf16.mxu1 %v2789_v3  ;;  %v2797_v8 = vld [vmem:[#allocation8 + $0x10] ss:$8 sps:$4 sm:$0xff]  }
  0xa5   :  { %283 = vmatpush1.bf16.msra.mxu0 %v2788_v2  ;;  %v2795_v7 = vld [vmem:[#allocation8 + $0x14] ss:$8 sps:$4 sm:$0xff]   ;;  %437 = vmatpush1.bf16.msra.mxu1 %v2791_v4  ;;  %v2800_v10 = vld [vmem:[#allocation5 + $0x20] ss:$8 sps:$4 sm:$0xff]   ;;  %v2801_v11 = vld [vmem:[#allocation8 + $0x24] ss:$8 sps:$4 sm:$0xff]  }
  0xa6   :  { %284 = vmatprep.subr.bf16.mxu0 %v2792_v5  ;;  %438 = vmatprep.subr.bf16.mxu1 %v2795_v7  ;;  %v2798_v9 = vld [vmem:[#allocation5 + $0x24] ss:$8 sps:$4 sm:$0xff]   ;;  %v2804_v12 = vld [vmem:[#allocation5 + $0x34] ss:$8 sps:$4 sm:$0xff]   ;;  %v2803_v13 = vld [vmem:[#allocation8 + $0x20] ss:$8 sps:$4 sm:$0xff]  }
  0xa7   :  { %v2807_v14 = vld [vmem:[#allocation8 + $0x34] ss:$8 sps:$4 sm:$0xff]   ;;  %v2806_v15 = vld [vmem:[#allocation5 + $0x30] ss:$8 sps:$4 sm:$0xff]   ;;  %v2813_v18 = vld [vmem:[#allocation8 + $0x44] ss:$8 sps:$4 sm:$0xff]  }
  0xa8   :  { %v2810_v16 = vld [vmem:[#allocation5 + $0x44] ss:$8 sps:$4 sm:$0xff]   ;;  %v2809_v17 = vld [vmem:[#allocation8 + $0x30] ss:$8 sps:$4 sm:$0xff]   ;;  %v2816_v20 = vld [vmem:[#allocation5 + $0x54] ss:$8 sps:$4 sm:$0xff]  }
  0xa9   :  { %285 = vmatpush1.bf16.msra.mxu0 %v2794_v6  ;;  %439 = vmatpush1.bf16.msra.mxu1 %v2797_v8  ;;  %v2812_v19 = vld [vmem:[#allocation5 + $0x40] ss:$8 sps:$4 sm:$0xff]   ;;  %v2819_v22 = vld [vmem:[#allocation8 + $0x54] ss:$8 sps:$4 sm:$0xff]   ;;  %v2818_v23 = vld [vmem:[#allocation5 + $0x50] ss:$8 sps:$4 sm:$0xff]  }
  0xaa   :  { %286 = vmatprep.subr.bf16.mxu0 %v2798_v9  ;;  %440 = vmatprep.subr.bf16.mxu1 %v2801_v11  ;;  %v2815_v21 = vld [vmem:[#allocation8 + $0x40] ss:$8 sps:$4 sm:$0xff]   ;;  %v2822_v24 = vld [vmem:[#allocation5 + $0x64] ss:$8 sps:$4 sm:$0xff]   ;;  %v2821_v25 = vld [vmem:[#allocation8 + $0x50] ss:$8 sps:$4 sm:$0xff]  }
  0xab   :  { %v2825_v26 = vld [vmem:[#allocation8 + $0x64] ss:$8 sps:$4 sm:$0xff]   ;;  %v2824_v27 = vld [vmem:[#allocation5 + $0x60] ss:$8 sps:$4 sm:$0xff]   ;;  %v2830_v30 = vld [vmem:[#allocation5 + $0x70] ss:$8 sps:$4 sm:$0xff]  }
  0xac   :  { %v2828_v28 = vld [vmem:[#allocation5 + $0x74] ss:$8 sps:$4 sm:$0xff]   ;;  %v2827_v29 = vld [vmem:[#allocation8 + $0x60] ss:$8 sps:$4 sm:$0xff]   ;;  %v2833_v34 = vld [vmem:[#allocation8 + $0x70] ss:$8 sps:$4 sm:$0xff]  }
  0xad   :  { %287 = vmatpush1.bf16.msra.mxu0 %v2800_v10  ;;  %441 = vmatpush1.bf16.msra.mxu1 %v2803_v13  ;;  %v2831_v31 = vld [vmem:[#allocation8 + $0x74] ss:$8 sps:$4 sm:$0xff]   ;;  %v2836_v33 = vld [vmem:[#allocation10 + $0x4] ss:$8 sps:$4 sm:$0xff]   ;;  %v2834_v37 = vld [vmem:[#allocation10] ss:$8 sps:$4 sm:$0xff]  }
  0xae   :  { %288 = vmatprep.subr.bf16.mxu0 %v2804_v12  ;;  %442 = vmatprep.subr.bf16.mxu1 %v2807_v14  ;;  %v3562_v35 = vld [vmem:[#allocation2] sm:$0xff]  ;;  %v2839_v39 = vld [vmem:[#allocation10 + $0x14] ss:$8 sps:$4 sm:$0xff]   ;;  %v2837_v40 = vld [vmem:[#allocation10 + $0x10] ss:$8 sps:$4 sm:$0xff]   ;;  %v193_v56 = vshrl.u32 %v192_v55, 7 }
  0xaf   :  { %v343_v38 = vpack.c.bf16 %v3562_v35, %v3562_v35  ;;  %v2842_v41 = vld [vmem:[#allocation10 + $0x24] ss:$8 sps:$4 sm:$0xff]   ;;  %v2840_v42 = vld [vmem:[#allocation10 + $0x20] ss:$8 sps:$4 sm:$0xff]   ;;  %v2845_v43 = vld [vmem:[#allocation10 + $0x34] ss:$8 sps:$4 sm:$0xff]  }
  0xb0   :  { %v2843_v44 = vld [vmem:[#allocation10 + $0x30] ss:$8 sps:$4 sm:$0xff]   ;;  %v2848_v45 = vld [vmem:[#allocation10 + $0x44] ss:$8 sps:$4 sm:$0xff]   ;;  %v2846_v46 = vld [vmem:[#allocation10 + $0x40] ss:$8 sps:$4 sm:$0xff]  }
  0xb1   :  { %289 = vmatpush1.bf16.msra.mxu0 %v2806_v15  ;;  %443 = vmatpush1.bf16.msra.mxu1 %v2809_v17  ;;  %v2851_v47 = vld [vmem:[#allocation10 + $0x54] ss:$8 sps:$4 sm:$0xff]   ;;  %v2849_v48 = vld [vmem:[#allocation10 + $0x50] ss:$8 sps:$4 sm:$0xff]   ;;  %v2854_v49 = vld [vmem:[#allocation10 + $0x64] ss:$8 sps:$4 sm:$0xff]  }
  0xb2   :  { %290 = vmatprep.subr.bf16.mxu0 %v2810_v16  ;;  %444 = vmatprep.subr.bf16.mxu1 %v2813_v18  ;;  %v2852_v50 = vld [vmem:[#allocation10 + $0x60] ss:$8 sps:$4 sm:$0xff]   ;;  %v2857_v51 = vld [vmem:[#allocation10 + $0x74] ss:$8 sps:$4 sm:$0xff]   ;;  %v2855_v52 = vld [vmem:[#allocation10 + $0x70] ss:$8 sps:$4 sm:$0xff]  }
  0xb3   :  { %v3569_v53 = vld [vmem:[#allocation2 + $0x10] sm:$0xff]  ;;  %v3574_v57 = vsub.s32 0, %v193_v56  ;;  %v190_v58 = vld [vmem:[#allocation7] ss:$4 sm:$0x3]  ;;  %v3576_v59 = vsub.s32 1, %v193_v56 }
  0xb4   :  { %v493_v54 = vpack.c.bf16 %v3569_v53, %v3569_v53  ;;  %v344_v60 = vld [vmem:[%s3780_s4] ss:$4 sm:$0x3]  ;;  %vm3347_vm0 = vmmov 0  }
  0xb5   :  { %291 = vmatpush1.bf16.msra.mxu0 %v2812_v19  ;;  %445 = vmatpush1.bf16.msra.mxu1 %v2815_v21  ;;  %v195_v61 = vrot.slane %v190_v58, %v3574_v57  ;;  %v199_v62 = vrot.slane %v190_v58, %v3576_v59  ;;  %v349_v63 = vrot.slane %v344_v60, %v3574_v57  ;;  %v494_v16 = vld [vmem:[%s3782_s6] ss:$4 sm:$0x3] }
  0xb6   :  { %292 = vmatprep.subr.bf16.mxu0 %v2816_v20  ;;  %446 = vmatprep.subr.bf16.mxu1 %v2819_v22  ;;  %v353_v2 = vrot.slane %v344_v60, %v3576_v59  ;;  %v499_v17 = vrot.slane %v494_v16, %v3574_v57  ;;  %v503_v18 = vrot.slane %v494_v16, %v3576_v59  ;;  %v2874_v55 = vld [vmem:[#allocation8 + $0xa4] ss:$8 sps:$4 sm:$0xff]   ;;  %v2872_v56 = vld [vmem:[#allocation8 + $0xa0] ss:$8 sps:$4 sm:$0xff]   ;;  %v2877_v60 = vld [vmem:[#allocation8 + $0xb4] ss:$8 sps:$4 sm:$0xff]  }
  0xb7   :  { %v2898_v16 = vld [vmem:[#allocation5 + $0xa4] ss:$8 sps:$4 sm:$0xff]  }
  0xb9   :  { %293 = vmatpush1.bf16.msra.mxu0 %v2818_v23  ;;  %447 = vmatpush1.bf16.msra.mxu1 %v2821_v25 }
  0xba   :  { %294 = vmatprep.subr.bf16.mxu0 %v2822_v24  ;;  %448 = vmatprep.subr.bf16.mxu1 %v2825_v26  ;;  %v2858_v26 = vld [vmem:[#allocation11] sm:$0xff]  }
  0xbd   :  { %295 = vmatpush1.bf16.msra.mxu0 %v2824_v27  ;;  %449 = vmatpush1.bf16.msra.mxu1 %v2827_v29  ;;  %v3346_v27 = vmov 0.0   ;;  %v2860_v29 = vld [vmem:[#allocation11 + $0x10] sm:$0xff]  }
  0xbe   :  { %296 = vmatprep.subr.bf16.mxu0 %v2828_v28  ;;  %450 = vmatprep.subr.bf16.mxu1 %v2831_v31  ;;  %v2859_v28 = vld [vmem:[#allocation11 + $0x8] sm:$0xff]  }
  0xc1   :  { %297 = vmatpush1.bf16.msra.mxu0 %v2830_v30  ;;  %451 = vmatpush1.bf16.msra.mxu1 %v2833_v34  ;;  %v2861_v30 = vld [vmem:[#allocation11 + $0x18] sm:$0xff]  }
  0xc2   :  { %586 = vmatprep.subr.bf16.mxu0 %v2836_v33  ;;  %2669 = vmatprep.subr.bf16.mxu1 %v3346_v27 }
  0xc4   :  { %315 = vmatmul.mubr.bf16.vlgmr.msra.gmra.mrb[0].mxu0 %v189_v36  ;;  %469 = vmatmul.mubr.bf16.vlgmr.msra.gmra.mrb[0].mxu1 %v343_v38 }
  0xc5   :  { %587 = vmatpush1.bf16.msra.mxu0 %v2834_v37  ;;  %618 = vmatprep.mubr.bf16.mxu0 %v3345_v0 }
  0xc6   :  { %588 = vmatprep.subr.bf16.mxu0 %v2839_v39  ;;  %2670 = vmatpush3.bf16.msra.mxu1 %v2858_v26 }
  0xc7   :  { %2671 = vmatprep.subr.bf16.mxu1 %v3346_v27  ;;  %2685 = vmatprep.mubr.msk.bf16.mxu1 %vm3347_vm0, %v3346_v27 }
  0xc9   :  { %589 = vmatpush1.bf16.msra.mxu0 %v2837_v40 }
  0xca   :  { %590 = vmatprep.subr.bf16.mxu0 %v2842_v41  ;;  %2672 = vmatpush3.bf16.msra.mxu1 %v2859_v28 }
  0xcb   :  { %2673 = vmatprep.subr.bf16.mxu1 %v3346_v27 }
  0xcd   :  { %591 = vmatpush1.bf16.msra.mxu0 %v2840_v42 }
  0xce   :  { %592 = vmatprep.subr.bf16.mxu0 %v2845_v43  ;;  %2674 = vmatpush3.bf16.msra.mxu1 %v2860_v29  ;;  %v2862_v43 = vld [vmem:[#allocation11 + $0x20] sm:$0xff]  }
  0xcf   :  { %2675 = vmatprep.subr.bf16.mxu1 %v3346_v27 }
  0xd1   :  { %593 = vmatpush1.bf16.msra.mxu0 %v2843_v44  ;;  %v2863_v44 = vld [vmem:[#allocation11 + $0x28] sm:$0xff]  }
  0xd2   :  { %594 = vmatprep.subr.bf16.mxu0 %v2848_v45  ;;  %2676 = vmatpush3.bf16.msra.mxu1 %v2861_v30  ;;  %v2865_v45 = vld [vmem:[#allocation11 + $0x38] sm:$0xff]  }
  0xd3   :  { %2677 = vmatprep.subr.bf16.mxu1 %v3346_v27  ;;  %v2904_v30 = vld [vmem:[#allocation5 + $0xc4] ss:$8 sps:$4 sm:$0xff]  }
  0xd5   :  { %595 = vmatpush1.bf16.msra.mxu0 %v2846_v46  ;;  %v2868_v46 = vld [vmem:[#allocation8 + $0x84] ss:$8 sps:$4 sm:$0xff]  }
  0xd6   :  { %596 = vmatprep.subr.bf16.mxu0 %v2851_v47  ;;  %2678 = vmatpush3.bf16.msra.mxu1 %v2862_v43 }
  0xd7   :  { %2679 = vmatprep.subr.bf16.mxu1 %v3346_v27 }
  0xd9   :  { %597 = vmatpush1.bf16.msra.mxu0 %v2849_v48 }
  0xda   :  { %598 = vmatprep.subr.bf16.mxu0 %v2854_v49  ;;  %2680 = vmatpush3.bf16.msra.mxu1 %v2863_v44 }
  0xdb   :  { %2681 = vmatprep.subr.bf16.mxu1 %v3346_v27 }
  0xdd   :  { %599 = vmatpush1.bf16.msra.mxu0 %v2852_v50 }
  0xde   :  { %600 = vmatprep.subr.bf16.mxu0 %v2857_v51  ;;  %v2866_v51 = vld [vmem:[#allocation8 + $0x80] ss:$8 sps:$4 sm:$0xff]  }
  0xe1   :  { %601 = vmatpush1.bf16.msra.mxu0 %v2855_v52 }
  0xe4   :  { %619 = vmatmul.mubr.bf16.vlgmr.msra.gmra.mrb[4].mxu0 %v493_v54  ;;  %v2869_v54 = vld [vmem:[#allocation8 + $0x90] ss:$8 sps:$4 sm:$0xff]  }
  0xe5   :  { %915 = vmatprep.mubr.bf16.mxu0 %v3345_v0 }
 0x197   :  { %v316_v1 = vpop.f32.mrb[0].mxu0  ;;  %v470_v6 = vpop.f32.mrb[0].mxu1 }
 0x198   :  { %v317_v3 = vadd.f32 %v316_v1, %v195_v61  ;;  %v318_v4 = vpop.f32.mrb[1].mxu0  ;;  %v471_v8 = vadd.f32 %v470_v6, %v349_v63  ;;  %v472_v10 = vpop.f32.mrb[1].mxu1  ;;  %v2880_v63 = vld [vmem:[#allocation8 + $0xc4] ss:$8 sps:$4 sm:$0xff]   ;;  %v2878_v1 = vld [vmem:[#allocation8 + $0xc0] ss:$8 sps:$4 sm:$0xff]  }
 0x199   :  { %v319_v5 = vadd.f32 %v318_v4, %v199_v62  ;;  %v320_v7 = vpop.f32.mrb[2].mxu0  ;;  %v3585_v12 = vadd.f32 %v472_v10, %v353_v2  ;;  %v474_v13 = vpop.f32.mrb[2].mxu1  ;;  %v2875_v62 = vld [vmem:[#allocation8 + $0xb0] ss:$8 sps:$4 sm:$0xff]   ;;  %v2883_v2 = vld [vmem:[#allocation8 + $0xd4] ss:$8 sps:$4 sm:$0xff]  }
 0x19a   :  { %v321_v9 = vpop.f32.mrb[3].mxu0  ;;  %v627_v14 = vmul.f32 %v471_v8, %v317_v3  ;;  %v475_v15 = vpop.f32.mrb[3].mxu1  ;;  %v2886_v4 = vld [vmem:[#allocation8 + $0xe4] ss:$8 sps:$4 sm:$0xff]   ;;  %v2889_v6 = vld [vmem:[#allocation8 + $0xf4] ss:$8 sps:$4 sm:$0xff]  }
 0x19b   :  { %v323_v11 = vmul.f32 %v319_v5, %v317_v3  ;;  %v637_v42 = vmul.f32 %v3585_v12, %v3585_v12  ;;  %v2884_v5 = vld [vmem:[#allocation8 + $0xe0] ss:$8 sps:$4 sm:$0xff]   ;;  %v2887_v8 = vld [vmem:[#allocation8 + $0xf0] ss:$8 sps:$4 sm:$0xff]   ;;  %v2892_v13 = vld [vmem:[#allocation5 + $0x84] ss:$8 sps:$4 sm:$0xff]  }
 0x19c   :  { %883 = vmatprep.subr.bf16.mxu0 %v2892_v13  ;;  %v2893_v15 = vld [vmem:[#allocation5 + $0x90] ss:$8 sps:$4 sm:$0xff]  }
 0x19d   :  { %324 = vadd.xlane.f32.xlu0 %v323_v11  ;;  %v2890_v11 = vld [vmem:[#allocation5 + $0x80] ss:$8 sps:$4 sm:$0xff]  }
 0x19e   :  { %884 = vmatpush1.bf16.msra.mxu0 %v2890_v11  ;;  %v791_v11 = vld [vmem:[#allocation7 + $0x1] ss:$4 sm:$0x3] }
 0x1a1   :  { %628 = vadd.xlane.f32.xlu0 %v627_v14  ;;  %v2895_v14 = vld [vmem:[#allocation5 + $0x94] ss:$8 sps:$4 sm:$0xff]  }
 0x1a2   :  { %885 = vmatprep.subr.bf16.mxu0 %v2895_v14  ;;  %v796_v14 = vrot.slane %v791_v11, %v3574_v57 }
 0x1a3   :  { %886 = vmatpush1.bf16.msra.mxu0 %v2893_v15  ;;  %v800_v15 = vrot.slane %v791_v11, %v3576_v59  ;;  %v2963_v11 = vld [vmem:[#allocation8 + $0x154] ss:$8 sps:$4 sm:$0xff]  }
 0x1a4   :  { %887 = vmatprep.subr.bf16.mxu0 %v2898_v16 }
 0x1b7   :  { %v620_v19 = vpop.f32.mrb[4].mxu0 }
 0x1b8   :  { %v621_v20 = vadd.f32 %v620_v19, %v499_v17  ;;  %v622_v21 = vpop.f32.mrb[5].mxu0  ;;  %v2901_v17 = vld [vmem:[#allocation5 + $0xb4] ss:$8 sps:$4 sm:$0xff]   ;;  %v2463_v19 = vld [vmem:[%s3784_s8] ss:$0 sm:$0xff] }
 0x1b9   :  { %v3592_v22 = vadd.f32 %v622_v21, %v503_v18  ;;  %v624_v23 = vpop.f32.mrb[6].mxu0  ;;  %v2899_v18 = vld [vmem:[#allocation5 + $0xb0] ss:$8 sps:$4 sm:$0xff]  }
 0x1ba   :  { %v625_v24 = vpop.f32.mrb[7].mxu0  ;;  %v632_v25 = vmul.f32 %v621_v20, %v317_v3  ;;  %v2881_v3 = vld [vmem:[#allocation8 + $0xd0] ss:$8 sps:$4 sm:$0xff]  }
 0x1bb   :  { %v643_v29 = vmul.f32 %v3592_v22, %v3592_v22 }
 0x1bc   :  { %633 = vadd.xlane.f32.xlu1 %v632_v25 }
 0x22a   :  { %v325_v31 = vpop.xlane.xlu0 %324 }
 0x22b   :  { %v326_v36 = vmul.f32 %v325_v31, %v3560_v32  ;;  %v2902_v31 = vld [vmem:[#allocation5 + $0xc0] ss:$8 sps:$4 sm:$0xff]  }
 0x22e   :  { %v629_v33 = vpop.xlane.xlu0 %628 }
 0x22f   :  { %v630_v34 = vmul.f32 %v629_v33, %v3562_v35  ;;  %v2864_v35 = vld [vmem:[#allocation11 + $0x30] sm:$0xff]  }
 0x230   :  { %2682 = vmatpush3.bf16.msra.mxu1 %v2864_v35  ;;  %v2907_v33 = vld [vmem:[#allocation5 + $0xd4] ss:$8 sps:$4 sm:$0xff]  }
 0x231   :  { %v631_v38 = vadd.f32 %v630_v34, %v326_v36  ;;  %2683 = vmatprep.subr.bf16.mxu1 %v3346_v27  ;;  %v2905_v34 = vld [vmem:[#allocation5 + $0xd0] ss:$8 sps:$4 sm:$0xff]   ;;  %v3627_v36 = vld [vmem:[%s3780_s4 + $0x1] ss:$4 sm:$0x3] }
 0x232   :  { %v952_v13 = vrot.slane %v3627_v36, %v3574_v57 }
 0x234   :  { %2684 = vmatpush3.bf16.msra.mxu1 %v2865_v45 }
 0x235   :  { %1039 = vmatprep.subr.bf16.mxu1 %v2868_v46 }
 0x249   :  { %v634_v37 = vpop.xlane.xlu1 %633 }
 0x24a   :  { %v635_v39 = vmul.f32 %v634_v37, %v3569_v53  ;;  %v2871_v53 = vld [vmem:[#allocation8 + $0x94] ss:$8 sps:$4 sm:$0xff]  }
 0x24b   :  { %v2910_v37 = vld [vmem:[#allocation5 + $0xe4] ss:$8 sps:$4 sm:$0xff]  }
 0x24c   :  { %v636_v40 = vadd.f32 %v635_v39, %v631_v38  ;;  %v2913_v38 = vld [vmem:[#allocation5 + $0xf4] ss:$8 sps:$4 sm:$0xff]   ;;  %v956_v39 = vrot.slane %v3627_v36, %v3576_v59 }
 0x24e   :  { %v649_v41 = vmul.f32 %v636_v40, %v636_v40 }
 0x250   :  { %650 = vadd.xlane.f32.xlu1 %v649_v41 }
 0x254   :  { %638 = vadd.xlane.f32.xlu1 %v637_v42  ;;  %v2916_v42 = vld [vmem:[#allocation10 + $0x84] ss:$8 sps:$4 sm:$0xff]  }
 0x2dd   :  { %v651_v47 = vpop.xlane.xlu1 %650 }
 0x2de   :  { %v652_v48 = vmax.f32 %v651_v47, 1e-24 }
 0x2e0   :  { %3066 = vrsqrt.f32 %v652_v48 }
 0x2e1   :  { %v639_v58 = vpop.xlane.xlu1 %638 }
 0x2e2   :  { %v640_v61 = vmax.f32 %v639_v58, 1e-24  ;;  %v2925_v58 = vld [vmem:[#allocation10 + $0xb4] ss:$8 sps:$4 sm:$0xff]  }
 0x2e4   :  { %3068 = vrsqrt.f32 %v640_v61  ;;  %v2923_v61 = vld [vmem:[#allocation10 + $0xb0] ss:$8 sps:$4 sm:$0xff]  }
 0x2ea   :  { %v3067_v49 = vpop.eup %3066 }
 0x2eb   :  { %v654_v50 = vmul.f32 %v3067_v49, %v636_v40  ;;  %v2911_v40 = vld [vmem:[#allocation5 + $0xf0] ss:$8 sps:$4 sm:$0xff]  }
 0x2ed   :  { %v671_v52 = vpack.c.bf16 %v654_v50, %v654_v50  ;;  %v2914_v50 = vld [vmem:[#allocation10 + $0x80] ss:$8 sps:$4 sm:$0xff]  }
 0x2ee   :  { %v3069_v7 = vpop.eup %3068 }
 0x2ef   :  { %2686 = vmatmul.mubr.bf16.vlgmr.msra.gmra.mrb[4].mxu1 %v671_v52  ;;  %v3611_v9 = vmul.f32 %v3069_v7, %v3585_v12  ;;  %v2896_v12 = vld [vmem:[#allocation5 + $0xa0] ss:$8 sps:$4 sm:$0xff]   ;;  %v2919_v52 = vld [vmem:[#allocation10 + $0x94] ss:$8 sps:$4 sm:$0xff]  }
 0x2f0   :  { %1040 = vmatpush1.bf16.msra.mxu1 %v2866_v51  ;;  %1071 = vmatprep.mubr.bf16.mxu1 %v3345_v0  ;;  %v2935_v7 = vld [vmem:[#allocation10 + $0xf0] ss:$8 sps:$4 sm:$0xff]  }
 0x2f1   :  { %1041 = vmatprep.subr.bf16.mxu1 %v2871_v53  ;;  %v945_v10 = vpack.c.bf16 %v3611_v9, %v3611_v9  ;;  %888 = vmatpush1.bf16.msra.mxu0 %v2896_v12  ;;  %v2917_v53 = vld [vmem:[#allocation10 + $0x90] ss:$8 sps:$4 sm:$0xff]  }
 0x2f2   :  { %889 = vmatprep.subr.bf16.mxu0 %v2901_v17 }
 0x2f4   :  { %1042 = vmatpush1.bf16.msra.mxu1 %v2869_v54  ;;  %v2922_v54 = vld [vmem:[#allocation10 + $0xa4] ss:$8 sps:$4 sm:$0xff]  }
 0x2f5   :  { %1043 = vmatprep.subr.bf16.mxu1 %v2874_v55  ;;  %890 = vmatpush1.bf16.msra.mxu0 %v2899_v18  ;;  %v2920_v55 = vld [vmem:[#allocation10 + $0xa0] ss:$8 sps:$4 sm:$0xff]  }
 0x2f6   :  { %891 = vmatprep.subr.bf16.mxu0 %v2904_v30 }
 0x2f8   :  { %1044 = vmatpush1.bf16.msra.mxu1 %v2872_v56 }
 0x2f9   :  { %1045 = vmatprep.subr.bf16.mxu1 %v2877_v60  ;;  %892 = vmatpush1.bf16.msra.mxu0 %v2902_v31 }
 0x2fa   :  { %893 = vmatprep.subr.bf16.mxu0 %v2907_v33 }
 0x2fc   :  { %1046 = vmatpush1.bf16.msra.mxu1 %v2875_v62  ;;  %v2928_v62 = vld [vmem:[#allocation10 + $0xc4] ss:$8 sps:$4 sm:$0xff]  }
 0x2fd   :  { %1047 = vmatprep.subr.bf16.mxu1 %v2880_v63  ;;  %894 = vmatpush1.bf16.msra.mxu0 %v2905_v34  ;;  %v2926_v63 = vld [vmem:[#allocation10 + $0xc0] ss:$8 sps:$4 sm:$0xff]  }
 0x2fe   :  { %895 = vmatprep.subr.bf16.mxu0 %v2910_v37  ;;  %v2939_v37 = vld [vmem:[#allocation11 + $0x48] sm:$0xff]  }
 0x300   :  { %1048 = vmatpush1.bf16.msra.mxu1 %v2878_v1  ;;  %v2931_v1 = vld [vmem:[#allocation10 + $0xd4] ss:$8 sps:$4 sm:$0xff]  }
 0x301   :  { %1049 = vmatprep.subr.bf16.mxu1 %v2883_v2  ;;  %v2929_v2 = vld [vmem:[#allocation10 + $0xd0] ss:$8 sps:$4 sm:$0xff]  }
 0x304   :  { %1050 = vmatpush1.bf16.msra.mxu1 %v2881_v3  ;;  %v2934_v3 = vld [vmem:[#allocation10 + $0xe4] ss:$8 sps:$4 sm:$0xff]  }
 0x305   :  { %1051 = vmatprep.subr.bf16.mxu1 %v2886_v4  ;;  %v2932_v4 = vld [vmem:[#allocation10 + $0xe0] ss:$8 sps:$4 sm:$0xff]  }
 0x308   :  { %1052 = vmatpush1.bf16.msra.mxu1 %v2884_v5  ;;  %v2937_v5 = vld [vmem:[#allocation10 + $0xf4] ss:$8 sps:$4 sm:$0xff]  }
 0x309   :  { %1053 = vmatprep.subr.bf16.mxu1 %v2889_v6 }
 0x30c   :  { %1054 = vmatpush1.bf16.msra.mxu1 %v2887_v8 }
 0x30d   :  { %2689 = vmatprep.subr.bf16.mxu1 %v3346_v27 }
 0x30f   :  { %1072 = vmatmul.mubr.bf16.vlgmr.msra.gmra.mrb[8].mxu1 %v945_v10 }
 0x310   :  { %2705 = vmatprep.mubr.msk.bf16.mxu1 %vm3347_vm0, %v3346_v27 }
 0x3c2   :  { %v759_v20 = vpop.f32.mrb[4].mxu1 }
 0x3c3   :  { %v760_v21 = vadd.f32 %v2463_v19, %v759_v20  ;;  %v2687_v23 = vpop.f32.mrb[5].mxu1 }
 0x3c4   :  { %v762_v24 = vpop.f32.mrb[6].mxu1 }
 0x3c5   :  { %v765_v25 = vadd.f32 %v760_v21, %v3560_v32  ;;  %v2688_v26 = vpop.f32.mrb[7].mxu1  ;;  %v2908_v32 = vld [vmem:[#allocation5 + $0xe0] ss:$8 sps:$4 sm:$0xff]  }
 0x3c6   :  { %896 = vmatpush1.bf16.msra.mxu0 %v2908_v32  ;;  %v2505_v24 = vld [vmem:[%s3782_s6 + $0x1] ss:$4 sm:$0x3] }
 0x3c7   :  { %v766_v28 = vmul.f32 %v765_v25, %v765_v25  ;;  %897 = vmatprep.subr.bf16.mxu0 %v2913_v38  ;;  %v1108_v26 = vrot.slane %v2505_v24, %v3576_v59  ;;  %v2938_v32 = vld [vmem:[#allocation11 + $0x40] sm:$0xff]   ;;  %v2940_v38 = vld [vmem:[#allocation11 + $0x50] sm:$0xff]  }
 0x3c8   :  { %2690 = vmatpush3.bf16.msra.mxu1 %v2938_v32 }
 0x3c9   :  { %767 = vadd.xlane.f32.xlu0 %v766_v28  ;;  %2691 = vmatprep.subr.bf16.mxu1 %v3346_v27 }
 0x3ca   :  { %898 = vmatpush1.bf16.msra.mxu0 %v2911_v40 }
 0x3cb   :  { %1191 = vmatprep.subr.bf16.mxu0 %v2916_v42 }
 0x3cc   :  { %2692 = vmatpush3.bf16.msra.mxu1 %v2939_v37 }
 0x3cd   :  { %644 = vadd.xlane.f32.xlu0 %v643_v29  ;;  %2693 = vmatprep.subr.bf16.mxu1 %v3346_v27 }
 0x3d0   :  { %2694 = vmatpush3.bf16.msra.mxu1 %v2940_v38 }
 0x3d1   :  { %2695 = vmatprep.subr.bf16.mxu1 %v3346_v27 }
 0x3e2   :  { %v1073_v41 = vpop.f32.mrb[8].mxu1 }
 0x3e3   :  { %v1075_v43 = vpop.f32.mrb[9].mxu1  ;;  %v1074_v12 = vadd.f32 %v1073_v41, %v952_v13  ;;  %v2961_v13 = vld [vmem:[#allocation8 + $0x150] ss:$8 sps:$4 sm:$0xff]  }
 0x3e4   :  { %v3631_v44 = vadd.f32 %v1075_v43, %v956_v39  ;;  %v1077_v35 = vpop.f32.mrb[10].mxu1  ;;  %v2941_v39 = vld [vmem:[#allocation11 + $0x58] sm:$0xff]  }
 0x3e5   :  { %v1078_v45 = vpop.f32.mrb[11].mxu1  ;;  %2696 = vmatpush3.bf16.msra.mxu1 %v2941_v39  ;;  %v2984_v39 = vld [vmem:[#allocation5 + $0x144] ss:$8 sps:$4 sm:$0xff]  }
 0x3e6   :  { %2697 = vmatprep.subr.bf16.mxu1 %v3346_v27 }
 0x456   :  { %v768_v46 = vpop.xlane.xlu0 %767 }
 0x457   :  { %v769_v47 = vmax.f32 %v768_v46, 1e-24 }
 0x459   :  { %3070 = vrsqrt.f32 %v769_v47 }
 0x45a   :  { %v645_v56 = vpop.xlane.xlu0 %644 }
 0x45b   :  { %v646_v60 = vmax.f32 %v645_v56, 1e-24 }
 0x45d   :  { %3072 = vrsqrt.f32 %v646_v60 }
 0x463   :  { %v3071_v48 = vpop.eup %3070 }
 0x464   :  { %v3633_v49 = vmul.f32 %v3071_v48, %v765_v25  ;;  %v1104_v25 = vrot.slane %v2505_v24, %v3574_v57  ;;  %v2978_v24 = vld [vmem:[#allocation5 + $0x124] ss:$8 sps:$4 sm:$0xff]  }
 0x466   :  { %v789_v51 = vpack.c.bf16 %v3633_v49, %v3633_v49 }
 0x467   :  { %v3073_v6 = vpop.eup %3072 }
 0x468   :  { %916 = vmatmul.mubr.bf16.vlgmr.msra.gmra.mrb[8].mxu0 %v789_v51  ;;  %v648_v8 = vmul.f32 %v3073_v6, %v3592_v22  ;;  %v2942_v51 = vld [vmem:[#allocation11 + $0x60] sm:$0xff]  }
 0x469   :  { %1192 = vmatpush1.bf16.msra.mxu0 %v2914_v50  ;;  %1223 = vmatprep.mubr.bf16.mxu0 %v3345_v0  ;;  %v1242_v50 = vmul.f32 %v3631_v44, %v3631_v44 }
 0x46a   :  { %1193 = vmatprep.subr.bf16.mxu0 %v2919_v52  ;;  %v1097_v10 = vpack.c.bf16 %v648_v8, %v648_v8  ;;  %2698 = vmatpush3.bf16.msra.mxu1 %v2942_v51  ;;  %v2943_v52 = vld [vmem:[#allocation11 + $0x68] sm:$0xff]  }
 0x46b   :  { %2699 = vmatprep.subr.bf16.mxu1 %v3346_v27 }
 0x46d   :  { %1194 = vmatpush1.bf16.msra.mxu0 %v2917_v53  ;;  %v2945_v53 = vld [vmem:[#allocation11 + $0x78] sm:$0xff]  }
 0x46e   :  { %1195 = vmatprep.subr.bf16.mxu0 %v2922_v54  ;;  %2700 = vmatpush3.bf16.msra.mxu1 %v2943_v52  ;;  %v2948_v54 = vld [vmem:[#allocation8 + $0x104] ss:$8 sps:$4 sm:$0xff]  }
 0x46f   :  { %2701 = vmatprep.subr.bf16.mxu1 %v3346_v27 }
 0x471   :  { %1196 = vmatpush1.bf16.msra.mxu0 %v2920_v55 }
 0x472   :  { %1197 = vmatprep.subr.bf16.mxu0 %v2925_v58 }
 0x475   :  { %1198 = vmatpush1.bf16.msra.mxu0 %v2923_v61  ;;  %v2946_v61 = vld [vmem:[#allocation8 + $0x100] ss:$8 sps:$4 sm:$0xff]  }
 0x476   :  { %1199 = vmatprep.subr.bf16.mxu0 %v2928_v62 }
 0x479   :  { %1200 = vmatpush1.bf16.msra.mxu0 %v2926_v63  ;;  %v2951_v63 = vld [vmem:[#allocation8 + $0x114] ss:$8 sps:$4 sm:$0xff]  }
 0x47a   :  { %1201 = vmatprep.subr.bf16.mxu0 %v2931_v1  ;;  %v2949_v1 = vld [vmem:[#allocation8 + $0x110] ss:$8 sps:$4 sm:$0xff]  }
 0x47d   :  { %1202 = vmatpush1.bf16.msra.mxu0 %v2929_v2  ;;  %v2954_v2 = vld [vmem:[#allocation8 + $0x124] ss:$8 sps:$4 sm:$0xff]  }
 0x47e   :  { %1203 = vmatprep.subr.bf16.mxu0 %v2934_v3  ;;  %v2952_v3 = vld [vmem:[#allocation8 + $0x120] ss:$8 sps:$4 sm:$0xff]  }
 0x481   :  { %1204 = vmatpush1.bf16.msra.mxu0 %v2932_v4 }
 0x482   :  { %1205 = vmatprep.subr.bf16.mxu0 %v2937_v5  ;;  %v2957_v5 = vld [vmem:[#allocation8 + $0x134] ss:$8 sps:$4 sm:$0xff]  }
 0x485   :  { %1206 = vmatpush1.bf16.msra.mxu0 %v2935_v7  ;;  %v2955_v7 = vld [vmem:[#allocation8 + $0x130] ss:$8 sps:$4 sm:$0xff]  }
 0x488   :  { %1224 = vmatmul.mubr.bf16.vlgmr.msra.gmra.mrb[12].mxu0 %v1097_v10  ;;  %v2958_v10 = vld [vmem:[#allocation8 + $0x140] ss:$8 sps:$4 sm:$0xff]  }
 0x489   :  { %1521 = vmatprep.mubr.bf16.mxu0 %v3345_v0 }
 0x53b   :  { %v917_v16 = vpop.f32.mrb[8].mxu0 }
 0x53c   :  { %v918_v17 = vadd.f32 %v917_v16, %v796_v14  ;;  %v919_v18 = vpop.f32.mrb[9].mxu0  ;;  %v2966_v14 = vld [vmem:[#allocation8 + $0x164] ss:$8 sps:$4 sm:$0xff]   ;;  %v2969_v16 = vld [vmem:[#allocation8 + $0x174] ss:$8 sps:$4 sm:$0xff]  }
 0x53d   :  { %v920_v19 = vadd.f32 %v919_v18, %v800_v15  ;;  %v921_v20 = vpop.f32.mrb[10].mxu0  ;;  %v2964_v15 = vld [vmem:[#allocation8 + $0x160] ss:$8 sps:$4 sm:$0xff]  }
 0x53e   :  { %v922_v22 = vpop.f32.mrb[11].mxu0  ;;  %v1232_v21 = vmul.f32 %v1074_v12, %v918_v17  ;;  %v2970_v20 = vld [vmem:[#allocation5 + $0x100] ss:$8 sps:$4 sm:$0xff]  }
 0x53f   :  { %v924_v23 = vmul.f32 %v920_v19, %v918_v17  ;;  %v2972_v22 = vld [vmem:[#allocation5 + $0x104] ss:$8 sps:$4 sm:$0xff]  }
 0x540   :  { %1233 = vadd.xlane.f32.xlu0 %v1232_v21  ;;  %v2975_v21 = vld [vmem:[#allocation5 + $0x114] ss:$8 sps:$4 sm:$0xff]   ;;  %1489 = vmatprep.subr.bf16.mxu0 %v2972_v22 }
 0x541   :  { %925 = vadd.xlane.f32.xlu1 %v924_v23  ;;  %1490 = vmatpush1.bf16.msra.mxu0 %v2970_v20  ;;  %v2973_v23 = vld [vmem:[#allocation5 + $0x110] ss:$8 sps:$4 sm:$0xff]   ;;  %v1397_v20 = vld [vmem:[#allocation7 + $0x2] ss:$4 sm:$0x3] }
 0x542   :  { %1491 = vmatprep.subr.bf16.mxu0 %v2975_v21  ;;  %v1402_v21 = vrot.slane %v1397_v20, %v3574_v57 }
 0x545   :  { %1492 = vmatpush1.bf16.msra.mxu0 %v2973_v23  ;;  %v1406_v23 = vrot.slane %v1397_v20, %v3576_v59  ;;  %v3034_v20 = vld [vmem:[#allocation13] ss:$8 sps:$4 sm:$0xff]  }
 0x546   :  { %1493 = vmatprep.subr.bf16.mxu0 %v2978_v24 }
 0x55b   :  { %v1225_v28 = vpop.f32.mrb[12].mxu0 }
 0x55c   :  { %v1226_v29 = vadd.f32 %v1225_v28, %v1104_v25  ;;  %v1227_v30 = vpop.f32.mrb[13].mxu0  ;;  %v2981_v25 = vld [vmem:[#allocation5 + $0x134] ss:$8 sps:$4 sm:$0xff]   ;;  %v2522_v28 = vld [vmem:[%s3784_s8 + $0x1] ss:$0 sm:$0xff] }
 0x55d   :  { %v3649_v31 = vadd.f32 %v1227_v30, %v1108_v26  ;;  %v1229_v33 = vpop.f32.mrb[14].mxu0  ;;  %v2979_v26 = vld [vmem:[#allocation5 + $0x130] ss:$8 sps:$4 sm:$0xff]  }
 0x55e   :  { %v1230_v34 = vpop.f32.mrb[15].mxu0  ;;  %v1237_v36 = vmul.f32 %v1226_v29, %v918_v17  ;;  %v2967_v17 = vld [vmem:[#allocation8 + $0x170] ss:$8 sps:$4 sm:$0xff]  }
 0x55f   :  { %v1248_v38 = vmul.f32 %v3649_v31, %v3649_v31 }
 0x560   :  { %1238 = vadd.xlane.f32.xlu1 %v1237_v36 }
 0x5cd   :  { %v1234_v40 = vpop.xlane.xlu0 %1233 }
 0x5ce   :  { %v926_v41 = vpop.xlane.xlu1 %925  ;;  %v1235_v42 = vmul.f32 %v1234_v40, %v3611_v9  ;;  %v2944_v9 = vld [vmem:[#allocation11 + $0x70] sm:$0xff]   ;;  %v2982_v40 = vld [vmem:[#allocation5 + $0x140] ss:$8 sps:$4 sm:$0xff]  }
 0x5cf   :  { %v927_v43 = vmul.f32 %v926_v41, %v3633_v49  ;;  %2702 = vmatpush3.bf16.msra.mxu1 %v2944_v9  ;;  %v2987_v41 = vld [vmem:[#allocation5 + $0x154] ss:$8 sps:$4 sm:$0xff]  }
 0x5d0   :  { %2703 = vmatprep.subr.bf16.mxu1 %v3346_v27 }
 0x5d1   :  { %v1236_v45 = vadd.f32 %v1235_v42, %v927_v43  ;;  %v2985_v42 = vld [vmem:[#allocation5 + $0x150] ss:$8 sps:$4 sm:$0xff]   ;;  %v3680_v43 = vld [vmem:[%s3780_s4 + $0x2] ss:$4 sm:$0x3] }
 0x5d2   :  { %v1558_v22 = vrot.slane %v3680_v43, %v3574_v57 }
 0x5d3   :  { %2704 = vmatpush3.bf16.msra.mxu1 %v2945_v53 }
 0x5d4   :  { %1645 = vmatprep.subr.bf16.mxu1 %v2948_v54 }
 0x5ed   :  { %v1239_v35 = vpop.xlane.xlu1 %1238 }
 0x5ee   :  { %v1240_v46 = vmul.f32 %v1239_v35, %v648_v8  ;;  %v2960_v8 = vld [vmem:[#allocation8 + $0x144] ss:$8 sps:$4 sm:$0xff]  }
 0x5ef   :  { %v2990_v35 = vld [vmem:[#allocation5 + $0x164] ss:$8 sps:$4 sm:$0xff]  }
 0x5f0   :  { %v1241_v47 = vadd.f32 %v1240_v46, %v1236_v45  ;;  %v2993_v45 = vld [vmem:[#allocation5 + $0x174] ss:$8 sps:$4 sm:$0xff]   ;;  %v1562_v46 = vrot.slane %v3680_v43, %v3576_v59  ;;  %v3018_v43 = vld [vmem:[#allocation11 + $0x80] sm:$0xff]  }
 0x5f2   :  { %v1254_v48 = vmul.f32 %v1241_v47, %v1241_v47 }
 0x5f4   :  { %1255 = vadd.xlane.f32.xlu0 %v1254_v48 }
 0x5f8   :  { %1243 = vadd.xlane.f32.xlu0 %v1242_v50  ;;  %v2996_v50 = vld [vmem:[#allocation10 + $0x104] ss:$8 sps:$4 sm:$0xff]  }
 0x681   :  { %v1256_v55 = vpop.xlane.xlu0 %1255 }
 0x682   :  { %v1257_v56 = vmax.f32 %v1256_v55, 1e-24 }
 0x684   :  { %3074 = vrsqrt.f32 %v1257_v56 }
 0x685   :  { %v1244_v4 = vpop.xlane.xlu0 %1243 }
 0x686   :  { %v1245_v6 = vmax.f32 %v1244_v4, 1e-24  ;;  %v3005_v4 = vld [vmem:[#allocation10 + $0x134] ss:$8 sps:$4 sm:$0xff]  }
 0x688   :  { %3076 = vrsqrt.f32 %v1245_v6  ;;  %v3003_v6 = vld [vmem:[#allocation10 + $0x130] ss:$8 sps:$4 sm:$0xff]  }
 0x68e   :  { %v3075_v58 = vpop.eup %3074 }
 0x68f   :  { %v1259_v60 = vmul.f32 %v3075_v58, %v1241_v47  ;;  %v2991_v47 = vld [vmem:[#allocation5 + $0x170] ss:$8 sps:$4 sm:$0xff]  }
 0x691   :  { %v1277_v62 = vpack.c.bf16 %v1259_v60, %v1259_v60  ;;  %v2994_v60 = vld [vmem:[#allocation10 + $0x100] ss:$8 sps:$4 sm:$0xff]  }
 0x692   :  { %v3077_v12 = vpop.eup %3076 }
 0x693   :  { %2706 = vmatmul.mubr.bf16.vlgmr.msra.gmra.mrb[12].mxu1 %v1277_v62  ;;  %v3664_v18 = vmul.f32 %v3077_v12, %v3631_v44  ;;  %v2976_v44 = vld [vmem:[#allocation5 + $0x120] ss:$8 sps:$4 sm:$0xff]   ;;  %v2999_v62 = vld [vmem:[#allocation10 + $0x114] ss:$8 sps:$4 sm:$0xff]  }
 0x694   :  { %1646 = vmatpush1.bf16.msra.mxu1 %v2946_v61  ;;  %1677 = vmatprep.mubr.bf16.mxu1 %v3345_v0  ;;  %v3015_v12 = vld [vmem:[#allocation10 + $0x170] ss:$8 sps:$4 sm:$0xff]  }
 0x695   :  { %1647 = vmatprep.subr.bf16.mxu1 %v2951_v63  ;;  %v1551_v19 = vpack.c.bf16 %v3664_v18, %v3664_v18  ;;  %1494 = vmatpush1.bf16.msra.mxu0 %v2976_v44  ;;  %v2997_v63 = vld [vmem:[#allocation10 + $0x110] ss:$8 sps:$4 sm:$0xff]  }
 0x696   :  { %1495 = vmatprep.subr.bf16.mxu0 %v2981_v25 }
 0x698   :  { %1648 = vmatpush1.bf16.msra.mxu1 %v2949_v1  ;;  %v3002_v1 = vld [vmem:[#allocation10 + $0x124] ss:$8 sps:$4 sm:$0xff]  }
 0x699   :  { %1649 = vmatprep.subr.bf16.mxu1 %v2954_v2  ;;  %1496 = vmatpush1.bf16.msra.mxu0 %v2979_v26  ;;  %v3000_v2 = vld [vmem:[#allocation10 + $0x120] ss:$8 sps:$4 sm:$0xff]  }
 0x69a   :  { %1497 = vmatprep.subr.bf16.mxu0 %v2984_v39 }
 0x69c   :  { %1650 = vmatpush1.bf16.msra.mxu1 %v2952_v3 }
 0x69d   :  { %1651 = vmatprep.subr.bf16.mxu1 %v2957_v5  ;;  %1498 = vmatpush1.bf16.msra.mxu0 %v2982_v40 }
 0x69e   :  { %1499 = vmatprep.subr.bf16.mxu0 %v2987_v41 }
 0x6a0   :  { %1652 = vmatpush1.bf16.msra.mxu1 %v2955_v7  ;;  %v3008_v7 = vld [vmem:[#allocation10 + $0x144] ss:$8 sps:$4 sm:$0xff]  }
 0x6a1   :  { %1653 = vmatprep.subr.bf16.mxu1 %v2960_v8  ;;  %1500 = vmatpush1.bf16.msra.mxu0 %v2985_v42  ;;  %v3006_v8 = vld [vmem:[#allocation10 + $0x140] ss:$8 sps:$4 sm:$0xff]  }
 0x6a2   :  { %1501 = vmatprep.subr.bf16.mxu0 %v2990_v35  ;;  %v3020_v35 = vld [vmem:[#allocation11 + $0x90] sm:$0xff]  }
 0x6a4   :  { %1654 = vmatpush1.bf16.msra.mxu1 %v2958_v10  ;;  %v3011_v10 = vld [vmem:[#allocation10 + $0x154] ss:$8 sps:$4 sm:$0xff]  }
 0x6a5   :  { %1655 = vmatprep.subr.bf16.mxu1 %v2963_v11  ;;  %v3009_v11 = vld [vmem:[#allocation10 + $0x150] ss:$8 sps:$4 sm:$0xff]  }
 0x6a8   :  { %1656 = vmatpush1.bf16.msra.mxu1 %v2961_v13  ;;  %v3014_v13 = vld [vmem:[#allocation10 + $0x164] ss:$8 sps:$4 sm:$0xff]  }
 0x6a9   :  { %1657 = vmatprep.subr.bf16.mxu1 %v2966_v14  ;;  %v3012_v14 = vld [vmem:[#allocation10 + $0x160] ss:$8 sps:$4 sm:$0xff]  }
 0x6ac   :  { %1658 = vmatpush1.bf16.msra.mxu1 %v2964_v15  ;;  %v3017_v15 = vld [vmem:[#allocation10 + $0x174] ss:$8 sps:$4 sm:$0xff]  }
 0x6ad   :  { %1659 = vmatprep.subr.bf16.mxu1 %v2969_v16 }
 0x6b0   :  { %1660 = vmatpush1.bf16.msra.mxu1 %v2967_v17 }
 0x6b1   :  { %2709 = vmatprep.subr.bf16.mxu1 %v3346_v27 }
 0x6b3   :  { %1678 = vmatmul.mubr.bf16.vlgmr.msra.gmra.mrb[16].mxu1 %v1551_v19 }
 0x6b4   :  { %2725 = vmatprep.mubr.msk.bf16.mxu1 %vm3347_vm0, %v3346_v27  ;;  %2710 = vmatpush3.bf16.msra.mxu1 %v3018_v43  ;;  %v3057_v43 = vld [vmem:[#allocation13 + $0x74] ss:$8 sps:$4 sm:$0xff]  }
 0x6b5   :  { %2711 = vmatprep.subr.bf16.mxu1 %v3346_v27 }
 0x766   :  { %v1365_v29 = vpop.f32.mrb[12].mxu1 }
 0x767   :  { %v1366_v30 = vadd.f32 %v2522_v28, %v1365_v29  ;;  %v2707_v33 = vpop.f32.mrb[13].mxu1 }
 0x768   :  { %v1368_v34 = vpop.f32.mrb[14].mxu1 }
 0x769   :  { %v1371_v36 = vadd.f32 %v1366_v30, %v3633_v49  ;;  %v2708_v32 = vpop.f32.mrb[15].mxu1  ;;  %v2988_v49 = vld [vmem:[#allocation5 + $0x160] ss:$8 sps:$4 sm:$0xff]  }
 0x76a   :  { %1502 = vmatpush1.bf16.msra.mxu0 %v2988_v49  ;;  %v3019_v49 = vld [vmem:[#allocation11 + $0x88] sm:$0xff]  }
 0x76b   :  { %v1372_v37 = vmul.f32 %v1371_v36, %v1371_v36  ;;  %1503 = vmatprep.subr.bf16.mxu0 %v2993_v45  ;;  %2712 = vmatpush3.bf16.msra.mxu1 %v3019_v49  ;;  %v3021_v45 = vld [vmem:[#allocation11 + $0x98] sm:$0xff]  }
 0x76c   :  { %2713 = vmatprep.subr.bf16.mxu1 %v3346_v27 }
 0x76d   :  { %1373 = vadd.xlane.f32.xlu1 %v1372_v37 }
 0x76e   :  { %1504 = vmatpush1.bf16.msra.mxu0 %v2991_v47 }
 0x76f   :  { %1797 = vmatprep.subr.bf16.mxu0 %v2996_v50  ;;  %2714 = vmatpush3.bf16.msra.mxu1 %v3020_v35 }
 0x770   :  { %2715 = vmatprep.subr.bf16.mxu1 %v3346_v27 }
 0x771   :  { %1249 = vadd.xlane.f32.xlu1 %v1248_v38 }
 0x773   :  { %2716 = vmatpush3.bf16.msra.mxu1 %v3021_v45 }
 0x774   :  { %2717 = vmatprep.subr.bf16.mxu1 %v3346_v27 }
 0x786   :  { %v1679_v48 = vpop.f32.mrb[16].mxu1 }
 0x787   :  { %v1681_v51 = vpop.f32.mrb[17].mxu1  ;;  %v1680_v44 = vadd.f32 %v1679_v48, %v1558_v22  ;;  %v3036_v22 = vld [vmem:[#allocation13 + $0x4] ss:$8 sps:$4 sm:$0xff]  }
 0x788   :  { %v3684_v52 = vadd.f32 %v1681_v51, %v1562_v46  ;;  %v1683_v9 = vpop.f32.mrb[18].mxu1 }
 0x789   :  { %v1684_v53 = vpop.f32.mrb[19].mxu1 }
 0x7fa   :  { %v1374_v54 = vpop.xlane.xlu1 %1373 }
 0x7fb   :  { %v1375_v55 = vmax.f32 %v1374_v54, 1e-24 }
 0x7fd   :  { %3078 = vrsqrt.f32 %v1375_v55 }
 0x7fe   :  { %v1250_v3 = vpop.xlane.xlu1 %1249 }
 0x7ff   :  { %v1251_v5 = vmax.f32 %v1250_v3, 1e-24 }
 0x801   :  { %3080 = vrsqrt.f32 %v1251_v5 }
 0x807   :  { %v3079_v56 = vpop.eup %3078 }
 0x808   :  { %v3686_v58 = vmul.f32 %v3079_v56, %v1371_v36  ;;  %v1848_v56 = vmul.f32 %v3684_v52, %v3684_v52 }
 0x80a   :  { %v1395_v61 = vpack.c.bf16 %v3686_v58, %v3686_v58 }
 0x80b   :  { %v3081_v16 = vpop.eup %3080 }
 0x80c   :  { %1522 = vmatmul.mubr.bf16.vlgmr.msra.gmra.mrb[16].mxu0 %v1395_v61  ;;  %v1253_v17 = vmul.f32 %v3081_v16, %v3649_v31  ;;  %v3023_v61 = vld [vmem:[#allocation11 + $0xa8] sm:$0xff]  }
 0x80d   :  { %1798 = vmatpush1.bf16.msra.mxu0 %v2994_v60  ;;  %1829 = vmatprep.mubr.bf16.mxu0 %v3345_v0  ;;  %v3022_v60 = vld [vmem:[#allocation11 + $0xa0] sm:$0xff]  }
 0x80e   :  { %1799 = vmatprep.subr.bf16.mxu0 %v2999_v62  ;;  %v1703_v19 = vpack.c.bf16 %v1253_v17, %v1253_v17  ;;  %2718 = vmatpush3.bf16.msra.mxu1 %v3022_v60  ;;  %v3025_v62 = vld [vmem:[#allocation11 + $0xb8] sm:$0xff]  }
 0x80f   :  { %2719 = vmatprep.subr.bf16.mxu1 %v3346_v27 }
 0x811   :  { %1800 = vmatpush1.bf16.msra.mxu0 %v2997_v63 }
 0x812   :  { %1801 = vmatprep.subr.bf16.mxu0 %v3002_v1  ;;  %2720 = vmatpush3.bf16.msra.mxu1 %v3023_v61  ;;  %v3061_v61 = vld [vmem:[#allocation16 + $0x18] sm:$0xff]  }
 0x813   :  { %2721 = vmatprep.subr.bf16.mxu1 %v3346_v27 }
 0x815   :  { %1802 = vmatpush1.bf16.msra.mxu0 %v3000_v2 }
 0x816   :  { %1803 = vmatprep.subr.bf16.mxu0 %v3005_v4  ;;  %v3026_v4 = vld [vmem:[#allocation14] sm:$0xff]  }
 0x819   :  { %1804 = vmatpush1.bf16.msra.mxu0 %v3003_v6  ;;  %v3027_v6 = vld [vmem:[#allocation14 + $0x8] sm:$0xff]  }
 0x81a   :  { %1805 = vmatprep.subr.bf16.mxu0 %v3008_v7  ;;  %v3028_v7 = vld [vmem:[#allocation14 + $0x10] sm:$0xff]  }
 0x81d   :  { %1806 = vmatpush1.bf16.msra.mxu0 %v3006_v8 }
 0x81e   :  { %1807 = vmatprep.subr.bf16.mxu0 %v3011_v10 }
 0x821   :  { %1808 = vmatpush1.bf16.msra.mxu0 %v3009_v11  ;;  %v3029_v11 = vld [vmem:[#allocation14 + $0x18] sm:$0xff]  }
 0x822   :  { %1809 = vmatprep.subr.bf16.mxu0 %v3014_v13  ;;  %v3030_v13 = vld [vmem:[#allocation14 + $0x20] sm:$0xff]  }
 0x825   :  { %1810 = vmatpush1.bf16.msra.mxu0 %v3012_v14  ;;  %v3031_v14 = vld [vmem:[#allocation14 + $0x28] sm:$0xff]  }
 0x826   :  { %1811 = vmatprep.subr.bf16.mxu0 %v3017_v15  ;;  %v3032_v15 = vld [vmem:[#allocation14 + $0x30] sm:$0xff]  }
 0x829   :  { %1812 = vmatpush1.bf16.msra.mxu0 %v3015_v12  ;;  %v3033_v12 = vld [vmem:[#allocation14 + $0x38] sm:$0xff]  }
 0x82a   :  { %2093 = vmatprep.subr.bf16.mxu0 %v3036_v22 }
 0x82c   :  { %1830 = vmatmul.mubr.bf16.vlgmr.msra.gmra.mrb[20].mxu0 %v1703_v19 }
 0x82d   :  { %2125 = vmatprep.mubr.bf16.mxu0 %v3345_v0  ;;  %v2564_v0 = vld [vmem:[%s3782_s6 + $0x2] ss:$4 sm:$0x3]  ;;  %2094 = vmatpush1.bf16.msra.mxu0 %v3034_v20 }
 0x82e   :  { %v1710_v34 = vrot.slane %v2564_v0, %v3574_v57  ;;  %v1714_v36 = vrot.slane %v2564_v0, %v3576_v59 }
 0x8df   :  { %v1523_v24 = vpop.f32.mrb[16].mxu0 }
 0x8e0   :  { %v1524_v25 = vadd.f32 %v1523_v24, %v1402_v21  ;;  %v1525_v26 = vpop.f32.mrb[17].mxu0  ;;  %v3039_v21 = vld [vmem:[#allocation13 + $0x14] ss:$8 sps:$4 sm:$0xff]   ;;  %v3042_v24 = vld [vmem:[#allocation13 + $0x24] ss:$8 sps:$4 sm:$0xff]  }
 0x8e1   :  { %v1526_v28 = vadd.f32 %v1525_v26, %v1406_v23  ;;  %v1527_v29 = vpop.f32.mrb[18].mxu0  ;;  %v3037_v23 = vld [vmem:[#allocation13 + $0x10] ss:$8 sps:$4 sm:$0xff]   ;;  %2095 = vmatprep.subr.bf16.mxu0 %v3039_v21  ;;  %v2581_v26 = vld [vmem:[%s3784_s8 + $0x2] ss:$0 sm:$0xff] }
 0x8e2   :  { %v1528_v31 = vpop.f32.mrb[19].mxu0  ;;  %v1838_v30 = vmul.f32 %v1680_v44, %v1524_v25  ;;  %2096 = vmatpush1.bf16.msra.mxu0 %v3037_v23  ;;  %v3040_v44 = vld [vmem:[#allocation13 + $0x20] ss:$8 sps:$4 sm:$0xff]  }
 0x8e3   :  { %v1530_v33 = vmul.f32 %v1526_v28, %v1524_v25  ;;  %2097 = vmatprep.subr.bf16.mxu0 %v3042_v24 }
 0x8e4   :  { %1839 = vadd.xlane.f32.xlu1 %v1838_v30 }
 0x8e5   :  { %1531 = vadd.xlane.f32.xlu0 %v1530_v33 }
 0x8e6   :  { %2098 = vmatpush1.bf16.msra.mxu0 %v3040_v44 }
 0x8ff   :  { %v1831_v32 = vpop.f32.mrb[20].mxu0 }
 0x900   :  { %v1832_v37 = vadd.f32 %v1831_v32, %v1710_v34  ;;  %v1833_v38 = vpop.f32.mrb[21].mxu0  ;;  %v3048_v32 = vld [vmem:[#allocation13 + $0x44] ss:$8 sps:$4 sm:$0xff]  }
 0x901   :  { %v3702_v39 = vadd.f32 %v1833_v38, %v1714_v36  ;;  %v1835_v40 = vpop.f32.mrb[22].mxu0  ;;  %v3051_v38 = vld [vmem:[#allocation13 + $0x54] ss:$8 sps:$4 sm:$0xff]  }
 0x902   :  { %v1836_v41 = vpop.f32.mrb[23].mxu0  ;;  %v1843_v42 = vmul.f32 %v1832_v37, %v1524_v25  ;;  %v3045_v25 = vld [vmem:[#allocation13 + $0x34] ss:$8 sps:$4 sm:$0xff]   ;;  %v3046_v37 = vld [vmem:[#allocation13 + $0x40] ss:$8 sps:$4 sm:$0xff]  }
 0x903   :  { %2099 = vmatprep.subr.bf16.mxu0 %v3045_v25  ;;  %v1854_v36 = vmul.f32 %v3702_v39, %v3702_v39  ;;  %v3049_v40 = vld [vmem:[#allocation13 + $0x50] ss:$8 sps:$4 sm:$0xff]   ;;  %v3052_v41 = vld [vmem:[#allocation13 + $0x60] ss:$8 sps:$4 sm:$0xff]  }
 0x904   :  { %1844 = vadd.xlane.f32.xlu0 %v1843_v42  ;;  %v3054_v42 = vld [vmem:[#allocation13 + $0x64] ss:$8 sps:$4 sm:$0xff]  }
 0x971   :  { %v1840_v46 = vpop.xlane.xlu1 %1839 }
 0x972   :  { %v1532_v47 = vpop.xlane.xlu0 %1531  ;;  %v1841_v48 = vmul.f32 %v1840_v46, %v3664_v18  ;;  %v3024_v18 = vld [vmem:[#allocation11 + $0xb0] sm:$0xff]  }
 0x973   :  { %v1533_v50 = vmul.f32 %v1532_v47, %v3686_v58  ;;  %2722 = vmatpush3.bf16.msra.mxu1 %v3024_v18  ;;  %v3062_v18 = vld [vmem:[#allocation16 + $0x20] sm:$0xff]  }
 0x974   :  { %2723 = vmatprep.subr.bf16.mxu1 %v3346_v27 }
 0x975   :  { %v1842_v9 = vadd.f32 %v1841_v48, %v1533_v50 }
 0x977   :  { %2724 = vmatpush3.bf16.msra.mxu1 %v3025_v62  ;;  %v3063_v62 = vld [vmem:[#allocation16 + $0x28] sm:$0xff]  }
 0x978   :  { %2729 = vmatprep.subr.bf16.mxu1 %v3346_v27 }
 0x991   :  { %v1845_v51 = vpop.xlane.xlu0 %1844 }
 0x992   :  { %v1846_v53 = vmul.f32 %v1845_v51, %v1253_v17 }
 0x994   :  { %v1847_v54 = vadd.f32 %v1846_v53, %v1842_v9  ;;  %v3058_v9 = vld [vmem:[#allocation16] sm:$0xff]  }
 0x996   :  { %v1860_v55 = vmul.f32 %v1847_v54, %v1847_v54 }
 0x998   :  { %1861 = vadd.xlane.f32.xlu1 %v1860_v55  ;;  %v3060_v55 = vld [vmem:[#allocation16 + $0x10] sm:$0xff]  }
 0x99c   :  { %1849 = vadd.xlane.f32.xlu1 %v1848_v56 }
 0xa25   :  { %v1862_v63 = vpop.xlane.xlu1 %1861 }
 0xa26   :  { %v1863_v1 = vmax.f32 %v1862_v63, 1e-24  ;;  %v3064_v63 = vld [vmem:[#allocation16 + $0x30] sm:$0xff]  }
 0xa28   :  { %3082 = vrsqrt.f32 %v1863_v1 }
 0xa29   :  { %v1850_v8 = vpop.xlane.xlu1 %1849 }
 0xa2a   :  { %v1851_v10 = vmax.f32 %v1850_v8, 1e-24 }
 0xa2c   :  { %3084 = vrsqrt.f32 %v1851_v10 }
 0xa32   :  { %v3083_v2 = vpop.eup %3082 }
 0xa33   :  { %v1865_v3 = vmul.f32 %v3083_v2, %v1847_v54  ;;  %v3059_v54 = vld [vmem:[#allocation16 + $0x8] sm:$0xff]   ;;  %v3065_v2 = vld [vmem:[#allocation16 + $0x38] sm:$0xff]  }
 0xa35   :  { %v1883_v5 = vpack.c.bf16 %v1865_v3, %v1865_v3 }
 0xa36   :  { %v3085_v16 = vpop.eup %3084 }
 0xa37   :  { %2726 = vmatmul.mubr.bf16.vlgmr.msra.gmra.mrb[20].mxu1 %v1883_v5  ;;  %v3726_v17 = vmul.f32 %v3085_v16, %v3684_v52  ;;  %v3043_v52 = vld [vmem:[#allocation13 + $0x30] ss:$8 sps:$4 sm:$0xff]   ;;  %v2001_v5 = vld [vmem:[%s3786_s10] sm:$0x3] }
 0xa38   :  { %2730 = vmatpush3.bf16.msra.mxu1 %v3026_v4  ;;  %2745 = vmatprep.mubr.msk.bf16.mxu1 %vm3347_vm0, %v3346_v27  ;;  %v2010_v8 = vrot.slane %v2001_v5, %v3576_v59 }
 0xa39   :  { %2731 = vmatprep.subr.bf16.mxu1 %v3346_v27  ;;  %v2150_v19 = vpack.c.bf16 %v3726_v17, %v3726_v17  ;;  %2100 = vmatpush1.bf16.msra.mxu0 %v3043_v52 }
 0xa3a   :  { %2101 = vmatprep.subr.bf16.mxu0 %v3048_v32 }
 0xa3c   :  { %2732 = vmatpush3.bf16.msra.mxu1 %v3027_v6  ;;  %v2006_v6 = vrot.slane %v2001_v5, %v3574_v57  ;;  %v2615_v57 = vld [vmem:[%s3790_s14] ss:$0 sm:$0xff] }
 0xa3d   :  { %2733 = vmatprep.subr.bf16.mxu1 %v3346_v27  ;;  %2102 = vmatpush1.bf16.msra.mxu0 %v3046_v37 }
 0xa3e   :  { %2103 = vmatprep.subr.bf16.mxu0 %v3051_v38 }
 0xa40   :  { %2734 = vmatpush3.bf16.msra.mxu1 %v3028_v7  ;;  %v2606_v7 = vld [vmem:[%s3788_s12] ss:$0 sm:$0xff]  ;;  %s3348_s12 = smov [#allocation17]  }
 0xa41   :  { %2735 = vmatprep.subr.bf16.mxu1 %v3346_v27  ;;  %2104 = vmatpush1.bf16.msra.mxu0 %v3049_v40  ;;  %s2402_s14 = sshll.u32 %s3348_s12, 4  ;;  %s2403_s14 = int_to_ptr.vmem [resolvable:$true] %s2402_s14 }
 0xa42   :  { %2105 = vmatprep.subr.bf16.mxu0 %v3054_v42  ;;  %s3298_s30 = scalar_lea.vmem %s2403_s14, 128  ;;  %p3303_p3 = scmp.lt.s32.totalorder %s2403_s14, %s2403_s14 }
 0xa43   :  { %p3299_p2 = scmp.ne.s32.totalorder %s2403_s14, %s3298_s30  ;;  %p3304_p4 = scmp.lt.s32.totalorder %s3298_s30, %s3298_s30 }
 0xa44   :  { %2736 = vmatpush3.bf16.msra.mxu1 %v3029_v11 }
 0xa45   :  { %2737 = vmatprep.subr.bf16.mxu1 %v3346_v27  ;;  %2106 = vmatpush1.bf16.msra.mxu0 %v3052_v41  ;;  %p3305_p5 = por %p3304_p4, %p3303_p3 }
 0xa46   :  { %2107 = vmatprep.subr.bf16.mxu0 %v3057_v43 }
 0xa47   :  { %p3306_p6 = pnand %p3305_p5, %p3299_p2 }
 0xa48   :  { %2738 = vmatpush3.bf16.msra.mxu1 %v3030_v13 }
 0xa49   :  { %2739 = vmatprep.subr.bf16.mxu1 %v3346_v27 }
 0xa4c   :  { %2740 = vmatpush3.bf16.msra.mxu1 %v3031_v14 }
 0xa4d   :  { %2741 = vmatprep.subr.bf16.mxu1 %v3346_v27 }
 0xa50   :  { %2742 = vmatpush3.bf16.msra.mxu1 %v3032_v15 }
 0xa51   :  { %2743 = vmatprep.subr.bf16.mxu1 %v3346_v27 }
 0xa54   :  { %2744 = vmatpush3.bf16.msra.mxu1 %v3033_v12 }
 0xa57   :  { %2746 = vmatmul.mubr.bf16.vlgmr.msra.gmra.mrb[24].mxu1 %v2150_v19 }
 0xb0a   :  { %v1971_v28 = vpop.f32.mrb[20].mxu1 }
 0xb0b   :  { %v1972_v29 = vadd.f32 %v2581_v26, %v1971_v28  ;;  %v2727_v31 = vpop.f32.mrb[21].mxu1 }
 0xb0c   :  { %v1974_v30 = vpop.f32.mrb[22].mxu1 }
 0xb0d   :  { %v1977_v33 = vadd.f32 %v1972_v29, %v3686_v58  ;;  %v2728_v0 = vpop.f32.mrb[23].mxu1  ;;  %v3055_v58 = vld [vmem:[#allocation13 + $0x70] ss:$8 sps:$4 sm:$0xff]  }
 0xb0e   :  { %2108 = vmatpush1.bf16.msra.mxu0 %v3055_v58 }
 0xb0f   :  { %v1978_v34 = vmul.f32 %v1977_v33, %v1977_v33  ;;  %2749 = vmatprep.subr.bf16.mxu0 %v3346_v27 }
 0xb11   :  { %1979 = vadd.xlane.f32.xlu0 %v1978_v34 }
 0xb15   :  { %1855 = vadd.xlane.f32.xlu0 %v1854_v36 }
 0xb2a   :  { %v2240_v49 = vpop.f32.mrb[24].mxu1 }
 0xb2b   :  { %v2747_v35 = vpop.f32.mrb[25].mxu1  ;;  %v2241_v11 = vadd.f32 %v2606_v7, %v2240_v49 }
 0xb2c   :  { %v2243_v45 = vpop.f32.mrb[26].mxu1 }
 0xb2d   :  { %v2748_v46 = vpop.f32.mrb[27].mxu1 }
 0xb9e   :  { %v1980_v47 = vpop.xlane.xlu0 %1979 }
 0xb9f   :  { %v1981_v48 = vmax.f32 %v1980_v47, 1e-24 }
 0xba1   :  { %3086 = vrsqrt.f32 %v1981_v48 }
 0xba2   :  { %v1856_v56 = vpop.xlane.xlu0 %1855 }
 0xba3   :  { %v1857_v60 = vmax.f32 %v1856_v56, 1e-24 }
 0xba5   :  { %3088 = vrsqrt.f32 %v1857_v60 }
 0xbab   :  { %v3087_v50 = vpop.eup %3086 }
 0xbac   :  { %v3737_v51 = vmul.f32 %v3087_v50, %v1977_v33 }
 0xbae   :  { %v2000_v53 = vpack.c.bf16 %v3737_v51, %v3737_v51 }
 0xbaf   :  { %v3089_v1 = vpop.eup %3088 }
 0xbb0   :  { %2126 = vmatmul.mubr.bf16.vlgmr.msra.gmra.mrb[24].mxu0 %v2000_v53  ;;  %v1859_v3 = vmul.f32 %v3089_v1, %v3702_v39 }
 0xbb1   :  { %2750 = vmatpush3.bf16.msra.mxu0 %v3058_v9  ;;  %2765 = vmatprep.mubr.msk.bf16.mxu0 %vm3347_vm0, %v3346_v27 }
 0xbb2   :  { %2751 = vmatprep.subr.bf16.mxu0 %v3346_v27  ;;  %v2268_v4 = vpack.c.bf16 %v1859_v3, %v1859_v3 }
 0xbb5   :  { %2752 = vmatpush3.bf16.msra.mxu0 %v3059_v54 }
 0xbb6   :  { %2753 = vmatprep.subr.bf16.mxu0 %v3346_v27 }
 0xbb9   :  { %2754 = vmatpush3.bf16.msra.mxu0 %v3060_v55 }
 0xbba   :  { %2755 = vmatprep.subr.bf16.mxu0 %v3346_v27 }
 0xbbd   :  { %2756 = vmatpush3.bf16.msra.mxu0 %v3061_v61 }
 0xbbe   :  { %2757 = vmatprep.subr.bf16.mxu0 %v3346_v27 }
 0xbc1   :  { %2758 = vmatpush3.bf16.msra.mxu0 %v3062_v18 }
 0xbc2   :  { %2759 = vmatprep.subr.bf16.mxu0 %v3346_v27 }
 0xbc5   :  { %2760 = vmatpush3.bf16.msra.mxu0 %v3063_v62 }
 0xbc6   :  { %2761 = vmatprep.subr.bf16.mxu0 %v3346_v27 }
 0xbc9   :  { %2762 = vmatpush3.bf16.msra.mxu0 %v3064_v63 }
 0xbca   :  { %2763 = vmatprep.subr.bf16.mxu0 %v3346_v27 }
 0xbcd   :  { %2764 = vmatpush3.bf16.msra.mxu0 %v3065_v2 }
 0xbd0   :  { %2766 = vmatmul.mubr.bf16.vlgmr.msra.gmra.mrb[28].mxu0 %v2268_v4 }
 0xc83   :  { %v2127_v10 = vpop.f32.mrb[24].mxu0 }
 0xc84   :  { %v2128_v27 = vadd.f32 %v2127_v10, %v2006_v6  ;;  %v2129_v13 = vpop.f32.mrb[25].mxu0 }
 0xc85   :  { %v2130_v39 = vadd.f32 %v2129_v13, %v2010_v8  ;;  %v2131_v14 = vpop.f32.mrb[26].mxu0 }
 0xc86   :  { %v2132_v15 = vpop.f32.mrb[27].mxu0  ;;  %v2246_v16 = vmul.f32 %v2241_v11, %v2128_v27 }
 0xc87   :  { %v2249_v12 = vmul.f32 %v2130_v39, %v2128_v27 }
 0xc88   :  { %2247 = vadd.xlane.f32.xlu1 %v2246_v16 }
 0xc89   :  { %2250 = vadd.xlane.f32.xlu0 %v2249_v12 }
 0xca3   :  { %v2358_v19 = vpop.f32.mrb[28].mxu0 }
 0xca4   :  { %v2359_v20 = vadd.f32 %v2615_v57, %v2358_v19  ;;  %v2767_v22 = vpop.f32.mrb[29].mxu0 }
 0xca5   :  { %v2361_v21 = vpop.f32.mrb[30].mxu0 }
 0xca6   :  { %v2768_v59 = vpop.f32.mrb[31].mxu0  ;;  %v2364_v23 = vmul.f32 %v2359_v20, %v2128_v27 }
 0xca8   :  { %2365 = vadd.xlane.f32.xlu1 %v2364_v23 }
 0xd15   :  { %v2248_v24 = vpop.xlane.xlu1 %2247 }
 0xd16   :  { %v2251_v44 = vpop.xlane.xlu0 %2250 }
 0xd17   :  { %v2367_v25 = vmax.f32 %v2248_v24, %v2251_v44 }
 0xd35   :  { %v2366_v52 = vpop.xlane.xlu1 %2365 }
 0xd36   :  { %v2368_v26 = vmax.f32 %v2367_v25, %v2366_v52 }
 0xd38   :  { %v2369_v28 = vsub.f32 %v2248_v24, %v2368_v26  ;;  %v2372_v29 = vsub.f32 %v2251_v44, %v2368_v26  ;;  %v2375_v31 = vsub.f32 %v2366_v52, %v2368_v26 }
 0xd3a   :  { %v2370_v30 = vmul.f32 1.442695, %v2369_v28  ;;  %v2373_v33 = vmul.f32 1.442695, %v2372_v29  ;;  %v2376_v0 = vmul.f32 1.442695, %v2375_v31 }
 0xd3c   :  { %3090 = vpow2.f32 %v2370_v30 }
 0xd3d   :  { %3092 = vpow2.f32 %v2373_v33 }
 0xd3e   :  { %3094 = vpow2.f32 %v2376_v0 }
 0xd46   :  { %v3091_v34 = vpop.eup %3090 }
 0xd47   :  { %v3093_v36 = vpop.eup %3092 }
 0xd48   :  { %v2378_v32 = vadd.f32 %v3093_v36, %v3091_v34  ;;  %v3095_v37 = vpop.eup %3094 }
 0xd4a   :  { %v2379_v38 = vadd.f32 %v3095_v37, %v2378_v32 }
 0xd4c   :  { %3096 = vrcp.f32 %v2379_v38 }
 0xd56   :  { %v3097_v40 = vpop.eup %3096 }
 0xd57   :  { %v2381_v41 = vmul.f32 %v3097_v40, %v3093_v36  ;;  %v2383_v42 = vmul.f32 %v3097_v40, %v3091_v34  ;;  %v2386_v43 = vmul.f32 %v3097_v40, %v3095_v37 }
 0xd59   :  { %v2382_v58 = vmul.f32 %v2381_v41, %v3737_v51  ;;  %v2384_v49 = vmul.f32 %v2383_v42, %v3726_v17  ;;  %v2387_v45 = vmul.f32 %v2386_v43, %v1859_v3 }
 0xd5b   :  { %v2385_v35 = vadd.f32 %v2384_v49, %v2382_v58 }
 0xd5d   :  { %v2388_v46 = vadd.f32 %v2387_v45, %v2385_v35 }
 0xd5f   :  { %v2389_v47 = vmul.f32 %v2388_v46, %v2388_v46 }
 0xd61   :  { %2390 = vadd.xlane.f32.xlu0 %v2389_v47 }
 0xdee   :  { %v2391_v48 = vpop.xlane.xlu0 %2390 }
 0xdef   :  { %v2392_v50 = vmax.f32 %v2391_v48, 1e-24 }
 0xdf1   :  { %3098 = vrsqrt.f32 %v2392_v50 }
 0xdfb   :  { %v3099_v9 = vpop.eup %3098 }
 0xdfc   :  { %v2394_v53 = vmul.f32 %v3099_v9, %v2388_v46 }
 0xdfe   :  { %2395 = vst [vmem:[#allocation17] sm:$0xff] %v2394_v53 }
 0xdff   :  { %3309 = shalt.err (!%p3306_p6)
}
 0xe00   :  { %s3794_s9 = sld [smem:[#allocation24_spill]] }
 0xe06   :  { %s3310_s28 = scalar_lea.hbm %s3794_s9, 128 }
 0xe07   :  { %p3311_p7 = scmp.ne.s32.totalorder %s3794_s9, %s3310_s28  ;;  %p3314_p8 = scmp.lt.u32.totalorder %s3310_s28, %s3794_s9 }
 0xe09   :  { %p3316_p9 = pnand %p3314_p8, %p3311_p7 }
 0xe0b   :  { %3319 = shalt.err (!%p3316_p9)
}
 0xe0c   :  { %2405 = dma.vmem_to_hbm [thread:$0]  %s2403_s14, 128, %s3794_s9, [#allocation4]  }
 0xe0d   :  { %3330 = dma.done.wait [#allocation4], 128  }
 0xe0e   :  { %3331 = vsyncadd [#allocation4], 4294967168 }
 0xe0f   :  { %2409 = vsyncpa [#allocation3], 1 }
 0xe10   :  { %2410 = vsyncpa [#allocation6], 1 }
 0xe11   :  { %2411 = vsyncpa [#allocation9], 1 }
 0xe12   :  { %2412 = vsyncpa [#allocation12], 1 }
 0xe13   :  { %2413 = vsyncpa [#allocation15], 1 }
 0xe14   :  { %2414 = vsyncpa [#allocation4], 1 }

</bundles_post_ra>
